<compile_context>
chip_gen: v5e
topology: v5e:2x2
jax: 0.10.0
libtpu: 0.0.40
codegen_flags: <defaults>
</compile_context>

<pallas_src>
import functools

import jax
import jax.numpy as jnp
from jax.experimental import pallas as pl
from jax.experimental.pallas import tpu as pltpu


# ------------------------------ Pallas kernels ------------------------------

def _conv_relu_pool_kernel(x_ref, w_ref, b_ref, o_ref, *, pp):
    """Fused conv (im2col GEMM) + bias + ReLU + 2x2 maxpool for one image.

    x_ref : (1, 4*pp, K)  patch rows grouped by pool-window quadrant q
                          (row q*pp + p  <->  conv output at quadrant q of
                           pooled position p)
    w_ref : (K, Cout)     flattened conv weight
    b_ref : (1, Cout)
    o_ref : (1, pp, Cout) pooled output (pp = Hp*Wp rounded up to mult. of 8)
    """
    w = w_ref[...]
    b = b_ref[...]
    pooled = None
    for q in range(4):                      # static unroll over the 2x2 window
        rows = x_ref[0, pl.ds(q * pp, pp), :]             # (pp, K), aligned
        acc = jnp.dot(rows, w, preferred_element_type=jnp.float32)
        acc = jnp.maximum(acc + b, 0.0)                   # bias + ReLU
        pooled = acc if pooled is None else jnp.maximum(pooled, acc)
    o_ref[0] = pooled.astype(o_ref.dtype)


def _mlp_kernel(x_ref, w1_ref, b1_ref, w2_ref, b2_ref, o_ref):
    """fc1 + ReLU + fc2 fused; the hidden activation never leaves VMEM."""
    h = jnp.dot(x_ref[...], w1_ref[...], preferred_element_type=jnp.float32)
    h = jnp.maximum(h + b1_ref[...], 0.0)
    o = jnp.dot(h, w2_ref[...], preferred_element_type=jnp.float32) + b2_ref[...]
    o_ref[...] = o.astype(o_ref.dtype)


# ------------------------------ pallas wrappers -----------------------------

def conv_relu_pool(patches, w, b, *, pp):
    """patches: (N, 4*pp, K); w: (K, Cout); b: (1, Cout) -> (N, pp, Cout)."""
    n, rows, k = patches.shape
    cout = w.shape[1]
    kern = functools.partial(_conv_relu_pool_kernel, pp=pp)
    return pl.pallas_call(
        kern,
        out_shape=jax.ShapeDtypeStruct((n, pp, cout), jnp.float32),
        grid_spec=pltpu.PrefetchScalarGridSpec(
            num_scalar_prefetch=0,
            grid=(n,),                                  # >=2 parallel steps
            in_specs=[
                pl.BlockSpec((1, rows, k), lambda i: (i, 0, 0)),
                pl.BlockSpec((k, cout), lambda i: (0, 0)),
                pl.BlockSpec((1, cout), lambda i: (0, 0)),
            ],
            out_specs=pl.BlockSpec((1, pp, cout), lambda i: (i, 0, 0)),
        ),
        compiler_params=pltpu.CompilerParams(
            dimension_semantics=("parallel",)),
    )(patches, w, b)


def _pick_bm(m, cap=512):
    for cand in range(min(m, cap), 0, -1):
        if m % cand == 0 and (cand % 8 == 0 or cand == m):
            return cand
    return m


def mlp(x, w1, b1, w2, b2):
    """relu(x @ w1 + b1) @ w2 + b2 in a single kernel."""
    m, k1 = x.shape
    n1 = w1.shape[1]
    n2 = w2.shape[1]
    bm = _pick_bm(m)
    return pl.pallas_call(
        _mlp_kernel,
        out_shape=jax.ShapeDtypeStruct((m, n2), jnp.float32),
        grid_spec=pltpu.PrefetchScalarGridSpec(
            num_scalar_prefetch=0,
            grid=(m // bm,),
            in_specs=[
                pl.BlockSpec((bm, k1), lambda i: (i, 0)),
                pl.BlockSpec((k1, n1), lambda i: (0, 0)),
                pl.BlockSpec((1, n1), lambda i: (0, 0)),
                pl.BlockSpec((n1, n2), lambda i: (0, 0)),
                pl.BlockSpec((1, n2), lambda i: (0, 0)),
            ],
            out_specs=pl.BlockSpec((bm, n2), lambda i: (i, 0)),
        ),
        compiler_params=pltpu.CompilerParams(
            dimension_semantics=("parallel",)),
    )(x, w1, b1, w2, b2)


# ------------------------------- glue / setup -------------------------------

def _round_up(x, m):
    return ((x + m - 1) // m) * m


def _pool_ordered_patches(x_nhwc):
    """3x3 valid-conv patches, rows grouped by 2x2 pool-window quadrant.

    Returns (patches, (hp, wp, pp)); patches: (N, 4*pp, 9*C) where row
    q*pp + p holds the flattened (kh,kw,cin) patch for conv output position
    (2*(p//wp) + q//2, 2*(p%wp) + q%2).  pp = Hp*Wp rounded up to a multiple
    of 8 (zero padded) so the kernel's pool slices stay sublane-aligned.
    """
    n, h, w, c = x_nhwc.shape
    ho, wo = h - 2, w - 2
    hp, wp = ho // 2, wo // 2
    p = hp * wp
    pp = _round_up(p, 8)
    cols = [x_nhwc[:, i:i + ho, j:j + wo, :] for i in range(3) for j in range(3)]
    patches = jnp.concatenate(cols, axis=-1)                    # (N, Ho, Wo, 9C)
    patches = patches.reshape(n, hp, 2, wp, 2, 9 * c)
    patches = patches.transpose(0, 2, 4, 1, 3, 5)               # (N, 2, 2, Hp, Wp, 9C)
    patches = patches.reshape(n, 4, p, 9 * c)
    if pp > p:
        patches = jnp.pad(patches, ((0, 0), (0, 0), (0, pp - p), (0, 0)))
    return patches.reshape(n, 4 * pp, 9 * c), (hp, wp, pp)


def init_params(key):
    """Deterministic init; parameters stored in PyTorch layouts."""
    ks = jax.random.split(key, 8)

    def u(k, shape, fan_in):
        bound = 1.0 / jnp.sqrt(jnp.float32(fan_in))
        return jax.random.uniform(k, shape, jnp.float32, -bound, bound)

    p = {}
    p["conv1_w"] = u(ks[0], (32, 3, 3, 3), 3 * 9)          # (Cout, Cin, KH, KW)
    p["conv1_b"] = u(ks[1], (32,), 3 * 9)
    p["conv2_w"] = u(ks[2], (64, 32, 3, 3), 32 * 9)
    p["conv2_b"] = u(ks[3], (64,), 32 * 9)
    p["fc1_w"] = u(ks[4], (128, 64 * 6 * 6), 64 * 6 * 6)   # (out, in), NCHW in
    p["fc1_b"] = u(ks[5], (128,), 64 * 6 * 6)
    p["fc2_w"] = u(ks[6], (10, 128), 128)
    p["fc2_b"] = u(ks[7], (10,), 128)
    return p


def prepare_params(params):
    """One-time layout prep, hoisted out of the per-call forward."""
    prep = {
        "conv1_w": jnp.transpose(params["conv1_w"], (2, 3, 1, 0)).reshape(27, 32),
        "conv1_b": params["conv1_b"].reshape(1, 32),
        "conv2_w": jnp.transpose(params["conv2_w"], (2, 3, 1, 0)).reshape(288, 64),
        "conv2_b": params["conv2_b"].reshape(1, 64),
        # fc1 expects NCHW-flattened input (c*36 + p); our flatten is NHWC
        # (p*64 + c), so fold the permutation into the weight once here.
        "fc1_w": params["fc1_w"].reshape(128, 64, 36)
                                 .transpose(2, 1, 0).reshape(36 * 64, 128),
        "fc1_b": params["fc1_b"].reshape(1, 128),
        "fc2_w": params["fc2_w"].T,
        "fc2_b": params["fc2_b"].reshape(1, 10),
    }
    return jax.tree_util.tree_map(lambda a: a.astype(jnp.float32), prep)


@jax.jit
def network_forward(prep, x_nchw):
    n = x_nchw.shape[0]
    x = jnp.transpose(x_nchw, (0, 2, 3, 1)).astype(jnp.float32)     # -> NHWC

    # stage 1: conv1 + bias + ReLU + 2x2 maxpool (one pallas_call)
    p1, (hp1, wp1, pp1) = _pool_ordered_patches(x)                  # (N, 800, 27)
    y1 = conv_relu_pool(p1, prep["conv1_w"], prep["conv1_b"], pp=pp1)
    y1 = y1[:, :hp1 * wp1, :].reshape(n, hp1, wp1, 32)              # (N,14,14,32)

    # stage 2: conv2 + bias + ReLU + 2x2 maxpool (one pallas_call)
    p2, (hp2, wp2, pp2) = _pool_ordered_patches(y1)                 # (N, 160, 288)
    y2 = conv_relu_pool(p2, prep["conv2_w"], prep["conv2_b"], pp=pp2)

    # flatten in NHWC order; NCHW `.view` permutation is folded into fc1_w
    flat = y2[:, :hp2 * wp2, :].reshape(n, hp2 * wp2 * 64)          # (N, 2304)

    # fc1 + ReLU + fc2 (one pallas_call; hidden stays in VMEM)
    return mlp(flat, prep["fc1_w"], prep["fc1_b"],
               prep["fc2_w"], prep["fc2_b"])                        # (N, 10)


# --------------------------- pure-JAX reference ------------------------------

@jax.jit
def reference_forward(params, x_nchw):
    hpz = jax.lax.Precision.HIGHEST
    x = jnp.transpose(x_nchw, (0, 2, 3, 1)).astype(jnp.float32)

    def conv(v, w, b):
        y = jax.lax.conv_general_dilated(
            v, jnp.transpose(w, (2, 3, 1, 0)), (1, 1), "VALID",
            dimension_numbers=("NHWC", "HWIO", "NHWC"), precision=hpz)
        return jnp.maximum(y + b, 0.0)

    def pool(y):
        n, h, w, c = y.shape
        return jnp.max(y.reshape(n, h // 2, 2, w // 2, 2, c), axis=(2, 4))

    y = pool(conv(x, params["conv1_w"], params["conv1_b"]))
    y = pool(conv(y, params["conv2_w"], params["conv2_b"]))
    flat = jnp.transpose(y, (0, 3, 1, 2)).reshape(y.shape[0], -1)   # NCHW view
    h1 = jnp.maximum(
        jnp.dot(flat, params["fc1_w"].T, precision=hpz) + params["fc1_b"], 0.0)
    return jnp.dot(h1, params["fc2_w"].T, precision=hpz) + params["fc2_b"]


# ---------------------------------- main -------------------------------------

if __name__ == "__main__":
    key = jax.random.PRNGKey(0)
    k_param, k_x = jax.random.split(key)
    params = init_params(k_param)
    prep = prepare_params(params)
    # 30x30 input so two (k3 conv + 2x2 pool) stages yield 6x6 (= 64*6*6 flatten)
    x = jax.random.normal(k_x, (2, 3, 30, 30), dtype=jnp.float32)

    logits = jax.block_until_ready(network_forward(prep, x))

    assert logits.shape == (2, 10), logits.shape
    assert bool(jnp.all(jnp.isfinite(logits)))

    ref = jax.block_until_ready(reference_forward(params, x))
    assert bool(jnp.allclose(logits, ref, rtol=2e-3, atol=2e-3)), \
        float(jnp.max(jnp.abs(logits - ref)))

    print("KERNEL_OK")
</pallas_src>

<mosaic_0001>
module attributes {stable_mosaic.version = 11 : i64} {
  func.func @_conv_relu_pool_kernel(%arg0: i32, %arg1: memref<1x800x27xf32, #tpu.memory_space<vmem>>, %arg2: memref<27x32xf32, #tpu.memory_space<vmem>>, %arg3: memref<1x32xf32, #tpu.memory_space<vmem>>, %arg4: memref<1x200x32xf32, #tpu.memory_space<vmem>>) attributes {dimension_semantics = [#tpu.dimension_semantics<parallel>], iteration_bounds = array<i64: 2>, scalar_prefetch = 0 : i64, scratch_operands = 0 : i64, tpu.core_type = #tpu.core_type<tc>, window_params = [{transform_indices = @transform_0, window_bounds = array<i64: 1, 800, 27>}, {pipeline_mode = #tpu.pipeline_mode<synchronous>, transform_indices = @transform_1, window_bounds = array<i64: 27, 32>}, {pipeline_mode = #tpu.pipeline_mode<synchronous>, transform_indices = @transform_2, window_bounds = array<i64: 1, 32>}, {transform_indices = @transform_3, window_bounds = array<i64: 1, 200, 32>}]} {
    %c0 = arith.constant 0 : index
    %c0_0 = arith.constant 0 : index
    %0 = vector.load %arg2[%c0, %c0_0] : memref<27x32xf32, #tpu.memory_space<vmem>>, vector<27x32xf32>
    %c0_1 = arith.constant 0 : index
    %c0_2 = arith.constant 0 : index
    %1 = vector.load %arg3[%c0_1, %c0_2] : memref<1x32xf32, #tpu.memory_space<vmem>>, vector<1x32xf32>
    %c0_3 = arith.constant 0 : index
    %c0_4 = arith.constant 0 : index
    %c0_5 = arith.constant 0 : index
    %2 = vector.load %arg1[%c0_3, %c0_4, %c0_5] : memref<1x800x27xf32, #tpu.memory_space<vmem>>, vector<1x200x27xf32>
    %3 = vector.shape_cast %2 : vector<1x200x27xf32> to vector<200x27xf32>
    %cst = arith.constant dense<0.000000e+00> : vector<200x32xf32>
    %4 = tpu.matmul %3, %0, %cst {dimension_numbers = #tpu.dot_dimension_numbers<[1], [0], [0], [1], [0, 0, 1, 1], [], []>} : vector<200x27xf32>, vector<27x32xf32>, vector<200x32xf32> -> vector<200x32xf32>
    %5 = vector.broadcast %1 : vector<1x32xf32> to vector<200x32xf32>
    %6 = arith.addf %4, %5 : vector<200x32xf32>
    %cst_6 = arith.constant 0.000000e+00 : f32
    %7 = vector.broadcast %cst_6 : f32 to vector<200x32xf32>
    %8 = arith.maximumf %6, %7 : vector<200x32xf32>
    %c0_7 = arith.constant 0 : index
    %c200 = arith.constant 200 : index
    %c0_8 = arith.constant 0 : index
    %9 = vector.load %arg1[%c0_7, %c200, %c0_8] : memref<1x800x27xf32, #tpu.memory_space<vmem>>, vector<1x200x27xf32>
    %10 = vector.shape_cast %9 : vector<1x200x27xf32> to vector<200x27xf32>
    %cst_9 = arith.constant dense<0.000000e+00> : vector<200x32xf32>
    %11 = tpu.matmul %10, %0, %cst_9 {dimension_numbers = #tpu.dot_dimension_numbers<[1], [0], [0], [1], [0, 0, 1, 1], [], []>} : vector<200x27xf32>, vector<27x32xf32>, vector<200x32xf32> -> vector<200x32xf32>
    %12 = vector.broadcast %1 : vector<1x32xf32> to vector<200x32xf32>
    %13 = arith.addf %11, %12 : vector<200x32xf32>
    %cst_10 = arith.constant 0.000000e+00 : f32
    %14 = vector.broadcast %cst_10 : f32 to vector<200x32xf32>
    %15 = arith.maximumf %13, %14 : vector<200x32xf32>
    %16 = arith.maximumf %8, %15 : vector<200x32xf32>
    %c0_11 = arith.constant 0 : index
    %c400 = arith.constant 400 : index
    %c0_12 = arith.constant 0 : index
    %17 = vector.load %arg1[%c0_11, %c400, %c0_12] : memref<1x800x27xf32, #tpu.memory_space<vmem>>, vector<1x200x27xf32>
    %18 = vector.shape_cast %17 : vector<1x200x27xf32> to vector<200x27xf32>
    %cst_13 = arith.constant dense<0.000000e+00> : vector<200x32xf32>
    %19 = tpu.matmul %18, %0, %cst_13 {dimension_numbers = #tpu.dot_dimension_numbers<[1], [0], [0], [1], [0, 0, 1, 1], [], []>} : vector<200x27xf32>, vector<27x32xf32>, vector<200x32xf32> -> vector<200x32xf32>
    %20 = vector.broadcast %1 : vector<1x32xf32> to vector<200x32xf32>
    %21 = arith.addf %19, %20 : vector<200x32xf32>
    %cst_14 = arith.constant 0.000000e+00 : f32
    %22 = vector.broadcast %cst_14 : f32 to vector<200x32xf32>
    %23 = arith.maximumf %21, %22 : vector<200x32xf32>
    %24 = arith.maximumf %16, %23 : vector<200x32xf32>
    %c0_15 = arith.constant 0 : index
    %c600 = arith.constant 600 : index
    %c0_16 = arith.constant 0 : index
    %25 = vector.load %arg1[%c0_15, %c600, %c0_16] : memref<1x800x27xf32, #tpu.memory_space<vmem>>, vector<1x200x27xf32>
    %26 = vector.shape_cast %25 : vector<1x200x27xf32> to vector<200x27xf32>
    %cst_17 = arith.constant dense<0.000000e+00> : vector<200x32xf32>
    %27 = tpu.matmul %26, %0, %cst_17 {dimension_numbers = #tpu.dot_dimension_numbers<[1], [0], [0], [1], [0, 0, 1, 1], [], []>} : vector<200x27xf32>, vector<27x32xf32>, vector<200x32xf32> -> vector<200x32xf32>
    %28 = vector.broadcast %1 : vector<1x32xf32> to vector<200x32xf32>
    %29 = arith.addf %27, %28 : vector<200x32xf32>
    %cst_18 = arith.constant 0.000000e+00 : f32
    %30 = vector.broadcast %cst_18 : f32 to vector<200x32xf32>
    %31 = arith.maximumf %29, %30 : vector<200x32xf32>
    %32 = arith.maximumf %24, %31 : vector<200x32xf32>
    %c0_19 = arith.constant 0 : index
    %c0_20 = arith.constant 0 : index
    %c0_21 = arith.constant 0 : index
    %33 = vector.load %arg4[%c0_19, %c0_20, %c0_21] : memref<1x200x32xf32, #tpu.memory_space<vmem>>, vector<1x200x32xf32>
    %34 = vector.shape_cast %33 : vector<1x200x32xf32> to vector<200x32xf32>
    %35 = vector.shape_cast %32 : vector<200x32xf32> to vector<1x200x32xf32>
    tpu.vector_store %arg4[%c0_19, %c0_20, %c0_21], %35 {strides = array<i32>} : memref<1x200x32xf32, #tpu.memory_space<vmem>>, vector<1x200x32xf32>,
    return
  }
  func.func @transform_0(%arg0: i32) -> (i32, i32, i32) {
    %c0_i32 = arith.constant 0 : i32
    %c0_i32_0 = arith.constant 0 : i32
    %c0_i32_1 = arith.constant 0 : i32
    return %arg0, %c0_i32, %c0_i32_0 : i32, i32, i32
  }
  func.func @transform_1(%arg0: i32) -> (i32, i32) {
    %c0_i32 = arith.constant 0 : i32
    %c0_i32_0 = arith.constant 0 : i32
    %c0_i32_1 = arith.constant 0 : i32
    return %c0_i32, %c0_i32_0 : i32, i32
  }
  func.func @transform_2(%arg0: i32) -> (i32, i32) {
    %c0_i32 = arith.constant 0 : i32
    %c0_i32_0 = arith.constant 0 : i32
    %c0_i32_1 = arith.constant 0 : i32
    return %c0_i32, %c0_i32_0 : i32, i32
  }
  func.func @transform_3(%arg0: i32) -> (i32, i32, i32) {
    %c0_i32 = arith.constant 0 : i32
    %c0_i32_0 = arith.constant 0 : i32
    %c0_i32_1 = arith.constant 0 : i32
    return %arg0, %c0_i32, %c0_i32_0 : i32, i32, i32
  }
}

module attributes {stable_mosaic.version = 11 : i64} {
  func.func @_conv_relu_pool_kernel(%arg0: i32, %arg1: memref<1x160x288xf32, #tpu.memory_space<vmem>>, %arg2: memref<288x64xf32, #tpu.memory_space<vmem>>, %arg3: memref<1x64xf32, #tpu.memory_space<vmem>>, %arg4: memref<1x40x64xf32, #tpu.memory_space<vmem>>) attributes {dimension_semantics = [#tpu.dimension_semantics<parallel>], iteration_bounds = array<i64: 2>, scalar_prefetch = 0 : i64, scratch_operands = 0 : i64, tpu.core_type = #tpu.core_type<tc>, window_params = [{transform_indices = @transform_0, window_bounds = array<i64: 1, 160, 288>}, {pipeline_mode = #tpu.pipeline_mode<synchronous>, transform_indices = @transform_1, window_bounds = array<i64: 288, 64>}, {pipeline_mode = #tpu.pipeline_mode<synchronous>, transform_indices = @transform_2, window_bounds = array<i64: 1, 64>}, {transform_indices = @transform_3, window_bounds = array<i64: 1, 40, 64>}]} {
    %c0 = arith.constant 0 : index
    %c0_0 = arith.constant 0 : index
    %0 = vector.load %arg2[%c0, %c0_0] : memref<288x64xf32, #tpu.memory_space<vmem>>, vector<288x64xf32>
    %c0_1 = arith.constant 0 : index
    %c0_2 = arith.constant 0 : index
    %1 = vector.load %arg3[%c0_1, %c0_2] : memref<1x64xf32, #tpu.memory_space<vmem>>, vector<1x64xf32>
    %c0_3 = arith.constant 0 : index
    %c0_4 = arith.constant 0 : index
    %c0_5 = arith.constant 0 : index
    %2 = vector.load %arg1[%c0_3, %c0_4, %c0_5] : memref<1x160x288xf32, #tpu.memory_space<vmem>>, vector<1x40x288xf32>
    %3 = vector.shape_cast %2 : vector<1x40x288xf32> to vector<40x288xf32>
    %cst = arith.constant dense<0.000000e+00> : vector<40x64xf32>
    %4 = tpu.matmul %3, %0, %cst {dimension_numbers = #tpu.dot_dimension_numbers<[1], [0], [0], [1], [0, 0, 1, 1], [], []>} : vector<40x288xf32>, vector<288x64xf32>, vector<40x64xf32> -> vector<40x64xf32>
    %5 = vector.broadcast %1 : vector<1x64xf32> to vector<40x64xf32>
    %6 = arith.addf %4, %5 : vector<40x64xf32>
    %cst_6 = arith.constant 0.000000e+00 : f32
    %7 = vector.broadcast %cst_6 : f32 to vector<40x64xf32>
    %8 = arith.maximumf %6, %7 : vector<40x64xf32>
    %c0_7 = arith.constant 0 : index
    %c40 = arith.constant 40 : index
    %c0_8 = arith.constant 0 : index
    %9 = vector.load %arg1[%c0_7, %c40, %c0_8] : memref<1x160x288xf32, #tpu.memory_space<vmem>>, vector<1x40x288xf32>
    %10 = vector.shape_cast %9 : vector<1x40x288xf32> to vector<40x288xf32>
    %cst_9 = arith.constant dense<0.000000e+00> : vector<40x64xf32>
    %11 = tpu.matmul %10, %0, %cst_9 {dimension_numbers = #tpu.dot_dimension_numbers<[1], [0], [0], [1], [0, 0, 1, 1], [], []>} : vector<40x288xf32>, vector<288x64xf32>, vector<40x64xf32> -> vector<40x64xf32>
    %12 = vector.broadcast %1 : vector<1x64xf32> to vector<40x64xf32>
    %13 = arith.addf %11, %12 : vector<40x64xf32>
    %cst_10 = arith.constant 0.000000e+00 : f32
    %14 = vector.broadcast %cst_10 : f32 to vector<40x64xf32>
    %15 = arith.maximumf %13, %14 : vector<40x64xf32>
    %16 = arith.maximumf %8, %15 : vector<40x64xf32>
    %c0_11 = arith.constant 0 : index
    %c80 = arith.constant 80 : index
    %c0_12 = arith.constant 0 : index
    %17 = vector.load %arg1[%c0_11, %c80, %c0_12] : memref<1x160x288xf32, #tpu.memory_space<vmem>>, vector<1x40x288xf32>
    %18 = vector.shape_cast %17 : vector<1x40x288xf32> to vector<40x288xf32>
    %cst_13 = arith.constant dense<0.000000e+00> : vector<40x64xf32>
    %19 = tpu.matmul %18, %0, %cst_13 {dimension_numbers = #tpu.dot_dimension_numbers<[1], [0], [0], [1], [0, 0, 1, 1], [], []>} : vector<40x288xf32>, vector<288x64xf32>, vector<40x64xf32> -> vector<40x64xf32>
    %20 = vector.broadcast %1 : vector<1x64xf32> to vector<40x64xf32>
    %21 = arith.addf %19, %20 : vector<40x64xf32>
    %cst_14 = arith.constant 0.000000e+00 : f32
    %22 = vector.broadcast %cst_14 : f32 to vector<40x64xf32>
    %23 = arith.maximumf %21, %22 : vector<40x64xf32>
    %24 = arith.maximumf %16, %23 : vector<40x64xf32>
    %c0_15 = arith.constant 0 : index
    %c120 = arith.constant 120 : index
    %c0_16 = arith.constant 0 : index
    %25 = vector.load %arg1[%c0_15, %c120, %c0_16] : memref<1x160x288xf32, #tpu.memory_space<vmem>>, vector<1x40x288xf32>
    %26 = vector.shape_cast %25 : vector<1x40x288xf32> to vector<40x288xf32>
    %cst_17 = arith.constant dense<0.000000e+00> : vector<40x64xf32>
    %27 = tpu.matmul %26, %0, %cst_17 {dimension_numbers = #tpu.dot_dimension_numbers<[1], [0], [0], [1], [0, 0, 1, 1], [], []>} : vector<40x288xf32>, vector<288x64xf32>, vector<40x64xf32> -> vector<40x64xf32>
    %28 = vector.broadcast %1 : vector<1x64xf32> to vector<40x64xf32>
    %29 = arith.addf %27, %28 : vector<40x64xf32>
    %cst_18 = arith.constant 0.000000e+00 : f32
    %30 = vector.broadcast %cst_18 : f32 to vector<40x64xf32>
    %31 = arith.maximumf %29, %30 : vector<40x64xf32>
    %32 = arith.maximumf %24, %31 : vector<40x64xf32>
    %c0_19 = arith.constant 0 : index
    %c0_20 = arith.constant 0 : index
    %c0_21 = arith.constant 0 : index
    %33 = vector.load %arg4[%c0_19, %c0_20, %c0_21] : memref<1x40x64xf32, #tpu.memory_space<vmem>>, vector<1x40x64xf32>
    %34 = vector.shape_cast %33 : vector<1x40x64xf32> to vector<40x64xf32>
    %35 = vector.shape_cast %32 : vector<40x64xf32> to vector<1x40x64xf32>
    tpu.vector_store %arg4[%c0_19, %c0_20, %c0_21], %35 {strides = array<i32>} : memref<1x40x64xf32, #tpu.memory_space<vmem>>, vector<1x40x64xf32>,
    return
  }
  func.func @transform_0(%arg0: i32) -> (i32, i32, i32) {
    %c0_i32 = arith.constant 0 : i32
    %c0_i32_0 = arith.constant 0 : i32
    %c0_i32_1 = arith.constant 0 : i32
    return %arg0, %c0_i32, %c0_i32_0 : i32, i32, i32
  }
  func.func @transform_1(%arg0: i32) -> (i32, i32) {
    %c0_i32 = arith.constant 0 : i32
    %c0_i32_0 = arith.constant 0 : i32
    %c0_i32_1 = arith.constant 0 : i32
    return %c0_i32, %c0_i32_0 : i32, i32
  }
  func.func @transform_2(%arg0: i32) -> (i32, i32) {
    %c0_i32 = arith.constant 0 : i32
    %c0_i32_0 = arith.constant 0 : i32
    %c0_i32_1 = arith.constant 0 : i32
    return %c0_i32, %c0_i32_0 : i32, i32
  }
  func.func @transform_3(%arg0: i32) -> (i32, i32, i32) {
    %c0_i32 = arith.constant 0 : i32
    %c0_i32_0 = arith.constant 0 : i32
    %c0_i32_1 = arith.constant 0 : i32
    return %arg0, %c0_i32, %c0_i32_0 : i32, i32, i32
  }
}

module attributes {stable_mosaic.version = 11 : i64} {
  func.func @_mlp_kernel(%arg0: i32, %arg1: memref<2x2304xf32, #tpu.memory_space<vmem>>, %arg2: memref<2304x128xf32, #tpu.memory_space<vmem>>, %arg3: memref<1x128xf32, #tpu.memory_space<vmem>>, %arg4: memref<128x10xf32, #tpu.memory_space<vmem>>, %arg5: memref<1x10xf32, #tpu.memory_space<vmem>>, %arg6: memref<2x10xf32, #tpu.memory_space<vmem>>) attributes {dimension_semantics = [#tpu.dimension_semantics<parallel>], iteration_bounds = array<i64: 1>, scalar_prefetch = 0 : i64, scratch_operands = 0 : i64, tpu.core_type = #tpu.core_type<tc>, window_params = [{transform_indices = @transform_0, window_bounds = array<i64: 2, 2304>}, {pipeline_mode = #tpu.pipeline_mode<synchronous>, transform_indices = @transform_1, window_bounds = array<i64: 2304, 128>}, {pipeline_mode = #tpu.pipeline_mode<synchronous>, transform_indices = @transform_2, window_bounds = array<i64: 1, 128>}, {pipeline_mode = #tpu.pipeline_mode<synchronous>, transform_indices = @transform_3, window_bounds = array<i64: 128, 10>}, {pipeline_mode = #tpu.pipeline_mode<synchronous>, transform_indices = @transform_4, window_bounds = array<i64: 1, 10>}, {transform_indices = @transform_5, window_bounds = array<i64: 2, 10>}]} {
    %c0 = arith.constant 0 : index
    %c0_0 = arith.constant 0 : index
    %0 = vector.load %arg1[%c0, %c0_0] : memref<2x2304xf32, #tpu.memory_space<vmem>>, vector<2x2304xf32>
    %c0_1 = arith.constant 0 : index
    %c0_2 = arith.constant 0 : index
    %1 = vector.load %arg2[%c0_1, %c0_2] : memref<2304x128xf32, #tpu.memory_space<vmem>>, vector<2304x128xf32>
    %cst = arith.constant dense<0.000000e+00> : vector<2x128xf32>
    %2 = tpu.matmul %0, %1, %cst {dimension_numbers = #tpu.dot_dimension_numbers<[1], [0], [0], [1], [0, 0, 1, 1], [], []>} : vector<2x2304xf32>, vector<2304x128xf32>, vector<2x128xf32> -> vector<2x128xf32>
    %c0_3 = arith.constant 0 : index
    %c0_4 = arith.constant 0 : index
    %3 = vector.load %arg3[%c0_3, %c0_4] : memref<1x128xf32, #tpu.memory_space<vmem>>, vector<1x128xf32>
    %4 = vector.broadcast %3 : vector<1x128xf32> to vector<2x128xf32>
    %5 = arith.addf %2, %4 : vector<2x128xf32>
    %cst_5 = arith.constant 0.000000e+00 : f32
    %6 = vector.broadcast %cst_5 : f32 to vector<2x128xf32>
    %7 = arith.maximumf %5, %6 : vector<2x128xf32>
    %c0_6 = arith.constant 0 : index
    %c0_7 = arith.constant 0 : index
    %8 = vector.load %arg4[%c0_6, %c0_7] : memref<128x10xf32, #tpu.memory_space<vmem>>, vector<128x10xf32>
    %cst_8 = arith.constant dense<0.000000e+00> : vector<2x10xf32>
    %9 = tpu.matmul %7, %8, %cst_8 {dimension_numbers = #tpu.dot_dimension_numbers<[1], [0], [0], [1], [0, 0, 1, 1], [], []>} : vector<2x128xf32>, vector<128x10xf32>, vector<2x10xf32> -> vector<2x10xf32>
    %c0_9 = arith.constant 0 : index
    %c0_10 = arith.constant 0 : index
    %10 = vector.load %arg5[%c0_9, %c0_10] : memref<1x10xf32, #tpu.memory_space<vmem>>, vector<1x10xf32>
    %11 = vector.broadcast %10 : vector<1x10xf32> to vector<2x10xf32>
    %12 = arith.addf %9, %11 : vector<2x10xf32>
    %c0_11 = arith.constant 0 : index
    %c0_12 = arith.constant 0 : index
    %13 = vector.load %arg6[%c0_11, %c0_12] : memref<2x10xf32, #tpu.memory_space<vmem>>, vector<2x10xf32>
    tpu.vector_store %arg6[%c0_11, %c0_12], %12 {strides = array<i32>} : memref<2x10xf32, #tpu.memory_space<vmem>>, vector<2x10xf32>,
    return
  }
  func.func @transform_0(%arg0: i32) -> (i32, i32) {
    %c0_i32 = arith.constant 0 : i32
    %c0_i32_0 = arith.constant 0 : i32
    return %arg0, %c0_i32 : i32, i32
  }
  func.func @transform_1(%arg0: i32) -> (i32, i32) {
    %c0_i32 = arith.constant 0 : i32
    %c0_i32_0 = arith.constant 0 : i32
    %c0_i32_1 = arith.constant 0 : i32
    return %c0_i32, %c0_i32_0 : i32, i32
  }
  func.func @transform_2(%arg0: i32) -> (i32, i32) {
    %c0_i32 = arith.constant 0 : i32
    %c0_i32_0 = arith.constant 0 : i32
    %c0_i32_1 = arith.constant 0 : i32
    return %c0_i32, %c0_i32_0 : i32, i32
  }
  func.func @transform_3(%arg0: i32) -> (i32, i32) {
    %c0_i32 = arith.constant 0 : i32
    %c0_i32_0 = arith.constant 0 : i32
    %c0_i32_1 = arith.constant 0 : i32
    return %c0_i32, %c0_i32_0 : i32, i32
  }
  func.func @transform_4(%arg0: i32) -> (i32, i32) {
    %c0_i32 = arith.constant 0 : i32
    %c0_i32_0 = arith.constant 0 : i32
    %c0_i32_1 = arith.constant 0 : i32
    return %c0_i32, %c0_i32_0 : i32, i32
  }
  func.func @transform_5(%arg0: i32) -> (i32, i32) {
    %c0_i32 = arith.constant 0 : i32
    %c0_i32_0 = arith.constant 0 : i32
    return %arg0, %c0_i32 : i32, i32
  }
}

</mosaic_0001>

<bundles_post_ra>
// kernel: network_forward.3
= control target key start
LH: loop header
LB: loop body
LE: loop exit
PB: predicated region body
PF: predicated region fallthrough
CT: control target
= control target key end

     0   :  { %s1360_s12 = smov 0   ;;  %s1752_s0 = inlined_call_operand.vmem [shape: f32[2,800,27], index: 0, kind: input, shape index: {}]   ;;  %s1753_s1 = inlined_call_operand.vmem [shape: f32[27,32], index: 1, kind: input, shape index: {}]   ;;  %s1754_s2 = inlined_call_operand.vmem [shape: f32[1,32], index: 2, kind: input, shape index: {}]   ;;  %s1755_s3 = inlined_call_operand.vmem [shape: f32[2,200,32], index: 3, kind: output, shape index: {}]  }
   0x1 LB: > { %s1208_s13 = sadd.s32 4294967295, %s1338_s12   ;;  %p1212_p0 = scmp.ge.s32.totalorder %s1338_s12, 1  ;;  %s1338_s12 = sphi %s1360_s12, %s13_s12  }
   0x2   : > { %p137_p1 = scmp.lt.s32.totalorder %s1338_s12, 3 }
   0x4   : > { %p138_p2 = pnand %p1212_p0, %p137_p1 }
   0x5   : > { %p161_p3 = scmp.lt.s32.totalorder (!%p138_p2), %s1208_s13, 1 }
   0x6   : > { %141 = sbr.rel (%p138_p2) target bundleno = 352 (0x160), region = 32 }
   0xb   : > { %v174_v0 = vld [vmem:[%s1753_s1 + $0x18] sm:$0x7]  ;;  %vm280_vm0 = vcmask 1042432   ;;  %v173_v1 = vld [vmem:[%s1753_s1 + $0x10] sm:$0xff]  ;;  %v172_v2 = vld [vmem:[%s1753_s1 + $0x8] sm:$0xff]  ;;  %s1757_s13 = smov (!%p161_p3, %s1208_s13), 1 }
   0xc   : > { %1267 = vmatpush.msk.msra.mxu2 %vm280_vm0, %v174_v0  ;;  %1293 = vmatpush.msk.msra.mxu3 %vm280_vm0, %v174_v0  ;;  %v171_v3 = vld [vmem:[%s1753_s1] sm:$0xff]  ;;  %s1321_s22 = smul.u32 800, %s1757_s13  ;;  %vm204_vm1 = vcmask 220160   ;;  %vm1127_vm2 = vcmask 261120  }
   0xd   : > { %1215 = vmatpush.msk.msra.mxu0 %vm280_vm0, %v174_v0  ;;  %1241 = vmatpush.msk.msra.mxu1 %vm280_vm0, %v174_v0  ;;  %s1322_s28 = smul.u32 200, %s1757_s13 }
   0xe   : > { %756 = vmatpush.msra.mxu2 %v173_v1  ;;  %998 = vmatpush.msra.mxu3 %v173_v1  ;;  %s1386_s25 = scalar_lea.vmem %s1752_s0, %s1321_s22 }
   0xf   : > { %297 = vmatpush.msra.mxu0 %v173_v1  ;;  %514 = vmatpush.msra.mxu1 %v173_v1  ;;  %v643_v4 = vld [vmem:[%s1386_s25 + $0x190] sm:$0xff]  ;;  %v885_v5 = vld [vmem:[%s1386_s25 + $0x258] sm:$0xff]  ;;  %v176_v6 = vld [vmem:[%s1386_s25] sm:$0xff]  ;;  %s1545_s4 = scalar_lea.vmem %s1755_s3, %s1322_s28 }
  0x10   : > { %757 = vmatpush.msra.mxu2 %v172_v2  ;;  %999 = vmatpush.msra.mxu3 %v172_v2  ;;  %v401_v7 = vld [vmem:[%s1386_s25 + $0xc8] sm:$0xff]  ;;  %v644_v8 = vld [vmem:[%s1386_s25 + $0x198] sm:$0xff]  ;;  %v886_v9 = vld [vmem:[%s1386_s25 + $0x260] sm:$0xff] }
  0x11   : > { %298 = vmatpush.msra.mxu0 %v172_v2  ;;  %515 = vmatpush.msra.mxu1 %v172_v2  ;;  %v177_v10 = vld [vmem:[%s1386_s25 + $0x8] sm:$0xff]  ;;  %v402_v11 = vld [vmem:[%s1386_s25 + $0xd0] sm:$0xff]  ;;  %v645_v12 = vld [vmem:[%s1386_s25 + $0x1a0] sm:$0xff] }
  0x12   : > { %758 = vmatpush.msra.mxu2 %v171_v3  ;;  %1000 = vmatpush.msra.mxu3 %v171_v3  ;;  %v887_v13 = vld [vmem:[%s1386_s25 + $0x268] sm:$0xff]  ;;  %v178_v14 = vld [vmem:[%s1386_s25 + $0x10] sm:$0xff]  ;;  %v403_v15 = vld [vmem:[%s1386_s25 + $0xd8] sm:$0xff] }
  0x13   : > { %1268 = vmatmul.msk.f32.vlgmr.msra.gmra.mxu2 %vm204_vm1, %v643_v4  ;;  %1294 = vmatmul.msk.f32.vlgmr.msra.gmra.mxu3 %vm204_vm1, %v885_v5  ;;  %v646_v16 = vld [vmem:[%s1386_s25 + $0x1a8] sm:$0xff]  ;;  %v888_v17 = vld [vmem:[%s1386_s25 + $0x270] sm:$0xff]  ;;  %v179_v18 = vld [vmem:[%s1386_s25 + $0x18] sm:$0xff] }
  0x14   : > { %299 = vmatpush.msra.mxu0 %v171_v3  ;;  %516 = vmatpush.msra.mxu1 %v171_v3  ;;  %v404_v19 = vld [vmem:[%s1386_s25 + $0xe0] sm:$0xff]  ;;  %v647_v20 = vld [vmem:[%s1386_s25 + $0x1b0] sm:$0xff]  ;;  %v889_v21 = vld [vmem:[%s1386_s25 + $0x278] sm:$0xff] }
  0x15   : > { %1216 = vmatmul.msk.f32.vlgmr.msra.gmra.mxu0 %vm204_vm1, %v176_v6  ;;  %1242 = vmatmul.msk.f32.vlgmr.msra.gmra.mxu1 %vm204_vm1, %v401_v7  ;;  %v180_v22 = vld [vmem:[%s1386_s25 + $0x20] sm:$0xff]  ;;  %v405_v23 = vld [vmem:[%s1386_s25 + $0xe8] sm:$0xff]  ;;  %v648_v24 = vld [vmem:[%s1386_s25 + $0x1b8] sm:$0xff] }
  0x16   : > { %v890_v25 = vld [vmem:[%s1386_s25 + $0x280] sm:$0xff]  ;;  %v181_v26 = vld [vmem:[%s1386_s25 + $0x28] sm:$0xff]  ;;  %v406_v27 = vld [vmem:[%s1386_s25 + $0xf0] sm:$0xff] }
  0x17   : > { %v649_v28 = vld [vmem:[%s1386_s25 + $0x1c0] sm:$0xff]  ;;  %v891_v29 = vld [vmem:[%s1386_s25 + $0x288] sm:$0xff]  ;;  %v182_v30 = vld [vmem:[%s1386_s25 + $0x30] sm:$0xff] }
  0x18   : > { %v407_v31 = vld [vmem:[%s1386_s25 + $0xf8] sm:$0xff]  ;;  %v650_v32 = vld [vmem:[%s1386_s25 + $0x1c8] sm:$0xff]  ;;  %v892_v33 = vld [vmem:[%s1386_s25 + $0x290] sm:$0xff] }
  0x19   : > { %v183_v34 = vld [vmem:[%s1386_s25 + $0x38] sm:$0xff]  ;;  %v408_v35 = vld [vmem:[%s1386_s25 + $0x100] sm:$0xff]  ;;  %v651_v36 = vld [vmem:[%s1386_s25 + $0x1d0] sm:$0xff] }
  0x1a   : > { %v893_v37 = vld [vmem:[%s1386_s25 + $0x298] sm:$0xff]  ;;  %v184_v38 = vld [vmem:[%s1386_s25 + $0x40] sm:$0xff]  ;;  %v409_v39 = vld [vmem:[%s1386_s25 + $0x108] sm:$0xff] }
  0x1b   : > { %1269 = vmatmul.msk.f32.gmra.mxu2 %vm204_vm1, %v644_v8  ;;  %1295 = vmatmul.msk.f32.gmra.mxu3 %vm204_vm1, %v886_v9  ;;  %v652_v40 = vld [vmem:[%s1386_s25 + $0x1d8] sm:$0xff]  ;;  %v894_v41 = vld [vmem:[%s1386_s25 + $0x2a0] sm:$0xff]  ;;  %v185_v42 = vld [vmem:[%s1386_s25 + $0x48] sm:$0xff] }
  0x1c   : > { %v410_v43 = vld [vmem:[%s1386_s25 + $0x110] sm:$0xff]  ;;  %v653_v44 = vld [vmem:[%s1386_s25 + $0x1e0] sm:$0xff]  ;;  %v895_v45 = vld [vmem:[%s1386_s25 + $0x2a8] sm:$0xff] }
  0x1d   : > { %1217 = vmatmul.msk.f32.gmra.mxu0 %vm204_vm1, %v177_v10  ;;  %1243 = vmatmul.msk.f32.gmra.mxu1 %vm204_vm1, %v402_v11  ;;  %v186_v46 = vld [vmem:[%s1386_s25 + $0x50] sm:$0xff]  ;;  %v411_v47 = vld [vmem:[%s1386_s25 + $0x118] sm:$0xff]  ;;  %v654_v48 = vld [vmem:[%s1386_s25 + $0x1e8] sm:$0xff] }
  0x1e   : > { %v896_v49 = vld [vmem:[%s1386_s25 + $0x2b0] sm:$0xff]  ;;  %v187_v50 = vld [vmem:[%s1386_s25 + $0x58] sm:$0xff]  ;;  %v412_v51 = vld [vmem:[%s1386_s25 + $0x120] sm:$0xff] }
  0x1f   : > { %v655_v52 = vld [vmem:[%s1386_s25 + $0x1f0] sm:$0xff]  ;;  %v897_v53 = vld [vmem:[%s1386_s25 + $0x2b8] sm:$0xff]  ;;  %v188_v54 = vld [vmem:[%s1386_s25 + $0x60] sm:$0xff] }
  0x20   : > { %v413_v55 = vld [vmem:[%s1386_s25 + $0x128] sm:$0xff]  ;;  %v656_v56 = vld [vmem:[%s1386_s25 + $0x1f8] sm:$0xff]  ;;  %v898_v57 = vld [vmem:[%s1386_s25 + $0x2c0] sm:$0xff] }
  0x21   : > { %v189_v58 = vld [vmem:[%s1386_s25 + $0x68] sm:$0xff]  ;;  %v414_v59 = vld [vmem:[%s1386_s25 + $0x130] sm:$0xff]  ;;  %v657_v60 = vld [vmem:[%s1386_s25 + $0x200] sm:$0xff] }
  0x22   : > { %v899_v61 = vld [vmem:[%s1386_s25 + $0x2c8] sm:$0xff]  ;;  %v190_v62 = vld [vmem:[%s1386_s25 + $0x70] sm:$0xff]  ;;  %v415_v63 = vld [vmem:[%s1386_s25 + $0x138] sm:$0xff] }
  0x23   : > { %1270 = vmatmul.msk.f32.gmra.mxu2 %vm204_vm1, %v645_v12  ;;  %1296 = vmatmul.msk.f32.gmra.mxu3 %vm204_vm1, %v887_v13  ;;  %v658_v0 = vld [vmem:[%s1386_s25 + $0x208] sm:$0xff]  ;;  %v900_v1 = vld [vmem:[%s1386_s25 + $0x2d0] sm:$0xff]  ;;  %v191_v2 = vld [vmem:[%s1386_s25 + $0x78] sm:$0xff] }
  0x24   : > { %v416_v3 = vld [vmem:[%s1386_s25 + $0x140] sm:$0xff]  ;;  %v659_v5 = vld [vmem:[%s1386_s25 + $0x210] sm:$0xff]  ;;  %v901_v6 = vld [vmem:[%s1386_s25 + $0x2d8] sm:$0xff] }
  0x25   : > { %1218 = vmatmul.msk.f32.gmra.mxu0 %vm204_vm1, %v178_v14  ;;  %1244 = vmatmul.msk.f32.gmra.mxu1 %vm204_vm1, %v403_v15  ;;  %v1519_v4 = vld [vmem:[%s1754_s2] ss:$0 sm:$0xff]  ;;  %v417_v10 = vld [vmem:[%s1386_s25 + $0x148] sm:$0xff] }
  0x26   : > { %v192_v9 = vld [vmem:[%s1386_s25 + $0x80] sm:$0xff] }
  0x2b   : > { %1271 = vmatmul.msk.f32.gmra.mxu2 %vm204_vm1, %v646_v16  ;;  %1297 = vmatmul.msk.f32.gmra.mxu3 %vm204_vm1, %v888_v17 }
  0x2d   : > { %1219 = vmatmul.msk.f32.gmra.mxu0 %vm204_vm1, %v179_v18  ;;  %1245 = vmatmul.msk.f32.gmra.mxu1 %vm204_vm1, %v404_v19 }
  0x33   : > { %1272 = vmatmul.msk.f32.gmra.mxu2 %vm204_vm1, %v647_v20  ;;  %1298 = vmatmul.msk.f32.gmra.mxu3 %vm204_vm1, %v889_v21  ;;  %v660_v20 = vld [vmem:[%s1386_s25 + $0x218] sm:$0xff]  ;;  %v902_v21 = vld [vmem:[%s1386_s25 + $0x2e0] sm:$0xff] }
  0x35   : > { %1220 = vmatmul.msk.f32.gmra.mxu0 %vm204_vm1, %v180_v22  ;;  %1246 = vmatmul.msk.f32.gmra.mxu1 %vm204_vm1, %v405_v23 }
  0x3b   : > { %1273 = vmatmul.msk.f32.gmra.mxu2 %vm204_vm1, %v648_v24  ;;  %1299 = vmatmul.msk.f32.gmra.mxu3 %vm204_vm1, %v890_v25 }
  0x3d   : > { %1221 = vmatmul.msk.f32.gmra.mxu0 %vm204_vm1, %v181_v26  ;;  %1247 = vmatmul.msk.f32.gmra.mxu1 %vm204_vm1, %v406_v27  ;;  %v193_v26 = vld [vmem:[%s1386_s25 + $0x88] sm:$0xff]  ;;  %v418_v27 = vld [vmem:[%s1386_s25 + $0x150] sm:$0xff] }
  0x43   : > { %1274 = vmatmul.msk.f32.gmra.mxu2 %vm204_vm1, %v649_v28  ;;  %1300 = vmatmul.msk.f32.gmra.mxu3 %vm204_vm1, %v891_v29 }
  0x45   : > { %1222 = vmatmul.msk.f32.gmra.mxu0 %vm204_vm1, %v182_v30  ;;  %1248 = vmatmul.msk.f32.gmra.mxu1 %vm204_vm1, %v407_v31 }
  0x4b   : > { %1275 = vmatmul.msk.f32.gmra.mxu2 %vm204_vm1, %v650_v32  ;;  %1301 = vmatmul.msk.f32.gmra.mxu3 %vm204_vm1, %v892_v33 }
  0x4d   : > { %1223 = vmatmul.msk.f32.gmra.mxu0 %vm204_vm1, %v183_v34  ;;  %1249 = vmatmul.msk.f32.gmra.mxu1 %vm204_vm1, %v408_v35 }
  0x53   : > { %1276 = vmatmul.msk.f32.gmra.mxu2 %vm204_vm1, %v651_v36  ;;  %1302 = vmatmul.msk.f32.gmra.mxu3 %vm204_vm1, %v893_v37 }
  0x55   : > { %1224 = vmatmul.msk.f32.gmra.mxu0 %vm204_vm1, %v184_v38  ;;  %1250 = vmatmul.msk.f32.gmra.mxu1 %vm204_vm1, %v409_v39  ;;  %v661_v39 = vld [vmem:[%s1386_s25 + $0x220] sm:$0xff] }
  0x5b   : > { %1277 = vmatmul.msk.f32.gmra.mxu2 %vm204_vm1, %v652_v40  ;;  %1303 = vmatmul.msk.f32.gmra.mxu3 %vm204_vm1, %v894_v41  ;;  %v903_v40 = vld [vmem:[%s1386_s25 + $0x2e8] sm:$0xff] }
  0x5d   : > { %1225 = vmatmul.msk.f32.gmra.mxu0 %vm204_vm1, %v185_v42  ;;  %1251 = vmatmul.msk.f32.gmra.mxu1 %vm204_vm1, %v410_v43 }
  0x63   : > { %1278 = vmatmul.msk.f32.gmra.mxu2 %vm204_vm1, %v653_v44  ;;  %1304 = vmatmul.msk.f32.gmra.mxu3 %vm204_vm1, %v895_v45  ;;  %v194_v45 = vld [vmem:[%s1386_s25 + $0x90] sm:$0xff] }
  0x65   : > { %1226 = vmatmul.msk.f32.gmra.mxu0 %vm204_vm1, %v186_v46  ;;  %1252 = vmatmul.msk.f32.gmra.mxu1 %vm204_vm1, %v411_v47  ;;  %v419_v46 = vld [vmem:[%s1386_s25 + $0x158] sm:$0xff] }
  0x6b   : > { %1279 = vmatmul.msk.f32.gmra.mxu2 %vm204_vm1, %v654_v48  ;;  %1305 = vmatmul.msk.f32.gmra.mxu3 %vm204_vm1, %v896_v49 }
  0x6d   : > { %1227 = vmatmul.msk.f32.gmra.mxu0 %vm204_vm1, %v187_v50  ;;  %1253 = vmatmul.msk.f32.gmra.mxu1 %vm204_vm1, %v412_v51 }
  0x73   : > { %1280 = vmatmul.msk.f32.gmra.mxu2 %vm204_vm1, %v655_v52  ;;  %1306 = vmatmul.msk.f32.gmra.mxu3 %vm204_vm1, %v897_v53 }
  0x75   : > { %1228 = vmatmul.msk.f32.gmra.mxu0 %vm204_vm1, %v188_v54  ;;  %1254 = vmatmul.msk.f32.gmra.mxu1 %vm204_vm1, %v413_v55 }
  0x7b   : > { %1281 = vmatmul.msk.f32.gmra.mxu2 %vm204_vm1, %v656_v56  ;;  %1307 = vmatmul.msk.f32.gmra.mxu3 %vm204_vm1, %v898_v57 }
  0x7d   : > { %1229 = vmatmul.msk.f32.gmra.mxu0 %vm204_vm1, %v189_v58  ;;  %1255 = vmatmul.msk.f32.gmra.mxu1 %vm204_vm1, %v414_v59  ;;  %v662_v58 = vld [vmem:[%s1386_s25 + $0x228] sm:$0xff]  ;;  %v904_v59 = vld [vmem:[%s1386_s25 + $0x2f0] sm:$0xff] }
  0x83   : > { %1282 = vmatmul.msk.f32.gmra.mxu2 %vm204_vm1, %v657_v60  ;;  %1308 = vmatmul.msk.f32.gmra.mxu3 %vm204_vm1, %v899_v61 }
  0x85   : > { %1230 = vmatmul.msk.f32.gmra.mxu0 %vm204_vm1, %v190_v62  ;;  %1256 = vmatmul.msk.f32.gmra.mxu1 %vm204_vm1, %v415_v63 }
  0x8b   : > { %1283 = vmatmul.msk.f32.gmra.mxu2 %vm204_vm1, %v658_v0  ;;  %1309 = vmatmul.msk.f32.gmra.mxu3 %vm204_vm1, %v900_v1  ;;  %v195_v0 = vld [vmem:[%s1386_s25 + $0x98] sm:$0xff]  ;;  %v420_v1 = vld [vmem:[%s1386_s25 + $0x160] sm:$0xff] }
  0x8d   : > { %1231 = vmatmul.msk.f32.gmra.mxu0 %vm204_vm1, %v191_v2  ;;  %1257 = vmatmul.msk.f32.gmra.mxu1 %vm204_vm1, %v416_v3 }
  0x92   : > { %v301_v7 = vpop.f32.mrf.mxu0  ;;  %v518_v8 = vpop.f32.mrf.mxu1 }
  0x93   : > { %1284 = vmatmul.msk.f32.gmra.mxu2 %vm204_vm1, %v659_v5  ;;  %v302_v11 = vadd.f32 %v1519_v4, %v301_v7  ;;  %v519_v12 = vadd.f32 %v1519_v4, %v518_v8  ;;  %1310 = vmatmul.msk.f32.gmra.mxu3 %vm204_vm1, %v901_v6 }
  0x95   : > { %v376_v13 = vmax.f32 %v302_v11, 0.0  ;;  %v593_v14 = vmax.f32 %v519_v12, 0.0  ;;  %1232 = vmatmul.msk.f32.gmra.mxu0 %vm204_vm1, %v192_v9  ;;  %1258 = vmatmul.msk.f32.gmra.mxu1 %vm204_vm1, %v417_v10 }
  0x96   : > { %v760_v15 = vpop.f32.mrf.mxu2  ;;  %v1002_v16 = vpop.f32.mrf.mxu3 }
  0x97   : > { %v618_v17 = vmax.f32 %v376_v13, %v593_v14  ;;  %v761_v18 = vadd.f32 %v1519_v4, %v760_v15  ;;  %v1003_v19 = vadd.f32 %v1519_v4, %v1002_v16  ;;  %v663_v14 = vld [vmem:[%s1386_s25 + $0x230] sm:$0xff]  ;;  %v905_v15 = vld [vmem:[%s1386_s25 + $0x2f8] sm:$0xff] }
  0x99   : > { %v835_v22 = vmax.f32 %v761_v18, 0.0  ;;  %v1077_v23 = vmax.f32 %v1003_v19, 0.0 }
  0x9a   : > { %v304_v24 = vpop.f32.mrf.mxu0  ;;  %v521_v25 = vpop.f32.mrf.mxu1 }
  0x9b   : > { %v860_v28 = vmax.f32 %v618_v17, %v835_v22  ;;  %1285 = vmatmul.msk.f32.gmra.mxu2 %vm204_vm1, %v660_v20  ;;  %v305_v29 = vadd.f32 %v1519_v4, %v304_v24  ;;  %v522_v30 = vadd.f32 %v1519_v4, %v521_v25  ;;  %1311 = vmatmul.msk.f32.gmra.mxu3 %vm204_vm1, %v902_v21  ;;  %v196_v20 = vld [vmem:[%s1386_s25 + $0xa0] sm:$0xff]  ;;  %v421_v21 = vld [vmem:[%s1386_s25 + $0x168] sm:$0xff] }
  0x9d   : > { %v1102_v31 = vmax.f32 %v860_v28, %v1077_v23  ;;  %v377_v32 = vmax.f32 %v305_v29, 0.0  ;;  %v594_v33 = vmax.f32 %v522_v30, 0.0  ;;  %1233 = vmatmul.msk.f32.gmra.mxu0 %vm204_vm1, %v193_v26  ;;  %1259 = vmatmul.msk.f32.gmra.mxu1 %vm204_vm1, %v418_v27 }
  0x9e   : > { %v763_v34 = vpop.f32.mrf.mxu2  ;;  %v1005_v35 = vpop.f32.mrf.mxu3 }
  0x9f   : > { %1128 = vst.msk [vmem:[%s1545_s4] sm:$0xff] %vm1127_vm2, %v1102_v31  ;;  %v619_v36 = vmax.f32 %v377_v32, %v594_v33  ;;  %v764_v37 = vadd.f32 %v1519_v4, %v763_v34  ;;  %v1006_v38 = vadd.f32 %v1519_v4, %v1005_v35  ;;  %v664_v33 = vld [vmem:[%s1386_s25 + $0x238] sm:$0xff]  ;;  %v906_v34 = vld [vmem:[%s1386_s25 + $0x300] sm:$0xff] }
  0xa1   : > { %v836_v41 = vmax.f32 %v764_v37, 0.0  ;;  %v1078_v42 = vmax.f32 %v1006_v38, 0.0 }
  0xa2   : > { %v307_v43 = vpop.f32.mrf.mxu0  ;;  %v524_v44 = vpop.f32.mrf.mxu1 }
  0xa3   : > { %v861_v47 = vmax.f32 %v619_v36, %v836_v41  ;;  %1286 = vmatmul.msk.f32.gmra.mxu2 %vm204_vm1, %v661_v39  ;;  %v308_v48 = vadd.f32 %v1519_v4, %v307_v43  ;;  %v525_v49 = vadd.f32 %v1519_v4, %v524_v44  ;;  %1312 = vmatmul.msk.f32.gmra.mxu3 %vm204_vm1, %v903_v40  ;;  %v197_v39 = vld [vmem:[%s1386_s25 + $0xa8] sm:$0xff]  ;;  %v422_v40 = vld [vmem:[%s1386_s25 + $0x170] sm:$0xff] }
  0xa5   : > { %v1103_v50 = vmax.f32 %v861_v47, %v1078_v42  ;;  %v378_v51 = vmax.f32 %v308_v48, 0.0  ;;  %v595_v52 = vmax.f32 %v525_v49, 0.0  ;;  %1234 = vmatmul.msk.f32.gmra.mxu0 %vm204_vm1, %v194_v45  ;;  %1260 = vmatmul.msk.f32.gmra.mxu1 %vm204_vm1, %v419_v46 }
  0xa6   : > { %v766_v53 = vpop.f32.mrf.mxu2  ;;  %v1008_v54 = vpop.f32.mrf.mxu3 }
  0xa7   : > { %1129 = vst.msk [vmem:[%s1545_s4 + $0x8] sm:$0xff] %vm1127_vm2, %v1103_v50  ;;  %v620_v55 = vmax.f32 %v378_v51, %v595_v52  ;;  %v767_v56 = vadd.f32 %v1519_v4, %v766_v53  ;;  %v1009_v57 = vadd.f32 %v1519_v4, %v1008_v54  ;;  %v665_v52 = vld [vmem:[%s1386_s25 + $0x240] sm:$0xff]  ;;  %v907_v53 = vld [vmem:[%s1386_s25 + $0x308] sm:$0xff] }
  0xa9   : > { %v837_v60 = vmax.f32 %v767_v56, 0.0  ;;  %v1079_v61 = vmax.f32 %v1009_v57, 0.0 }
  0xaa   : > { %v310_v62 = vpop.f32.mrf.mxu0  ;;  %v527_v63 = vpop.f32.mrf.mxu1 }
  0xab   : > { %v862_v2 = vmax.f32 %v620_v55, %v837_v60  ;;  %1287 = vmatmul.msk.f32.gmra.mxu2 %vm204_vm1, %v662_v58  ;;  %v311_v3 = vadd.f32 %v1519_v4, %v310_v62  ;;  %v528_v5 = vadd.f32 %v1519_v4, %v527_v63  ;;  %1313 = vmatmul.msk.f32.gmra.mxu3 %vm204_vm1, %v904_v59  ;;  %v198_v58 = vld [vmem:[%s1386_s25 + $0xb0] sm:$0xff]  ;;  %v423_v59 = vld [vmem:[%s1386_s25 + $0x178] sm:$0xff] }
  0xad   : > { %v1104_v6 = vmax.f32 %v862_v2, %v1079_v61  ;;  %v379_v7 = vmax.f32 %v311_v3, 0.0  ;;  %v596_v8 = vmax.f32 %v528_v5, 0.0  ;;  %1235 = vmatmul.msk.f32.gmra.mxu0 %vm204_vm1, %v195_v0  ;;  %1261 = vmatmul.msk.f32.gmra.mxu1 %vm204_vm1, %v420_v1 }
  0xae   : > { %v769_v9 = vpop.f32.mrf.mxu2  ;;  %v1011_v10 = vpop.f32.mrf.mxu3 }
  0xaf   : > { %1130 = vst.msk [vmem:[%s1545_s4 + $0x10] sm:$0xff] %vm1127_vm2, %v1104_v6  ;;  %v621_v11 = vmax.f32 %v379_v7, %v596_v8  ;;  %v770_v12 = vadd.f32 %v1519_v4, %v769_v9  ;;  %v1012_v13 = vadd.f32 %v1519_v4, %v1011_v10  ;;  %v666_v8 = vld [vmem:[%s1386_s25 + $0x248] sm:$0xff]  ;;  %v908_v9 = vld [vmem:[%s1386_s25 + $0x310] sm:$0xff] }
  0xb1   : > { %v838_v16 = vmax.f32 %v770_v12, 0.0  ;;  %v1080_v17 = vmax.f32 %v1012_v13, 0.0 }
  0xb2   : > { %v313_v18 = vpop.f32.mrf.mxu0  ;;  %v530_v19 = vpop.f32.mrf.mxu1 }
  0xb3   : > { %v863_v22 = vmax.f32 %v621_v11, %v838_v16  ;;  %1288 = vmatmul.msk.f32.gmra.mxu2 %vm204_vm1, %v663_v14  ;;  %v314_v23 = vadd.f32 %v1519_v4, %v313_v18  ;;  %v531_v24 = vadd.f32 %v1519_v4, %v530_v19  ;;  %1314 = vmatmul.msk.f32.gmra.mxu3 %vm204_vm1, %v905_v15  ;;  %v199_v14 = vld [vmem:[%s1386_s25 + $0xb8] sm:$0xff]  ;;  %v424_v15 = vld [vmem:[%s1386_s25 + $0x180] sm:$0xff] }
  0xb5   : > { %v1105_v25 = vmax.f32 %v863_v22, %v1080_v17  ;;  %v380_v26 = vmax.f32 %v314_v23, 0.0  ;;  %v597_v27 = vmax.f32 %v531_v24, 0.0  ;;  %1236 = vmatmul.msk.f32.gmra.mxu0 %vm204_vm1, %v196_v20  ;;  %1262 = vmatmul.msk.f32.gmra.mxu1 %vm204_vm1, %v421_v21 }
  0xb6   : > { %v772_v28 = vpop.f32.mrf.mxu2  ;;  %v1014_v29 = vpop.f32.mrf.mxu3 }
  0xb7   : > { %1131 = vst.msk [vmem:[%s1545_s4 + $0x18] sm:$0xff] %vm1127_vm2, %v1105_v25  ;;  %v622_v30 = vmax.f32 %v380_v26, %v597_v27  ;;  %v773_v31 = vadd.f32 %v1519_v4, %v772_v28  ;;  %v1015_v32 = vadd.f32 %v1519_v4, %v1014_v29  ;;  %v667_v27 = vld [vmem:[%s1386_s25 + $0x250] sm:$0xff]  ;;  %v909_v28 = vld [vmem:[%s1386_s25 + $0x318] sm:$0xff] }
  0xb9   : > { %v839_v35 = vmax.f32 %v773_v31, 0.0  ;;  %v1081_v36 = vmax.f32 %v1015_v32, 0.0 }
  0xba   : > { %v316_v37 = vpop.f32.mrf.mxu0  ;;  %v533_v38 = vpop.f32.mrf.mxu1 }
  0xbb   : > { %v864_v41 = vmax.f32 %v622_v30, %v839_v35  ;;  %1289 = vmatmul.msk.f32.gmra.mxu2 %vm204_vm1, %v664_v33  ;;  %v317_v42 = vadd.f32 %v1519_v4, %v316_v37  ;;  %v534_v43 = vadd.f32 %v1519_v4, %v533_v38  ;;  %1315 = vmatmul.msk.f32.gmra.mxu3 %vm204_vm1, %v906_v34  ;;  %v200_v33 = vld [vmem:[%s1386_s25 + $0xc0] sm:$0xff]  ;;  %v425_v34 = vld [vmem:[%s1386_s25 + $0x188] sm:$0xff] }
  0xbd   : > { %v1106_v44 = vmax.f32 %v864_v41, %v1081_v36  ;;  %v381_v45 = vmax.f32 %v317_v42, 0.0  ;;  %v598_v46 = vmax.f32 %v534_v43, 0.0  ;;  %1237 = vmatmul.msk.f32.gmra.mxu0 %vm204_vm1, %v197_v39  ;;  %1263 = vmatmul.msk.f32.gmra.mxu1 %vm204_vm1, %v422_v40 }
  0xbe   : > { %v775_v47 = vpop.f32.mrf.mxu2  ;;  %v1017_v48 = vpop.f32.mrf.mxu3 }
  0xbf   : > { %1132 = vst.msk [vmem:[%s1545_s4 + $0x20] sm:$0xff] %vm1127_vm2, %v1106_v44  ;;  %v623_v49 = vmax.f32 %v381_v45, %v598_v46  ;;  %v776_v50 = vadd.f32 %v1519_v4, %v775_v47  ;;  %v1018_v51 = vadd.f32 %v1519_v4, %v1017_v48 }
  0xc1   : > { %v840_v54 = vmax.f32 %v776_v50, 0.0  ;;  %v1082_v55 = vmax.f32 %v1018_v51, 0.0 }
  0xc2   : > { %v319_v56 = vpop.f32.mrf.mxu0  ;;  %v536_v57 = vpop.f32.mrf.mxu1 }
  0xc3   : > { %v865_v60 = vmax.f32 %v623_v49, %v840_v54  ;;  %1290 = vmatmul.msk.f32.gmra.mxu2 %vm204_vm1, %v665_v52  ;;  %v320_v61 = vadd.f32 %v1519_v4, %v319_v56  ;;  %v537_v62 = vadd.f32 %v1519_v4, %v536_v57  ;;  %1316 = vmatmul.msk.f32.gmra.mxu3 %vm204_vm1, %v907_v53 }
  0xc5   : > { %v1107_v63 = vmax.f32 %v865_v60, %v1082_v55  ;;  %v382_v0 = vmax.f32 %v320_v61, 0.0  ;;  %v599_v1 = vmax.f32 %v537_v62, 0.0  ;;  %1238 = vmatmul.msk.f32.gmra.mxu0 %vm204_vm1, %v198_v58  ;;  %1264 = vmatmul.msk.f32.gmra.mxu1 %vm204_vm1, %v423_v59 }
  0xc6   : > { %v778_v2 = vpop.f32.mrf.mxu2  ;;  %v1020_v3 = vpop.f32.mrf.mxu3 }
  0xc7   : > { %1133 = vst.msk [vmem:[%s1545_s4 + $0x28] sm:$0xff] %vm1127_vm2, %v1107_v63  ;;  %v624_v5 = vmax.f32 %v382_v0, %v599_v1  ;;  %v779_v6 = vadd.f32 %v1519_v4, %v778_v2  ;;  %v1021_v7 = vadd.f32 %v1519_v4, %v1020_v3 }
  0xc9   : > { %v841_v10 = vmax.f32 %v779_v6, 0.0  ;;  %v1083_v11 = vmax.f32 %v1021_v7, 0.0 }
  0xca   : > { %v322_v12 = vpop.f32.mrf.mxu0  ;;  %v539_v13 = vpop.f32.mrf.mxu1 }
  0xcb   : > { %v866_v16 = vmax.f32 %v624_v5, %v841_v10  ;;  %1291 = vmatmul.msk.f32.gmra.mxu2 %vm204_vm1, %v666_v8  ;;  %v323_v17 = vadd.f32 %v1519_v4, %v322_v12  ;;  %v540_v18 = vadd.f32 %v1519_v4, %v539_v13  ;;  %1317 = vmatmul.msk.f32.gmra.mxu3 %vm204_vm1, %v908_v9 }
  0xcd   : > { %v1108_v19 = vmax.f32 %v866_v16, %v1083_v11  ;;  %v383_v20 = vmax.f32 %v323_v17, 0.0  ;;  %v600_v21 = vmax.f32 %v540_v18, 0.0  ;;  %1239 = vmatmul.msk.f32.gmra.mxu0 %vm204_vm1, %v199_v14  ;;  %1265 = vmatmul.msk.f32.gmra.mxu1 %vm204_vm1, %v424_v15 }
  0xce   : > { %v781_v22 = vpop.f32.mrf.mxu2  ;;  %v1023_v23 = vpop.f32.mrf.mxu3 }
  0xcf   : > { %1134 = vst.msk [vmem:[%s1545_s4 + $0x30] sm:$0xff] %vm1127_vm2, %v1108_v19  ;;  %v625_v24 = vmax.f32 %v383_v20, %v600_v21  ;;  %v782_v25 = vadd.f32 %v1519_v4, %v781_v22  ;;  %v1024_v26 = vadd.f32 %v1519_v4, %v1023_v23 }
  0xd1   : > { %v842_v29 = vmax.f32 %v782_v25, 0.0  ;;  %v1084_v30 = vmax.f32 %v1024_v26, 0.0 }
  0xd2   : > { %v325_v31 = vpop.f32.mrf.mxu0  ;;  %v542_v32 = vpop.f32.mrf.mxu1 }
  0xd3   : > { %v867_v35 = vmax.f32 %v625_v24, %v842_v29  ;;  %1292 = vmatmul.msk.f32.gmra.mxu2 %vm204_vm1, %v667_v27  ;;  %v326_v36 = vadd.f32 %v1519_v4, %v325_v31  ;;  %v543_v37 = vadd.f32 %v1519_v4, %v542_v32  ;;  %1318 = vmatmul.msk.f32.gmra.mxu3 %vm204_vm1, %v909_v28 }
  0xd5   : > { %v1109_v38 = vmax.f32 %v867_v35, %v1084_v30  ;;  %v384_v39 = vmax.f32 %v326_v36, 0.0  ;;  %v601_v40 = vmax.f32 %v543_v37, 0.0  ;;  %1240 = vmatmul.msk.f32.gmra.mxu0 %vm204_vm1, %v200_v33  ;;  %1266 = vmatmul.msk.f32.gmra.mxu1 %vm204_vm1, %v425_v34 }
  0xd6   : > { %v784_v41 = vpop.f32.mrf.mxu2  ;;  %v1026_v42 = vpop.f32.mrf.mxu3 }
  0xd7   : > { %1135 = vst.msk [vmem:[%s1545_s4 + $0x38] sm:$0xff] %vm1127_vm2, %v1109_v38  ;;  %v626_v43 = vmax.f32 %v384_v39, %v601_v40  ;;  %v785_v44 = vadd.f32 %v1519_v4, %v784_v41  ;;  %v1027_v45 = vadd.f32 %v1519_v4, %v1026_v42 }
  0xd9   : > { %v843_v46 = vmax.f32 %v785_v44, 0.0  ;;  %v1085_v47 = vmax.f32 %v1027_v45, 0.0 }
  0xda   : > { %v328_v48 = vpop.f32.mrf.mxu0  ;;  %v545_v49 = vpop.f32.mrf.mxu1 }
  0xdb   : > { %v868_v50 = vmax.f32 %v626_v43, %v843_v46  ;;  %v329_v51 = vadd.f32 %v1519_v4, %v328_v48  ;;  %v546_v52 = vadd.f32 %v1519_v4, %v545_v49 }
  0xdd   : > { %v1110_v53 = vmax.f32 %v868_v50, %v1085_v47  ;;  %v385_v54 = vmax.f32 %v329_v51, 0.0  ;;  %v602_v55 = vmax.f32 %v546_v52, 0.0 }
  0xde   : > { %v787_v56 = vpop.f32.mrf.mxu2  ;;  %v1029_v57 = vpop.f32.mrf.mxu3 }
  0xdf   : > { %1136 = vst.msk [vmem:[%s1545_s4 + $0x40] sm:$0xff] %vm1127_vm2, %v1110_v53  ;;  %v627_v58 = vmax.f32 %v385_v54, %v602_v55  ;;  %v788_v59 = vadd.f32 %v1519_v4, %v787_v56  ;;  %v1030_v60 = vadd.f32 %v1519_v4, %v1029_v57 }
  0xe1   : > { %v844_v61 = vmax.f32 %v788_v59, 0.0  ;;  %v1086_v62 = vmax.f32 %v1030_v60, 0.0 }
  0xe2   : > { %v331_v63 = vpop.f32.mrf.mxu0  ;;  %v548_v0 = vpop.f32.mrf.mxu1 }
  0xe3   : > { %v869_v1 = vmax.f32 %v627_v58, %v844_v61  ;;  %v332_v2 = vadd.f32 %v1519_v4, %v331_v63  ;;  %v549_v3 = vadd.f32 %v1519_v4, %v548_v0 }
  0xe5   : > { %v1111_v5 = vmax.f32 %v869_v1, %v1086_v62  ;;  %v386_v6 = vmax.f32 %v332_v2, 0.0  ;;  %v603_v7 = vmax.f32 %v549_v3, 0.0 }
  0xe6   : > { %v790_v8 = vpop.f32.mrf.mxu2  ;;  %v1032_v9 = vpop.f32.mrf.mxu3 }
  0xe7   : > { %1137 = vst.msk [vmem:[%s1545_s4 + $0x48] sm:$0xff] %vm1127_vm2, %v1111_v5  ;;  %v628_v10 = vmax.f32 %v386_v6, %v603_v7  ;;  %v791_v11 = vadd.f32 %v1519_v4, %v790_v8  ;;  %v1033_v12 = vadd.f32 %v1519_v4, %v1032_v9 }
  0xe9   : > { %v845_v13 = vmax.f32 %v791_v11, 0.0  ;;  %v1087_v14 = vmax.f32 %v1033_v12, 0.0 }
  0xea   : > { %v334_v15 = vpop.f32.mrf.mxu0  ;;  %v551_v16 = vpop.f32.mrf.mxu1 }
  0xeb   : > { %v870_v17 = vmax.f32 %v628_v10, %v845_v13  ;;  %v335_v18 = vadd.f32 %v1519_v4, %v334_v15  ;;  %v552_v19 = vadd.f32 %v1519_v4, %v551_v16 }
  0xed   : > { %v1112_v20 = vmax.f32 %v870_v17, %v1087_v14  ;;  %v387_v21 = vmax.f32 %v335_v18, 0.0  ;;  %v604_v22 = vmax.f32 %v552_v19, 0.0 }
  0xee   : > { %v793_v23 = vpop.f32.mrf.mxu2  ;;  %v1035_v24 = vpop.f32.mrf.mxu3 }
  0xef   : > { %1138 = vst.msk [vmem:[%s1545_s4 + $0x50] sm:$0xff] %vm1127_vm2, %v1112_v20  ;;  %v629_v25 = vmax.f32 %v387_v21, %v604_v22  ;;  %v794_v26 = vadd.f32 %v1519_v4, %v793_v23  ;;  %v1036_v27 = vadd.f32 %v1519_v4, %v1035_v24 }
  0xf1   : > { %v846_v28 = vmax.f32 %v794_v26, 0.0  ;;  %v1088_v29 = vmax.f32 %v1036_v27, 0.0 }
  0xf2   : > { %v337_v30 = vpop.f32.mrf.mxu0  ;;  %v554_v31 = vpop.f32.mrf.mxu1 }
  0xf3   : > { %v871_v32 = vmax.f32 %v629_v25, %v846_v28  ;;  %v338_v33 = vadd.f32 %v1519_v4, %v337_v30  ;;  %v555_v34 = vadd.f32 %v1519_v4, %v554_v31 }
  0xf5   : > { %v1113_v35 = vmax.f32 %v871_v32, %v1088_v29  ;;  %v388_v36 = vmax.f32 %v338_v33, 0.0  ;;  %v605_v37 = vmax.f32 %v555_v34, 0.0 }
  0xf6   : > { %v796_v38 = vpop.f32.mrf.mxu2  ;;  %v1038_v39 = vpop.f32.mrf.mxu3 }
  0xf7   : > { %1139 = vst.msk [vmem:[%s1545_s4 + $0x58] sm:$0xff] %vm1127_vm2, %v1113_v35  ;;  %v630_v40 = vmax.f32 %v388_v36, %v605_v37  ;;  %v797_v41 = vadd.f32 %v1519_v4, %v796_v38  ;;  %v1039_v42 = vadd.f32 %v1519_v4, %v1038_v39 }
  0xf9   : > { %v847_v43 = vmax.f32 %v797_v41, 0.0  ;;  %v1089_v44 = vmax.f32 %v1039_v42, 0.0 }
  0xfa   : > { %v340_v45 = vpop.f32.mrf.mxu0  ;;  %v557_v46 = vpop.f32.mrf.mxu1 }
  0xfb   : > { %v872_v47 = vmax.f32 %v630_v40, %v847_v43  ;;  %v341_v48 = vadd.f32 %v1519_v4, %v340_v45  ;;  %v558_v49 = vadd.f32 %v1519_v4, %v557_v46 }
  0xfd   : > { %v1114_v50 = vmax.f32 %v872_v47, %v1089_v44  ;;  %v389_v51 = vmax.f32 %v341_v48, 0.0  ;;  %v606_v52 = vmax.f32 %v558_v49, 0.0 }
  0xfe   : > { %v799_v53 = vpop.f32.mrf.mxu2  ;;  %v1041_v54 = vpop.f32.mrf.mxu3 }
  0xff   : > { %1140 = vst.msk [vmem:[%s1545_s4 + $0x60] sm:$0xff] %vm1127_vm2, %v1114_v50  ;;  %v631_v55 = vmax.f32 %v389_v51, %v606_v52  ;;  %v800_v56 = vadd.f32 %v1519_v4, %v799_v53  ;;  %v1042_v57 = vadd.f32 %v1519_v4, %v1041_v54 }
 0x101   : > { %v848_v58 = vmax.f32 %v800_v56, 0.0  ;;  %v1090_v59 = vmax.f32 %v1042_v57, 0.0 }
 0x102   : > { %v343_v60 = vpop.f32.mrf.mxu0  ;;  %v560_v61 = vpop.f32.mrf.mxu1 }
 0x103   : > { %v873_v62 = vmax.f32 %v631_v55, %v848_v58  ;;  %v344_v63 = vadd.f32 %v1519_v4, %v343_v60  ;;  %v561_v0 = vadd.f32 %v1519_v4, %v560_v61 }
 0x105   : > { %v1115_v1 = vmax.f32 %v873_v62, %v1090_v59  ;;  %v390_v2 = vmax.f32 %v344_v63, 0.0  ;;  %v607_v3 = vmax.f32 %v561_v0, 0.0 }
 0x106   : > { %v802_v5 = vpop.f32.mrf.mxu2  ;;  %v1044_v6 = vpop.f32.mrf.mxu3 }
 0x107   : > { %1141 = vst.msk [vmem:[%s1545_s4 + $0x68] sm:$0xff] %vm1127_vm2, %v1115_v1  ;;  %v632_v7 = vmax.f32 %v390_v2, %v607_v3  ;;  %v803_v8 = vadd.f32 %v1519_v4, %v802_v5  ;;  %v1045_v9 = vadd.f32 %v1519_v4, %v1044_v6 }
 0x109   : > { %v849_v10 = vmax.f32 %v803_v8, 0.0  ;;  %v1091_v11 = vmax.f32 %v1045_v9, 0.0 }
 0x10a   : > { %v346_v12 = vpop.f32.mrf.mxu0  ;;  %v563_v13 = vpop.f32.mrf.mxu1 }
 0x10b   : > { %v874_v14 = vmax.f32 %v632_v7, %v849_v10  ;;  %v347_v15 = vadd.f32 %v1519_v4, %v346_v12  ;;  %v564_v16 = vadd.f32 %v1519_v4, %v563_v13 }
 0x10d   : > { %v1116_v17 = vmax.f32 %v874_v14, %v1091_v11  ;;  %v391_v18 = vmax.f32 %v347_v15, 0.0  ;;  %v608_v19 = vmax.f32 %v564_v16, 0.0 }
 0x10e   : > { %v805_v20 = vpop.f32.mrf.mxu2  ;;  %v1047_v21 = vpop.f32.mrf.mxu3 }
 0x10f   : > { %1142 = vst.msk [vmem:[%s1545_s4 + $0x70] sm:$0xff] %vm1127_vm2, %v1116_v17  ;;  %v633_v22 = vmax.f32 %v391_v18, %v608_v19  ;;  %v806_v23 = vadd.f32 %v1519_v4, %v805_v20  ;;  %v1048_v24 = vadd.f32 %v1519_v4, %v1047_v21 }
 0x111   : > { %v850_v25 = vmax.f32 %v806_v23, 0.0  ;;  %v1092_v26 = vmax.f32 %v1048_v24, 0.0 }
 0x112   : > { %v349_v27 = vpop.f32.mrf.mxu0  ;;  %v566_v28 = vpop.f32.mrf.mxu1 }
 0x113   : > { %v875_v29 = vmax.f32 %v633_v22, %v850_v25  ;;  %v350_v30 = vadd.f32 %v1519_v4, %v349_v27  ;;  %v567_v31 = vadd.f32 %v1519_v4, %v566_v28 }
 0x115   : > { %v1117_v32 = vmax.f32 %v875_v29, %v1092_v26  ;;  %v392_v33 = vmax.f32 %v350_v30, 0.0  ;;  %v609_v34 = vmax.f32 %v567_v31, 0.0 }
 0x116   : > { %v808_v35 = vpop.f32.mrf.mxu2  ;;  %v1050_v36 = vpop.f32.mrf.mxu3 }
 0x117   : > { %1143 = vst.msk [vmem:[%s1545_s4 + $0x78] sm:$0xff] %vm1127_vm2, %v1117_v32  ;;  %v634_v37 = vmax.f32 %v392_v33, %v609_v34  ;;  %v809_v38 = vadd.f32 %v1519_v4, %v808_v35  ;;  %v1051_v39 = vadd.f32 %v1519_v4, %v1050_v36 }
 0x119   : > { %v851_v40 = vmax.f32 %v809_v38, 0.0  ;;  %v1093_v41 = vmax.f32 %v1051_v39, 0.0 }
 0x11a   : > { %v352_v42 = vpop.f32.mrf.mxu0  ;;  %v569_v43 = vpop.f32.mrf.mxu1 }
 0x11b   : > { %v876_v44 = vmax.f32 %v634_v37, %v851_v40  ;;  %v353_v45 = vadd.f32 %v1519_v4, %v352_v42  ;;  %v570_v46 = vadd.f32 %v1519_v4, %v569_v43 }
 0x11d   : > { %v1118_v47 = vmax.f32 %v876_v44, %v1093_v41  ;;  %v393_v48 = vmax.f32 %v353_v45, 0.0  ;;  %v610_v49 = vmax.f32 %v570_v46, 0.0 }
 0x11e   : > { %v811_v50 = vpop.f32.mrf.mxu2  ;;  %v1053_v51 = vpop.f32.mrf.mxu3 }
 0x11f   : > { %1144 = vst.msk [vmem:[%s1545_s4 + $0x80] sm:$0xff] %vm1127_vm2, %v1118_v47  ;;  %v635_v52 = vmax.f32 %v393_v48, %v610_v49  ;;  %v812_v53 = vadd.f32 %v1519_v4, %v811_v50  ;;  %v1054_v54 = vadd.f32 %v1519_v4, %v1053_v51 }
 0x121   : > { %v852_v55 = vmax.f32 %v812_v53, 0.0  ;;  %v1094_v56 = vmax.f32 %v1054_v54, 0.0 }
 0x122   : > { %v355_v57 = vpop.f32.mrf.mxu0  ;;  %v572_v58 = vpop.f32.mrf.mxu1 }
 0x123   : > { %v877_v59 = vmax.f32 %v635_v52, %v852_v55  ;;  %v356_v60 = vadd.f32 %v1519_v4, %v355_v57  ;;  %v573_v61 = vadd.f32 %v1519_v4, %v572_v58 }
 0x125   : > { %v1119_v62 = vmax.f32 %v877_v59, %v1094_v56  ;;  %v394_v63 = vmax.f32 %v356_v60, 0.0  ;;  %v611_v0 = vmax.f32 %v573_v61, 0.0 }
 0x126   : > { %v814_v1 = vpop.f32.mrf.mxu2  ;;  %v1056_v2 = vpop.f32.mrf.mxu3 }
 0x127   : > { %1145 = vst.msk [vmem:[%s1545_s4 + $0x88] sm:$0xff] %vm1127_vm2, %v1119_v62  ;;  %v636_v3 = vmax.f32 %v394_v63, %v611_v0  ;;  %v815_v5 = vadd.f32 %v1519_v4, %v814_v1  ;;  %v1057_v6 = vadd.f32 %v1519_v4, %v1056_v2 }
 0x129   : > { %v853_v7 = vmax.f32 %v815_v5, 0.0  ;;  %v1095_v8 = vmax.f32 %v1057_v6, 0.0 }
 0x12a   : > { %v358_v9 = vpop.f32.mrf.mxu0  ;;  %v575_v10 = vpop.f32.mrf.mxu1 }
 0x12b   : > { %v878_v11 = vmax.f32 %v636_v3, %v853_v7  ;;  %v359_v12 = vadd.f32 %v1519_v4, %v358_v9  ;;  %v576_v13 = vadd.f32 %v1519_v4, %v575_v10 }
 0x12d   : > { %v1120_v14 = vmax.f32 %v878_v11, %v1095_v8  ;;  %v395_v15 = vmax.f32 %v359_v12, 0.0  ;;  %v612_v16 = vmax.f32 %v576_v13, 0.0 }
 0x12e   : > { %v817_v17 = vpop.f32.mrf.mxu2  ;;  %v1059_v18 = vpop.f32.mrf.mxu3 }
 0x12f   : > { %1146 = vst.msk [vmem:[%s1545_s4 + $0x90] sm:$0xff] %vm1127_vm2, %v1120_v14  ;;  %v637_v19 = vmax.f32 %v395_v15, %v612_v16  ;;  %v818_v20 = vadd.f32 %v1519_v4, %v817_v17  ;;  %v1060_v21 = vadd.f32 %v1519_v4, %v1059_v18 }
 0x131   : > { %v854_v22 = vmax.f32 %v818_v20, 0.0  ;;  %v1096_v23 = vmax.f32 %v1060_v21, 0.0 }
 0x132   : > { %v361_v24 = vpop.f32.mrf.mxu0  ;;  %v578_v25 = vpop.f32.mrf.mxu1 }
 0x133   : > { %v879_v26 = vmax.f32 %v637_v19, %v854_v22  ;;  %v362_v27 = vadd.f32 %v1519_v4, %v361_v24  ;;  %v579_v28 = vadd.f32 %v1519_v4, %v578_v25 }
 0x135   : > { %v1121_v29 = vmax.f32 %v879_v26, %v1096_v23  ;;  %v396_v30 = vmax.f32 %v362_v27, 0.0  ;;  %v613_v31 = vmax.f32 %v579_v28, 0.0 }
 0x136   : > { %v820_v32 = vpop.f32.mrf.mxu2  ;;  %v1062_v33 = vpop.f32.mrf.mxu3 }
 0x137   : > { %1147 = vst.msk [vmem:[%s1545_s4 + $0x98] sm:$0xff] %vm1127_vm2, %v1121_v29  ;;  %v638_v34 = vmax.f32 %v396_v30, %v613_v31  ;;  %v821_v35 = vadd.f32 %v1519_v4, %v820_v32  ;;  %v1063_v36 = vadd.f32 %v1519_v4, %v1062_v33 }
 0x139   : > { %v855_v37 = vmax.f32 %v821_v35, 0.0  ;;  %v1097_v38 = vmax.f32 %v1063_v36, 0.0 }
 0x13a   : > { %v364_v39 = vpop.f32.mrf.mxu0  ;;  %v581_v40 = vpop.f32.mrf.mxu1 }
 0x13b   : > { %v880_v41 = vmax.f32 %v638_v34, %v855_v37  ;;  %v365_v42 = vadd.f32 %v1519_v4, %v364_v39  ;;  %v582_v43 = vadd.f32 %v1519_v4, %v581_v40 }
 0x13d   : > { %v1122_v44 = vmax.f32 %v880_v41, %v1097_v38  ;;  %v397_v45 = vmax.f32 %v365_v42, 0.0  ;;  %v614_v46 = vmax.f32 %v582_v43, 0.0 }
 0x13e   : > { %v823_v47 = vpop.f32.mrf.mxu2  ;;  %v1065_v48 = vpop.f32.mrf.mxu3 }
 0x13f   : > { %1148 = vst.msk [vmem:[%s1545_s4 + $0xa0] sm:$0xff] %vm1127_vm2, %v1122_v44  ;;  %v639_v49 = vmax.f32 %v397_v45, %v614_v46  ;;  %v824_v50 = vadd.f32 %v1519_v4, %v823_v47  ;;  %v1066_v51 = vadd.f32 %v1519_v4, %v1065_v48 }
 0x141   : > { %v856_v52 = vmax.f32 %v824_v50, 0.0  ;;  %v1098_v53 = vmax.f32 %v1066_v51, 0.0 }
 0x142   : > { %v367_v54 = vpop.f32.mrf.mxu0  ;;  %v584_v55 = vpop.f32.mrf.mxu1 }
 0x143   : > { %v881_v56 = vmax.f32 %v639_v49, %v856_v52  ;;  %v368_v57 = vadd.f32 %v1519_v4, %v367_v54  ;;  %v585_v58 = vadd.f32 %v1519_v4, %v584_v55 }
 0x145   : > { %v1123_v59 = vmax.f32 %v881_v56, %v1098_v53  ;;  %v398_v60 = vmax.f32 %v368_v57, 0.0  ;;  %v615_v61 = vmax.f32 %v585_v58, 0.0 }
 0x146   : > { %v826_v62 = vpop.f32.mrf.mxu2  ;;  %v1068_v63 = vpop.f32.mrf.mxu3 }
 0x147   : > { %1149 = vst.msk [vmem:[%s1545_s4 + $0xa8] sm:$0xff] %vm1127_vm2, %v1123_v59  ;;  %v640_v0 = vmax.f32 %v398_v60, %v615_v61  ;;  %v827_v1 = vadd.f32 %v1519_v4, %v826_v62  ;;  %v1069_v2 = vadd.f32 %v1519_v4, %v1068_v63 }
 0x149   : > { %v857_v3 = vmax.f32 %v827_v1, 0.0  ;;  %v1099_v5 = vmax.f32 %v1069_v2, 0.0 }
 0x14a   : > { %v370_v6 = vpop.f32.mrf.mxu0  ;;  %v587_v7 = vpop.f32.mrf.mxu1 }
 0x14b   : > { %v882_v8 = vmax.f32 %v640_v0, %v857_v3  ;;  %v371_v9 = vadd.f32 %v1519_v4, %v370_v6  ;;  %v588_v10 = vadd.f32 %v1519_v4, %v587_v7 }
 0x14d   : > { %v1124_v11 = vmax.f32 %v882_v8, %v1099_v5  ;;  %v399_v12 = vmax.f32 %v371_v9, 0.0  ;;  %v616_v13 = vmax.f32 %v588_v10, 0.0 }
 0x14e   : > { %v829_v14 = vpop.f32.mrf.mxu2  ;;  %v1071_v15 = vpop.f32.mrf.mxu3 }
 0x14f   : > { %1150 = vst.msk [vmem:[%s1545_s4 + $0xb0] sm:$0xff] %vm1127_vm2, %v1124_v11  ;;  %v641_v16 = vmax.f32 %v399_v12, %v616_v13  ;;  %v830_v17 = vadd.f32 %v1519_v4, %v829_v14  ;;  %v1072_v18 = vadd.f32 %v1519_v4, %v1071_v15 }
 0x151   : > { %v858_v19 = vmax.f32 %v830_v17, 0.0  ;;  %v1100_v20 = vmax.f32 %v1072_v18, 0.0 }
 0x152   : > { %v373_v21 = vpop.f32.mrf.mxu0  ;;  %v590_v22 = vpop.f32.mrf.mxu1 }
 0x153   : > { %v883_v23 = vmax.f32 %v641_v16, %v858_v19  ;;  %v374_v24 = vadd.f32 %v1519_v4, %v373_v21  ;;  %v591_v25 = vadd.f32 %v1519_v4, %v590_v22 }
 0x155   : > { %v1125_v26 = vmax.f32 %v883_v23, %v1100_v20  ;;  %v400_v27 = vmax.f32 %v374_v24, 0.0  ;;  %v617_v28 = vmax.f32 %v591_v25, 0.0 }
 0x156   : > { %v832_v29 = vpop.f32.mrf.mxu2  ;;  %v1074_v30 = vpop.f32.mrf.mxu3 }
 0x157   : > { %1151 = vst.msk [vmem:[%s1545_s4 + $0xb8] sm:$0xff] %vm1127_vm2, %v1125_v26  ;;  %v642_v31 = vmax.f32 %v400_v27, %v617_v28  ;;  %v833_v32 = vadd.f32 %v1519_v4, %v832_v29  ;;  %v1075_v33 = vadd.f32 %v1519_v4, %v1074_v30 }
 0x159   : > { %v859_v34 = vmax.f32 %v833_v32, 0.0  ;;  %v1101_v35 = vmax.f32 %v1075_v33, 0.0 }
 0x15b   : > { %v884_v36 = vmax.f32 %v642_v31, %v859_v34 }
 0x15d   : > { %v1126_v37 = vmax.f32 %v884_v36, %v1101_v35 }
 0x15f   : > { %1152 = vst.msk [vmem:[%s1545_s4 + $0xc0] sm:$0xff] %vm1127_vm2, %v1126_v37 }
 0x160 PF: > { %s13_s12 = sadd.s32 1, %s1338_s12  }
 0x161   : > { %p10_p4 = scmp.ge.s32.totalorder %s13_s12, 4  }
 0x163   :  { %12 = sbr.rel (!%p10_p4) target bundleno = 1 (0x1), region = 62 }

// kernel: network_forward.4
= control target key start
LH: loop header
LB: loop body
LE: loop exit
PB: predicated region body
PF: predicated region fallthrough
CT: control target
= control target key end

     0   :  { %s884_s12 = smov 0   ;;  %s1364_s0 = inlined_call_operand.vmem [shape: f32[2,160,288], index: 0, kind: input, shape index: {}]   ;;  %s1365_s1 = inlined_call_operand.vmem [shape: f32[288,64], index: 1, kind: input, shape index: {}]   ;;  %s1366_s2 = inlined_call_operand.vmem [shape: f32[1,64], index: 2, kind: input, shape index: {}]   ;;  %s1367_s3 = inlined_call_operand.vmem [shape: f32[2,40,64], index: 3, kind: output, shape index: {}]  }
   0x1 LB: > { %s812_s13 = sadd.s32 4294967295, %s862_s12   ;;  %p816_p0 = scmp.ge.s32.totalorder %s862_s12, 1  ;;  %s862_s12 = sphi %s884_s12, %s13_s12  }
   0x2   : > { %p137_p1 = scmp.lt.s32.totalorder %s862_s12, 3 }
   0x4   : > { %p138_p2 = pnand %p816_p0, %p137_p1 }
   0x5   : > { %p161_p3 = scmp.lt.s32.totalorder (!%p138_p2), %s812_s13, 1 }
   0x6   : > { %141 = sbr.rel (%p138_p2) target bundleno = 297 (0x129), region = 32 }
   0xb   : > { %v895_v0 = vld [vmem:[%s1365_s1 + $0x78] sm:$0xff]  ;;  %v905_v2 = vld [vmem:[%s1365_s1 + $0x70] sm:$0xff]  ;;  %v924_v5 = vld [vmem:[%s1365_s1 + $0x68] sm:$0xff]  ;;  %s1369_s13 = smov (!%p161_p3, %s812_s13), 1  ;;  %vm226_vm0 = vcmask 261120   ;;  %vm751_vm1 = vcmask 523264  }
   0xc   : > { %v900_v1 = vld [vmem:[%s1365_s1 + $0x118] sm:$0xff]  ;;  %242 = vmatpush.msra.mxu0 %v895_v0  ;;  %v917_v4 = vld [vmem:[%s1365_s1 + $0x110] sm:$0xff]  ;;  %373 = vmatpush.msra.mxu3 %v895_v0  ;;  %v934_v7 = vld [vmem:[%s1365_s1 + $0x108] sm:$0xff]  ;;  %s845_s9 = smul.u32 480, %s1369_s13 }
   0xd   : > { %318 = vmatpush.msra.mxu2 %v900_v1  ;;  %v912_v3 = vld [vmem:[%s1365_s1 + $0xf8] sm:$0xff]  ;;  %v929_v6 = vld [vmem:[%s1365_s1 + $0xf0] sm:$0xff]  ;;  %v943_v8 = vld [vmem:[%s1365_s1 + $0xe8] sm:$0xff] }
   0xe   : > { %274 = vmatpush.msra.mxu1 %v912_v3  ;;  %243 = vmatpush.msra.mxu0 %v905_v2  ;;  %v950_v9 = vld [vmem:[%s1365_s1 + $0x60] sm:$0xff]  ;;  %s965_s14 = scalar_lea.vmem %s1364_s0, %s845_s9  ;;  %v970_v11 = vld [vmem:[%s1365_s1 + $0x58] sm:$0xff]  ;;  %v985_v14 = vld [vmem:[%s1365_s1 + $0x50] sm:$0xff] }
   0xf   : > { %319 = vmatpush.msra.mxu2 %v917_v4  ;;  %374 = vmatpush.msra.mxu3 %v905_v2  ;;  %v955_v10 = vld [vmem:[%s1365_s1 + $0x100] sm:$0xff]  ;;  %v210_v13 = vld [vmem:[%s965_s14 + $0x10] sm:$0xff]  ;;  %v990_v15 = vld [vmem:[%s1365_s1 + $0xd8] sm:$0xff] }
  0x10   : > { %275 = vmatpush.msra.mxu1 %v929_v6  ;;  %244 = vmatpush.msra.mxu0 %v924_v5  ;;  %v975_v12 = vld [vmem:[%s1365_s1 + $0xe0] sm:$0xff]  ;;  %v998_v16 = vld [vmem:[%s1365_s1 + $0x48] sm:$0xff]  ;;  %v1003_v17 = vld [vmem:[%s1365_s1 + $0xd0] sm:$0xff] }
  0x11   : > { %320 = vmatpush.msra.mxu2 %v934_v7  ;;  %375 = vmatpush.msra.mxu3 %v924_v5  ;;  %v1012_v18 = vld [vmem:[%s1365_s1 + $0x40] sm:$0xff]  ;;  %v1017_v19 = vld [vmem:[%s1365_s1 + $0xc8] sm:$0xff]  ;;  %v1027_v21 = vld [vmem:[%s1365_s1 + $0x38] sm:$0xff] }
  0x12   : > { %276 = vmatpush.msra.mxu1 %v943_v8  ;;  %245 = vmatpush.msra.mxu0 %v950_v9  ;;  %v213_v20 = vld [vmem:[%s965_s14 + $0x28] sm:$0xff]  ;;  %v1032_v22 = vld [vmem:[%s1365_s1 + $0xc0] sm:$0xff]  ;;  %v1042_v23 = vld [vmem:[%s1365_s1 + $0x30] sm:$0xff] }
  0x13   : > { %321 = vmatpush.msra.mxu2 %v955_v10  ;;  %376 = vmatpush.msra.mxu3 %v950_v9  ;;  %v1047_v24 = vld [vmem:[%s1365_s1 + $0xb8] sm:$0xff]  ;;  %v1055_v25 = vld [vmem:[%s1365_s1 + $0x28] sm:$0xff]  ;;  %v1060_v26 = vld [vmem:[%s1365_s1 + $0xb0] sm:$0xff] }
  0x14   : > { %819 = vmatmul.msk.f32.vlgmr.msra.gmra.mxu2 %vm226_vm0, %v210_v13  ;;  %246 = vmatpush.msra.mxu0 %v970_v11  ;;  %v1069_v27 = vld [vmem:[%s1365_s1 + $0x20] sm:$0xff]  ;;  %v1074_v28 = vld [vmem:[%s1365_s1 + $0xa8] sm:$0xff]  ;;  %v1084_v30 = vld [vmem:[%s1365_s1 + $0x18] sm:$0xff] }
  0x15   : > { %277 = vmatpush.msra.mxu1 %v975_v12  ;;  %377 = vmatpush.msra.mxu3 %v970_v11  ;;  %v216_v29 = vld [vmem:[%s965_s14 + $0x40] sm:$0xff]  ;;  %v1099_v32 = vld [vmem:[%s1365_s1 + $0x10] sm:$0xff]  ;;  %v1104_v33 = vld [vmem:[%s1365_s1 + $0x98] sm:$0xff] }
  0x16   : > { %405 = vmatpush.msrb.mxu2 %v912_v3  ;;  %247 = vmatpush.msra.mxu0 %v985_v14  ;;  %v1089_v31 = vld [vmem:[%s1365_s1 + $0xa0] sm:$0xff]  ;;  %v1112_v34 = vld [vmem:[%s1365_s1 + $0x8] sm:$0xff]  ;;  %v1117_v35 = vld [vmem:[%s1365_s1 + $0x90] sm:$0xff] }
  0x17   : > { %278 = vmatpush.msra.mxu1 %v990_v15  ;;  %378 = vmatpush.msra.mxu3 %v985_v14  ;;  %v1126_v36 = vld [vmem:[%s1365_s1] sm:$0xff]  ;;  %v1131_v37 = vld [vmem:[%s1365_s1 + $0x88] sm:$0xff]  ;;  %v219_v39 = vld [vmem:[%s965_s14 + $0x58] sm:$0xff] }
  0x18   : > { %406 = vmatpush.msrb.mxu2 %v929_v6  ;;  %248 = vmatpush.msra.mxu0 %v998_v16  ;;  %v208_v38 = vld [vmem:[%s965_s14] sm:$0xff]  ;;  %v343_v40 = vld [vmem:[%s965_s14 + $0x78] sm:$0xff]  ;;  %v209_v42 = vld [vmem:[%s965_s14 + $0x8] sm:$0xff] }
  0x19   : > { %279 = vmatpush.msra.mxu1 %v1003_v17  ;;  %379 = vmatpush.msra.mxu3 %v998_v16  ;;  %v1146_v41 = vld [vmem:[%s1365_s1 + $0x80] sm:$0xff]  ;;  %v211_v43 = vld [vmem:[%s965_s14 + $0x18] sm:$0xff]  ;;  %v222_v44 = vld [vmem:[%s965_s14 + $0x70] sm:$0xff] }
  0x1a   : > { %407 = vmatpush.msrb.mxu2 %v943_v8  ;;  %249 = vmatpush.msra.mxu0 %v1012_v18  ;;  %v346_v45 = vld [vmem:[%s965_s14 + $0x90] sm:$0xff]  ;;  %v212_v46 = vld [vmem:[%s965_s14 + $0x20] sm:$0xff]  ;;  %v349_v48 = vld [vmem:[%s965_s14 + $0xa8] sm:$0xff] }
  0x1b   : > { %280 = vmatpush.msra.mxu1 %v1017_v19  ;;  %380 = vmatpush.msra.mxu3 %v1012_v18  ;;  %v214_v47 = vld [vmem:[%s965_s14 + $0x30] sm:$0xff]  ;;  %v344_v49 = vld [vmem:[%s965_s14 + $0x80] sm:$0xff]  ;;  %v215_v50 = vld [vmem:[%s965_s14 + $0x38] sm:$0xff] }
  0x1c   : > { %820 = vmatmul.msk.f32.gmra.mxu2 %vm226_vm0, %v213_v20  ;;  %250 = vmatpush.msra.mxu0 %v1027_v21  ;;  %v217_v51 = vld [vmem:[%s965_s14 + $0x48] sm:$0xff]  ;;  %v352_v52 = vld [vmem:[%s965_s14 + $0xc0] sm:$0xff]  ;;  %v347_v53 = vld [vmem:[%s965_s14 + $0x98] sm:$0xff] }
  0x1d   : > { %281 = vmatpush.msra.mxu1 %v1032_v22  ;;  %381 = vmatpush.msra.mxu3 %v1027_v21  ;;  %v218_v54 = vld [vmem:[%s965_s14 + $0x50] sm:$0xff]  ;;  %v220_v55 = vld [vmem:[%s965_s14 + $0x60] sm:$0xff]  ;;  %v355_v56 = vld [vmem:[%s965_s14 + $0xd8] sm:$0xff] }
  0x1e   : > { %408 = vmatpush.msrb.mxu2 %v975_v12  ;;  %251 = vmatpush.msra.mxu0 %v1042_v23  ;;  %v350_v57 = vld [vmem:[%s965_s14 + $0xb0] sm:$0xff]  ;;  %v221_v58 = vld [vmem:[%s965_s14 + $0x68] sm:$0xff]  ;;  %v480_v61 = vld [vmem:[%s965_s14 + $0xf8] sm:$0xff] }
  0x1f   : > { %282 = vmatpush.msra.mxu1 %v1047_v24  ;;  %382 = vmatpush.msra.mxu3 %v1042_v23  ;;  %v345_v59 = vld [vmem:[%s965_s14 + $0x88] sm:$0xff]  ;;  %v479_v62 = vld [vmem:[%s965_s14 + $0xf0] sm:$0xff]  ;;  %v348_v63 = vld [vmem:[%s965_s14 + $0xa0] sm:$0xff] }
  0x20   : > { %409 = vmatpush.msrb.mxu2 %v990_v15  ;;  %252 = vmatpush.msra.mxu0 %v1055_v25  ;;  %v353_v60 = vld [vmem:[%s965_s14 + $0xc8] sm:$0xff]  ;;  %v484_v13 = vld [vmem:[%s965_s14 + $0x118] sm:$0xff] }
  0x21   : > { %283 = vmatpush.msra.mxu1 %v1060_v26  ;;  %383 = vmatpush.msra.mxu3 %v1055_v25  ;;  %v490_v20 = vld [vmem:[%s965_s14 + $0x148] sm:$0xff] }
  0x22   : > { %410 = vmatpush.msrb.mxu2 %v1003_v17  ;;  %253 = vmatpush.msra.mxu0 %v1069_v27 }
  0x23   : > { %284 = vmatpush.msra.mxu1 %v1074_v28  ;;  %384 = vmatpush.msra.mxu3 %v1069_v27 }
  0x24   : > { %821 = vmatmul.msk.f32.gmra.mxu2 %vm226_vm0, %v216_v29  ;;  %254 = vmatpush.msra.mxu0 %v1084_v30  ;;  %v625_v29 = vld [vmem:[%s965_s14 + $0x1b8] sm:$0xff] }
  0x25   : > { %285 = vmatpush.msra.mxu1 %v1089_v31  ;;  %385 = vmatpush.msra.mxu3 %v1084_v30 }
  0x26   : > { %411 = vmatpush.msrb.mxu2 %v1017_v19  ;;  %255 = vmatpush.msra.mxu0 %v1099_v32 }
  0x27   : > { %286 = vmatpush.msra.mxu1 %v1104_v33  ;;  %386 = vmatpush.msra.mxu3 %v1099_v32 }
  0x28   : > { %412 = vmatpush.msrb.mxu2 %v1032_v22  ;;  %256 = vmatpush.msra.mxu0 %v1112_v34 }
  0x29   : > { %287 = vmatpush.msra.mxu1 %v1117_v35  ;;  %387 = vmatpush.msra.mxu3 %v1112_v34 }
  0x2a   : > { %413 = vmatpush.msrb.mxu2 %v1047_v24  ;;  %257 = vmatpush.msra.mxu0 %v1126_v36 }
  0x2b   : > { %288 = vmatpush.msra.mxu1 %v1131_v37  ;;  %388 = vmatpush.msra.mxu3 %v1126_v36 }
  0x2c   : > { %258 = vmatmul.f32.vlgmr.msra.gmra.mxu0 %v208_v38  ;;  %822 = vmatmul.msk.f32.gmra.mxu2 %vm226_vm0, %v219_v39 }
  0x2d   : > { %389 = vmatmul.f32.vlgmr.msra.gmra.mxu3 %v343_v40  ;;  %289 = vmatpush.msra.mxu1 %v1146_v41 }
  0x2e   : > { %541 = vmatpush.msrb.mxu3 %v912_v3  ;;  %290 = vmatmul.f32.vlgmr.msra.gmra.mxu1 %v209_v42 }
  0x2f   : > { %414 = vmatpush.msrb.mxu2 %v1060_v26  ;;  %509 = vmatpush.msrb.mxu1 %v895_v0 }
  0x30   : > { %542 = vmatpush.msrb.mxu3 %v929_v6  ;;  %449 = vmatpush.msrb.mxu0 %v900_v1 }
  0x31   : > { %415 = vmatpush.msrb.mxu2 %v1074_v28  ;;  %510 = vmatpush.msrb.mxu1 %v905_v2 }
  0x32   : > { %543 = vmatpush.msrb.mxu3 %v943_v8  ;;  %450 = vmatpush.msrb.mxu0 %v917_v4 }
  0x33   : > { %416 = vmatpush.msrb.mxu2 %v1089_v31  ;;  %511 = vmatpush.msrb.mxu1 %v924_v5 }
  0x34   : > { %261 = vmatmul.f32.gmra.mxu0 %v211_v43  ;;  %544 = vmatpush.msrb.mxu3 %v975_v12 }
  0x35   : > { %823 = vmatmul.msk.f32.gmra.mxu2 %vm226_vm0, %v222_v44  ;;  %392 = vmatmul.f32.gmra.mxu3 %v346_v45 }
  0x36   : > { %417 = vmatpush.msrb.mxu2 %v1104_v33  ;;  %293 = vmatmul.f32.gmra.mxu1 %v212_v46 }
  0x37   : > { %545 = vmatpush.msrb.mxu3 %v990_v15  ;;  %512 = vmatpush.msrb.mxu1 %v950_v9 }
  0x38   : > { %418 = vmatpush.msrb.mxu2 %v1117_v35  ;;  %451 = vmatpush.msrb.mxu0 %v934_v7 }
  0x39   : > { %546 = vmatpush.msrb.mxu3 %v1003_v17  ;;  %513 = vmatpush.msrb.mxu1 %v970_v11 }
  0x3a   : > { %419 = vmatpush.msrb.mxu2 %v1131_v37  ;;  %452 = vmatpush.msrb.mxu0 %v955_v10 }
  0x3b   : > { %547 = vmatpush.msrb.mxu3 %v1017_v19  ;;  %514 = vmatpush.msrb.mxu1 %v985_v14 }
  0x3c   : > { %420 = vmatpush.msrb.mxu2 %v1146_v41  ;;  %264 = vmatmul.f32.gmra.mxu0 %v214_v47 }
  0x3d   : > { %395 = vmatmul.f32.gmra.mxu3 %v349_v48  ;;  %421 = vmatmul.f32.vlgmr.msrb.gmra.mxu2 %v344_v49 }
  0x3e   : > { %548 = vmatpush.msrb.mxu3 %v1032_v22  ;;  %296 = vmatmul.f32.gmra.mxu1 %v215_v50 }
  0x3f   : > { %841 = vmatpush.msra.mxu2 %v900_v1  ;;  %515 = vmatpush.msrb.mxu1 %v998_v16 }
  0x40   : > { %549 = vmatpush.msrb.mxu3 %v1047_v24  ;;  %645 = vmatpush.msra.mxu0 %v895_v0  ;;  %v356_v0 = vld [vmem:[%s965_s14 + $0xe0] sm:$0xff] }
  0x41   : > { %842 = vmatpush.msra.mxu2 %v917_v4  ;;  %516 = vmatpush.msrb.mxu1 %v1012_v18 }
  0x42   : > { %550 = vmatpush.msrb.mxu3 %v1060_v26  ;;  %646 = vmatpush.msra.mxu0 %v905_v2  ;;  %v482_v2 = vld [vmem:[%s965_s14 + $0x108] sm:$0xff] }
  0x43   : > { %843 = vmatpush.msra.mxu2 %v934_v7  ;;  %517 = vmatpush.msrb.mxu1 %v1027_v21 }
  0x44   : > { %267 = vmatmul.f32.gmra.mxu0 %v217_v51  ;;  %551 = vmatpush.msrb.mxu3 %v1074_v28 }
  0x45   : > { %398 = vmatmul.f32.gmra.mxu3 %v352_v52  ;;  %424 = vmatmul.f32.gmra.mxu2 %v347_v53 }
  0x46   : > { %518 = vmatpush.msrb.mxu1 %v1042_v23  ;;  %647 = vmatpush.msra.mxu0 %v924_v5  ;;  %v486_v5 = vld [vmem:[%s965_s14 + $0x128] sm:$0xff] }
  0x47   : > { %299 = vmatmul.f32.gmra.mxu1 %v218_v54  ;;  %552 = vmatpush.msrb.mxu3 %v1089_v31 }
  0x48   : > { %519 = vmatpush.msrb.mxu1 %v1055_v25  ;;  %844 = vmatpush.msra.mxu2 %v955_v10 }
  0x49   : > { %648 = vmatpush.msra.mxu0 %v950_v9  ;;  %553 = vmatpush.msrb.mxu3 %v1104_v33  ;;  %v481_v9 = vld [vmem:[%s965_s14 + $0x100] sm:$0xff] }
  0x4a   : > { %520 = vmatpush.msrb.mxu1 %v1069_v27  ;;  %585 = vmatpush.msrb.mxu2 %v900_v1 }
  0x4b   : > { %649 = vmatpush.msra.mxu0 %v970_v11  ;;  %554 = vmatpush.msrb.mxu3 %v1117_v35  ;;  %v615_v11 = vld [vmem:[%s965_s14 + $0x168] sm:$0xff] }
  0x4c   : > { %270 = vmatmul.f32.gmra.mxu0 %v220_v55  ;;  %521 = vmatpush.msrb.mxu1 %v1084_v30 }
  0x4d   : > { %401 = vmatmul.f32.gmra.mxu3 %v355_v56  ;;  %427 = vmatmul.f32.gmra.mxu2 %v350_v57 }
  0x4e   : > { %555 = vmatpush.msrb.mxu3 %v1131_v37  ;;  %586 = vmatpush.msrb.mxu2 %v917_v4 }
  0x4f   : > { %302 = vmatmul.f32.gmra.mxu1 %v221_v58  ;;  %650 = vmatpush.msra.mxu0 %v985_v14  ;;  %v491_v14 = vld [vmem:[%s965_s14 + $0x150] sm:$0xff] }
  0x50   : > { %522 = vmatpush.msrb.mxu1 %v1099_v32  ;;  %556 = vmatpush.msrb.mxu3 %v1146_v41 }
  0x51   : > { %587 = vmatpush.msrb.mxu2 %v934_v7  ;;  %651 = vmatpush.msra.mxu0 %v998_v16  ;;  %v487_v16 = vld [vmem:[%s965_s14 + $0x130] sm:$0xff] }
  0x52   : > { %721 = vmatpush.msra.mxu3 %v900_v1  ;;  %523 = vmatpush.msrb.mxu1 %v1112_v34  ;;  %v483_v1 = vld [vmem:[%s965_s14 + $0x110] sm:$0xff] }
  0x53   : > { %588 = vmatpush.msrb.mxu2 %v955_v10  ;;  %652 = vmatpush.msra.mxu0 %v1012_v18  ;;  %v616_v18 = vld [vmem:[%s965_s14 + $0x170] sm:$0xff] }
  0x54   : > { %722 = vmatpush.msra.mxu3 %v917_v4  ;;  %824 = vmatmul.msk.f32.vlgmr.msrb.gmra.mxu0 %vm226_vm0, %v345_v59  ;;  %v357_v4 = vld [vmem:[%s965_s14 + $0xe8] sm:$0xff] }
  0x55   : > { %524 = vmatpush.msrb.mxu1 %v1126_v36  ;;  %430 = vmatmul.f32.gmra.mxu2 %v353_v60 }
  0x56   : > { %557 = vmatmul.f32.vlgmr.msrb.gmra.mxu3 %v480_v61  ;;  %653 = vmatpush.msra.mxu0 %v1027_v21  ;;  %v620_v21 = vld [vmem:[%s965_s14 + $0x190] sm:$0xff] }
  0x57   : > { %677 = vmatpush.msra.mxu1 %v912_v3  ;;  %723 = vmatpush.msra.mxu3 %v934_v7  ;;  %v351_v3 = vld [vmem:[%s965_s14 + $0xb8] sm:$0xff]  ;;  %v354_v7 = vld [vmem:[%s965_s14 + $0xd0] sm:$0xff] }
  0x58   : > { %525 = vmatmul.f32.vlgmr.msrb.gmra.mxu1 %v479_v62  ;;  %654 = vmatpush.msra.mxu0 %v1042_v23  ;;  %v624_v23 = vld [vmem:[%s965_s14 + $0x1b0] sm:$0xff] }
  0x59   : > { %678 = vmatpush.msra.mxu1 %v929_v6  ;;  %724 = vmatpush.msra.mxu3 %v955_v10  ;;  %v485_v6 = vld [vmem:[%s965_s14 + $0x120] sm:$0xff]  ;;  %v488_v10 = vld [vmem:[%s965_s14 + $0x138] sm:$0xff] }
  0x5a   : > { %655 = vmatpush.msra.mxu0 %v1055_v25  ;;  %v623_v25 = vld [vmem:[%s965_s14 + $0x1a8] sm:$0xff] }
  0x5b   : > { %679 = vmatpush.msra.mxu1 %v943_v8  ;;  %v489_v8 = vld [vmem:[%s965_s14 + $0x140] sm:$0xff] }
  0x5c   : > { %825 = vmatmul.msk.f32.gmra.mxu0 %vm226_vm0, %v348_v63 }
  0x5d   : > { %680 = vmatpush.msra.mxu1 %v975_v12  ;;  %433 = vmatmul.f32.gmra.mxu2 %v356_v0  ;;  %v492_v12 = vld [vmem:[%s965_s14 + $0x158] sm:$0xff] }
  0x5e   : > { %560 = vmatmul.f32.gmra.mxu3 %v483_v1  ;;  %656 = vmatpush.msra.mxu0 %v1069_v27  ;;  %v627_v27 = vld [vmem:[%s965_s14 + $0x1c8] sm:$0xff] }
  0x5f   : > { %681 = vmatpush.msra.mxu1 %v990_v15  ;;  %v618_v15 = vld [vmem:[%s965_s14 + $0x180] sm:$0xff] }
  0x60   : > { %528 = vmatmul.f32.gmra.mxu1 %v482_v2  ;;  %657 = vmatpush.msra.mxu0 %v1084_v30 }
  0x61   : > { %682 = vmatpush.msra.mxu1 %v1003_v17  ;;  %v617_v17 = vld [vmem:[%s965_s14 + $0x178] sm:$0xff] }
  0x62   : > { %658 = vmatpush.msra.mxu0 %v1099_v32  ;;  %v628_v32 = vld [vmem:[%s965_s14 + $0x1d0] sm:$0xff] }
  0x63   : > { %683 = vmatpush.msra.mxu1 %v1017_v19  ;;  %v621_v19 = vld [vmem:[%s965_s14 + $0x198] sm:$0xff] }
  0x64   : > { %826 = vmatmul.msk.f32.gmra.mxu0 %vm226_vm0, %v351_v3 }
  0x65   : > { %684 = vmatpush.msra.mxu1 %v1032_v22  ;;  %828 = vmatmul.msk.f32.vlgmr.msra.gmra.mxu2 %vm226_vm0, %v357_v4  ;;  %v619_v22 = vld [vmem:[%s965_s14 + $0x188] sm:$0xff] }
  0x66   : > { %563 = vmatmul.f32.gmra.mxu3 %v486_v5  ;;  %659 = vmatpush.msra.mxu0 %v1112_v34  ;;  %v1311_v34 = vld [vmem:[%s1366_s2] ss:$0 sm:$0xff] }
  0x67   : > { %685 = vmatpush.msra.mxu1 %v1047_v24  ;;  %v493_v24 = vld [vmem:[%s965_s14 + $0x160] sm:$0xff] }
  0x68   : > { %531 = vmatmul.f32.gmra.mxu1 %v485_v6  ;;  %660 = vmatpush.msra.mxu0 %v1126_v36 }
  0x69   : > { %686 = vmatpush.msra.mxu1 %v1060_v26  ;;  %v622_v26 = vld [vmem:[%s965_s14 + $0x1a0] sm:$0xff] }
  0x6b   : > { %687 = vmatpush.msra.mxu1 %v1074_v28  ;;  %v626_v28 = vld [vmem:[%s965_s14 + $0x1c0] sm:$0xff] }
  0x6c   : > { %827 = vmatmul.msk.f32.gmra.mxu0 %vm226_vm0, %v354_v7 }
  0x6d   : > { %688 = vmatpush.msra.mxu1 %v1089_v31  ;;  %829 = vmatmul.msk.f32.vlgmr.msrb.gmra.mxu2 %vm226_vm0, %v481_v9  ;;  %v629_v31 = vld [vmem:[%s965_s14 + $0x1d8] sm:$0xff]  ;;  %s846_s14 = smul.u32 40, %s1369_s13 }
  0x6e   : > { %566 = vmatmul.f32.gmra.mxu3 %v489_v8 }
  0x6f   : > { %689 = vmatpush.msra.mxu1 %v1104_v33  ;;  %s1339_s21 = scalar_lea.vmem %s1367_s3, %s846_s14 }
  0x70   : > { %534 = vmatmul.f32.gmra.mxu1 %v488_v10 }
  0x71   : > { %690 = vmatpush.msra.mxu1 %v1117_v35 }
  0x73   : > { %691 = vmatpush.msra.mxu1 %v1131_v37 }
  0x74   : > { %661 = vmatmul.f32.vlgmr.msra.gmra.mxu0 %v615_v11 }
  0x75   : > { %692 = vmatpush.msra.mxu1 %v1146_v41  ;;  %830 = vmatmul.msk.f32.gmra.mxu2 %vm226_vm0, %v484_v13 }
  0x76   : > { %569 = vmatmul.f32.gmra.mxu3 %v492_v12 }
  0x78   : > { %537 = vmatmul.f32.gmra.mxu1 %v491_v14 }
  0x7c   : > { %664 = vmatmul.f32.gmra.mxu0 %v618_v15 }
  0x7d   : > { %831 = vmatmul.msk.f32.gmra.mxu2 %vm226_vm0, %v487_v16 }
  0x7e   : > { %834 = vmatmul.msk.f32.vlgmr.msra.gmra.mxu3 %vm226_vm0, %v617_v17 }
  0x80   : > { %693 = vmatmul.f32.vlgmr.msra.gmra.mxu1 %v616_v18 }
  0x84   : > { %667 = vmatmul.f32.gmra.mxu0 %v621_v19 }
  0x85   : > { %832 = vmatmul.msk.f32.gmra.mxu2 %vm226_vm0, %v490_v20 }
  0x86   : > { %835 = vmatmul.msk.f32.gmra.mxu3 %vm226_vm0, %v620_v21 }
  0x88   : > { %696 = vmatmul.f32.gmra.mxu1 %v619_v22 }
  0x8c   : > { %670 = vmatmul.f32.gmra.mxu0 %v624_v23 }
  0x8d   : > { %833 = vmatmul.msk.f32.gmra.mxu2 %vm226_vm0, %v493_v24 }
  0x8e   : > { %836 = vmatmul.msk.f32.gmra.mxu3 %vm226_vm0, %v623_v25 }
  0x90   : > { %699 = vmatmul.f32.gmra.mxu1 %v622_v26 }
  0x94   : > { %673 = vmatmul.f32.gmra.mxu0 %v627_v27 }
  0x96   : > { %837 = vmatmul.msk.f32.gmra.mxu3 %vm226_vm0, %v626_v28 }
  0x97   : > { %v323_v30 = vpop.f32.mrf.mxu2 }
  0x98   : > { %702 = vmatmul.f32.gmra.mxu1 %v625_v29 }
  0x9e   : > { %838 = vmatmul.msk.f32.gmra.mxu3 %vm226_vm0, %v629_v31 }
  0x9f   : > { %v326_v33 = vpop.f32.mrf.mxu2 }
  0xa0   : > { %705 = vmatmul.f32.gmra.mxu1 %v628_v32 }
  0xa7   : > { %v329_v35 = vpop.f32.mrf.mxu2 }
  0xa9   : > { %v259_v36 = vpop.f32.mrf.mxu0 }
  0xaa   : > { %v260_v37 = vadd.f32 %v1311_v34, %v259_v36 }
  0xab   : > { %v291_v38 = vpop.f32.mrf.mxu1 }
  0xac   : > { %v292_v39 = vadd.f32 %v291_v38, %v260_v37 }
  0xae   : > { %v324_v40 = vadd.f32 %v323_v30, %v292_v39 }
  0xaf   : > { %v332_v41 = vpop.f32.mrf.mxu2 }
  0xb0   : > { %v390_v42 = vpop.f32.mrf.mxu3  ;;  %v338_v11 = vmax.f32 %v324_v40, 0.0 }
  0xb1   : > { %v262_v43 = vpop.f32.mrf.mxu0  ;;  %v391_v4 = vadd.f32 %v1311_v34, %v390_v42 }
  0xb2   : > { %v263_v44 = vadd.f32 %v1311_v34, %v262_v43 }
  0xb3   : > { %v294_v45 = vpop.f32.mrf.mxu1 }
  0xb4   : > { %v295_v46 = vadd.f32 %v294_v45, %v263_v44 }
  0xb6   : > { %v327_v47 = vadd.f32 %v326_v33, %v295_v46 }
  0xb8   : > { %v335_v48 = vpop.f32.mrf.mxu2  ;;  %v393_v49 = vpop.f32.mrf.mxu3  ;;  %v339_v21 = vmax.f32 %v327_v47, 0.0 }
  0xb9   : > { %v265_v50 = vpop.f32.mrf.mxu0  ;;  %v394_v14 = vadd.f32 %v1311_v34, %v393_v49 }
  0xba   : > { %v266_v51 = vadd.f32 %v1311_v34, %v265_v50 }
  0xbb   : > { %v297_v52 = vpop.f32.mrf.mxu1 }
  0xbc   : > { %v298_v53 = vadd.f32 %v297_v52, %v266_v51 }
  0xbe   : > { %v330_v54 = vadd.f32 %v329_v35, %v298_v53 }
  0xc0   : > { %v396_v55 = vpop.f32.mrf.mxu3  ;;  %v422_v56 = vpop.f32.mrf.mxu2  ;;  %v340_v31 = vmax.f32 %v330_v54, 0.0 }
  0xc1   : > { %v268_v57 = vpop.f32.mrf.mxu0  ;;  %v423_v6 = vadd.f32 %v422_v56, %v391_v4  ;;  %v397_v24 = vadd.f32 %v1311_v34, %v396_v55 }
  0xc2   : > { %v269_v58 = vadd.f32 %v1311_v34, %v268_v57 }
  0xc4   : > { %v300_v59 = vpop.f32.mrf.mxu1 }
  0xc5   : > { %v301_v60 = vadd.f32 %v300_v59, %v269_v58 }
  0xc7   : > { %v333_v61 = vadd.f32 %v332_v41, %v301_v60 }
  0xc8   : > { %v399_v62 = vpop.f32.mrf.mxu3  ;;  %v425_v63 = vpop.f32.mrf.mxu2 }
  0xc9   : > { %v271_v0 = vpop.f32.mrf.mxu0  ;;  %v426_v16 = vadd.f32 %v425_v63, %v394_v14  ;;  %v400_v36 = vadd.f32 %v1311_v34, %v399_v62  ;;  %v341_v47 = vmax.f32 %v333_v61, 0.0 }
  0xca   : > { %v272_v1 = vadd.f32 %v1311_v34, %v271_v0 }
  0xcc   : > { %v303_v2 = vpop.f32.mrf.mxu1 }
  0xcd   : > { %v304_v3 = vadd.f32 %v303_v2, %v272_v1 }
  0xcf   : > { %v336_v5 = vadd.f32 %v335_v48, %v304_v3 }
  0xd0   : > { %v402_v7 = vpop.f32.mrf.mxu3  ;;  %v428_v8 = vpop.f32.mrf.mxu2 }
  0xd1   : > { %v454_v9 = vpop.f32.mrf.mxu0  ;;  %v429_v26 = vadd.f32 %v428_v8, %v397_v24  ;;  %v403_v35 = vadd.f32 %v1311_v34, %v402_v7  ;;  %v342_v45 = vmax.f32 %v336_v5, 0.0 }
  0xd2   : > { %v455_v10 = vadd.f32 %v454_v9, %v423_v6 }
  0xd4   : > { %v469_v12 = vmax.f32 %v455_v10, 0.0 }
  0xd5   : > { %v526_v13 = vpop.f32.mrf.mxu1 }
  0xd6   : > { %v474_v15 = vmax.f32 %v338_v11, %v469_v12  ;;  %v527_v56 = vadd.f32 %v1311_v34, %v526_v13 }
  0xd8   : > { %v431_v17 = vpop.f32.mrf.mxu2 }
  0xd9   : > { %v558_v18 = vpop.f32.mrf.mxu3  ;;  %v457_v19 = vpop.f32.mrf.mxu0  ;;  %v432_v39 = vadd.f32 %v431_v17, %v400_v36 }
  0xda   : > { %v458_v20 = vadd.f32 %v457_v19, %v426_v16  ;;  %v559_v58 = vadd.f32 %v558_v18, %v527_v56 }
  0xdc   : > { %v470_v22 = vmax.f32 %v458_v20, 0.0 }
  0xdd   : > { %v529_v23 = vpop.f32.mrf.mxu1 }
  0xde   : > { %v1321_v25 = vmax.f32 %v339_v21, %v470_v22  ;;  %v530_v0 = vadd.f32 %v1311_v34, %v529_v23 }
  0xe0   : > { %v434_v27 = vpop.f32.mrf.mxu2 }
  0xe1   : > { %v561_v28 = vpop.f32.mrf.mxu3  ;;  %v460_v29 = vpop.f32.mrf.mxu0  ;;  %v435_v38 = vadd.f32 %v434_v27, %v403_v35 }
  0xe2   : > { %v461_v30 = vadd.f32 %v460_v29, %v429_v26  ;;  %v562_v4 = vadd.f32 %v561_v28, %v530_v0 }
  0xe4   : > { %v471_v32 = vmax.f32 %v461_v30, 0.0 }
  0xe5   : > { %v532_v33 = vpop.f32.mrf.mxu1 }
  0xe6   : > { %v1325_v37 = vmax.f32 %v340_v31, %v471_v32  ;;  %v533_v13 = vadd.f32 %v1311_v34, %v532_v33 }
  0xe8   : > { %v466_v40 = vpop.f32.mrf.mxu2 }
  0xe9   : > { %v564_v41 = vpop.f32.mrf.mxu3  ;;  %v467_v42 = vadd.f32 %v466_v40, %v435_v38  ;;  %v463_v43 = vpop.f32.mrf.mxu0 }
  0xea   : > { %v464_v44 = vadd.f32 %v463_v43, %v432_v39  ;;  %v565_v18 = vadd.f32 %v564_v41, %v533_v13 }
  0xeb   : > { %v473_v46 = vmax.f32 %v467_v42, 0.0 }
  0xec   : > { %v472_v48 = vmax.f32 %v464_v44, 0.0 }
  0xed   : > { %v535_v49 = vpop.f32.mrf.mxu1  ;;  %v1327_v50 = vmax.f32 %v342_v45, %v473_v46 }
  0xee   : > { %v1329_v51 = vmax.f32 %v341_v47, %v472_v48  ;;  %v536_v27 = vadd.f32 %v1311_v34, %v535_v49 }
  0xf0   : > { %v590_v53 = vpop.f32.mrf.mxu2 }
  0xf1   : > { %v567_v52 = vpop.f32.mrf.mxu3  ;;  %v662_v54 = vpop.f32.mrf.mxu0  ;;  %v591_v61 = vadd.f32 %v590_v53, %v559_v58 }
  0xf2   : > { %v663_v59 = vadd.f32 %v1311_v34, %v662_v54  ;;  %v568_v33 = vadd.f32 %v567_v52, %v536_v27 }
  0xf3   : > { %v605_v2 = vmax.f32 %v591_v61, 0.0 }
  0xf5   : > { %v538_v55 = vpop.f32.mrf.mxu1  ;;  %v610_v8 = vmax.f32 %v474_v15, %v605_v2 }
  0xf6   : > { %v539_v41 = vadd.f32 %v1311_v34, %v538_v55 }
  0xf8   : > { %v593_v62 = vpop.f32.mrf.mxu2 }
  0xf9   : > { %v570_v57 = vpop.f32.mrf.mxu3  ;;  %v665_v60 = vpop.f32.mrf.mxu0  ;;  %v594_v9 = vadd.f32 %v593_v62, %v562_v4 }
  0xfa   : > { %v666_v6 = vadd.f32 %v1311_v34, %v665_v60  ;;  %v571_v48 = vadd.f32 %v570_v57, %v539_v41 }
  0xfb   : > { %v606_v17 = vmax.f32 %v594_v9, 0.0 }
  0xfd   : > { %v694_v63 = vpop.f32.mrf.mxu1  ;;  %v611_v21 = vmax.f32 %v1321_v25, %v606_v17 }
  0xfe   : > { %v695_v1 = vadd.f32 %v694_v63, %v663_v59 }
 0x100   : > { %v596_v11 = vpop.f32.mrf.mxu2 }
 0x101   : > { %v726_v3 = vpop.f32.mrf.mxu3  ;;  %v668_v7 = vpop.f32.mrf.mxu0  ;;  %v597_v22 = vadd.f32 %v596_v11, %v565_v18 }
 0x102   : > { %v727_v5 = vadd.f32 %v726_v3, %v695_v1  ;;  %v669_v20 = vadd.f32 %v1311_v34, %v668_v7 }
 0x103   : > { %v607_v31 = vmax.f32 %v597_v22, 0.0 }
 0x104   : > { %v741_v10 = vmax.f32 %v727_v5, 0.0 }
 0x105   : > { %v697_v12 = vpop.f32.mrf.mxu1  ;;  %v612_v25 = vmax.f32 %v1325_v37, %v607_v31 }
 0x106   : > { %v746_v14 = vmax.f32 %v610_v8, %v741_v10  ;;  %v698_v16 = vadd.f32 %v697_v12, %v666_v6 }
 0x108   : > { %752 = vst.msk [vmem:[%s1339_s21] sm:$0xff] %vm751_vm1, %v746_v14  ;;  %v599_v30 = vpop.f32.mrf.mxu2 }
 0x109   : > { %v729_v15 = vpop.f32.mrf.mxu3  ;;  %v671_v26 = vpop.f32.mrf.mxu0  ;;  %v600_v38 = vadd.f32 %v599_v30, %v568_v33 }
 0x10a   : > { %v730_v19 = vadd.f32 %v729_v15, %v698_v16  ;;  %v672_v36 = vadd.f32 %v1311_v34, %v671_v26 }
 0x10b   : > { %v608_v45 = vmax.f32 %v600_v38, 0.0 }
 0x10c   : > { %v742_v23 = vmax.f32 %v730_v19, 0.0 }
 0x10d   : > { %v700_v24 = vpop.f32.mrf.mxu1  ;;  %v613_v37 = vmax.f32 %v1329_v51, %v608_v45 }
 0x10e   : > { %v747_v28 = vmax.f32 %v611_v21, %v742_v23  ;;  %v701_v29 = vadd.f32 %v700_v24, %v669_v20 }
 0x110   : > { %753 = vst.msk [vmem:[%s1339_s21 + $0x8] sm:$0xff] %vm751_vm1, %v747_v28  ;;  %v602_v46 = vpop.f32.mrf.mxu2 }
 0x111   : > { %v732_v32 = vpop.f32.mrf.mxu3  ;;  %v674_v44 = vpop.f32.mrf.mxu0  ;;  %v603_v53 = vadd.f32 %v602_v46, %v571_v48 }
 0x112   : > { %v733_v35 = vadd.f32 %v732_v32, %v701_v29  ;;  %v675_v52 = vadd.f32 %v1311_v34, %v674_v44 }
 0x113   : > { %v609_v59 = vmax.f32 %v603_v53, 0.0 }
 0x114   : > { %v743_v39 = vmax.f32 %v733_v35, 0.0 }
 0x115   : > { %v703_v40 = vpop.f32.mrf.mxu1  ;;  %v614_v61 = vmax.f32 %v1327_v50, %v609_v59 }
 0x116   : > { %v748_v42 = vmax.f32 %v612_v25, %v743_v39  ;;  %v704_v43 = vadd.f32 %v703_v40, %v672_v36 }
 0x118   : > { %754 = vst.msk [vmem:[%s1339_s21 + $0x10] sm:$0xff] %vm751_vm1, %v748_v42 }
 0x119   : > { %v735_v47 = vpop.f32.mrf.mxu3 }
 0x11a   : > { %v736_v49 = vadd.f32 %v735_v47, %v704_v43 }
 0x11c   : > { %v744_v54 = vmax.f32 %v736_v49, 0.0 }
 0x11d   : > { %v706_v56 = vpop.f32.mrf.mxu1 }
 0x11e   : > { %v749_v55 = vmax.f32 %v613_v37, %v744_v54  ;;  %v707_v58 = vadd.f32 %v706_v56, %v675_v52 }
 0x120   : > { %755 = vst.msk [vmem:[%s1339_s21 + $0x18] sm:$0xff] %vm751_vm1, %v749_v55 }
 0x121   : > { %v738_v60 = vpop.f32.mrf.mxu3 }
 0x122   : > { %v739_v62 = vadd.f32 %v738_v60, %v707_v58 }
 0x124   : > { %v745_v63 = vmax.f32 %v739_v62, 0.0 }
 0x126   : > { %v750_v57 = vmax.f32 %v614_v61, %v745_v63 }
 0x128   : > { %756 = vst.msk [vmem:[%s1339_s21 + $0x20] sm:$0xff] %vm751_vm1, %v750_v57 }
 0x129 PF: > { %s13_s12 = sadd.s32 1, %s862_s12  }
 0x12a   : > { %p10_p4 = scmp.ge.s32.totalorder %s13_s12, 4  }
 0x12c   :  { %12 = sbr.rel (!%p10_p4) target bundleno = 1 (0x1), region = 62 }

// kernel: network_forward.5
= control target key start
LH: loop header
LB: loop body
LE: loop exit
PB: predicated region body
PF: predicated region fallthrough
CT: control target
= control target key end

     0   :  { %s1813_s0 = inlined_call_operand.vmem [shape: f32[2,2304], index: 0, kind: input, shape index: {}]   ;;  %s1814_s1 = inlined_call_operand.vmem [shape: f32[2304,128], index: 1, kind: input, shape index: {}]   ;;  %s1815_s2 = inlined_call_operand.vmem [shape: f32[1,128], index: 2, kind: input, shape index: {}]   ;;  %s1816_s3 = inlined_call_operand.vmem [shape: f32[128,10], index: 3, kind: input, shape index: {}]   ;;  %s1817_s4 = inlined_call_operand.vmem [shape: f32[1,10], index: 4, kind: input, shape index: {}]   ;;  %s1818_s5 = inlined_call_operand.hbm [shape: f32[2,10], index: 5, kind: output, shape index: {}]  }
   0x1   :  { %v41_v0 = vld [vmem:[%s1814_s1 + $0x78] sm:$0xff]  ;;  %v40_v2 = vld [vmem:[%s1814_s1 + $0x70] sm:$0xff]  ;;  %v39_v6 = vld [vmem:[%s1814_s1 + $0x68] sm:$0xff] }
   0x2   :  { %v73_v1 = vld [vmem:[%s1814_s1 + $0x178] sm:$0xff]  ;;  %365 = vmatpush.msra.mxu0 %v41_v0  ;;  %v72_v4 = vld [vmem:[%s1814_s1 + $0x170] sm:$0xff]  ;;  %v71_v8 = vld [vmem:[%s1814_s1 + $0x168] sm:$0xff] }
   0x3   :  { %405 = vmatpush.msra.mxu2 %v73_v1  ;;  %v57_v3 = vld [vmem:[%s1814_s1 + $0xf8] sm:$0xff]  ;;  %v56_v7 = vld [vmem:[%s1814_s1 + $0xf0] sm:$0xff]  ;;  %v55_v10 = vld [vmem:[%s1814_s1 + $0xe8] sm:$0xff] }
   0x4   :  { %v89_v5 = vld [vmem:[%s1814_s1 + $0x1f8] sm:$0xff]  ;;  %385 = vmatpush.msra.mxu1 %v57_v3  ;;  %366 = vmatpush.msra.mxu0 %v40_v2  ;;  %v88_v9 = vld [vmem:[%s1814_s1 + $0x1f0] sm:$0xff]  ;;  %v38_v11 = vld [vmem:[%s1814_s1 + $0x60] sm:$0xff] }
   0x5   :  { %425 = vmatpush.msra.mxu3 %v89_v5  ;;  %406 = vmatpush.msra.mxu2 %v72_v4  ;;  %v70_v12 = vld [vmem:[%s1814_s1 + $0x160] sm:$0xff]  ;;  %v87_v13 = vld [vmem:[%s1814_s1 + $0x1e8] sm:$0xff]  ;;  %v37_v16 = vld [vmem:[%s1814_s1 + $0x58] sm:$0xff] }
   0x6   :  { %386 = vmatpush.msra.mxu1 %v56_v7  ;;  %367 = vmatpush.msra.mxu0 %v39_v6  ;;  %v54_v14 = vld [vmem:[%s1814_s1 + $0xe0] sm:$0xff]  ;;  %v69_v17 = vld [vmem:[%s1814_s1 + $0x158] sm:$0xff]  ;;  %v36_v20 = vld [vmem:[%s1814_s1 + $0x50] sm:$0xff] }
   0x7   :  { %426 = vmatpush.msra.mxu3 %v88_v9  ;;  %407 = vmatpush.msra.mxu2 %v71_v8  ;;  %v86_v15 = vld [vmem:[%s1814_s1 + $0x1e0] sm:$0xff]  ;;  %v53_v18 = vld [vmem:[%s1814_s1 + $0xd8] sm:$0xff]  ;;  %v68_v21 = vld [vmem:[%s1814_s1 + $0x150] sm:$0xff] }
   0x8   :  { %387 = vmatpush.msra.mxu1 %v55_v10  ;;  %368 = vmatpush.msra.mxu0 %v38_v11  ;;  %v85_v19 = vld [vmem:[%s1814_s1 + $0x1d8] sm:$0xff]  ;;  %v52_v22 = vld [vmem:[%s1814_s1 + $0xd0] sm:$0xff]  ;;  %v35_v24 = vld [vmem:[%s1814_s1 + $0x48] sm:$0xff] }
   0x9   :  { %427 = vmatpush.msra.mxu3 %v87_v13  ;;  %408 = vmatpush.msra.mxu2 %v70_v12  ;;  %v84_v23 = vld [vmem:[%s1814_s1 + $0x1d0] sm:$0xff]  ;;  %v67_v25 = vld [vmem:[%s1814_s1 + $0x148] sm:$0xff]  ;;  %v34_v28 = vld [vmem:[%s1814_s1 + $0x40] sm:$0xff] }
   0xa   :  { %388 = vmatpush.msra.mxu1 %v54_v14  ;;  %369 = vmatpush.msra.mxu0 %v37_v16  ;;  %v51_v26 = vld [vmem:[%s1814_s1 + $0xc8] sm:$0xff]  ;;  %v66_v29 = vld [vmem:[%s1814_s1 + $0x140] sm:$0xff]  ;;  %v33_v32 = vld [vmem:[%s1814_s1 + $0x38] sm:$0xff] }
   0xb   :  { %428 = vmatpush.msra.mxu3 %v86_v15  ;;  %409 = vmatpush.msra.mxu2 %v69_v17  ;;  %v83_v27 = vld [vmem:[%s1814_s1 + $0x1c8] sm:$0xff]  ;;  %v50_v30 = vld [vmem:[%s1814_s1 + $0xc0] sm:$0xff]  ;;  %v65_v33 = vld [vmem:[%s1814_s1 + $0x138] sm:$0xff] }
   0xc   :  { %389 = vmatpush.msra.mxu1 %v53_v18  ;;  %370 = vmatpush.msra.mxu0 %v36_v20  ;;  %v82_v31 = vld [vmem:[%s1814_s1 + $0x1c0] sm:$0xff]  ;;  %v49_v34 = vld [vmem:[%s1814_s1 + $0xb8] sm:$0xff]  ;;  %v32_v36 = vld [vmem:[%s1814_s1 + $0x30] sm:$0xff] }
   0xd   :  { %429 = vmatpush.msra.mxu3 %v85_v19  ;;  %410 = vmatpush.msra.mxu2 %v68_v21  ;;  %v81_v35 = vld [vmem:[%s1814_s1 + $0x1b8] sm:$0xff]  ;;  %v64_v37 = vld [vmem:[%s1814_s1 + $0x130] sm:$0xff]  ;;  %v31_v40 = vld [vmem:[%s1814_s1 + $0x28] sm:$0xff] }
   0xe   :  { %390 = vmatpush.msra.mxu1 %v52_v22  ;;  %371 = vmatpush.msra.mxu0 %v35_v24  ;;  %v48_v38 = vld [vmem:[%s1814_s1 + $0xb0] sm:$0xff]  ;;  %v63_v41 = vld [vmem:[%s1814_s1 + $0x128] sm:$0xff]  ;;  %v30_v44 = vld [vmem:[%s1814_s1 + $0x20] sm:$0xff] }
   0xf   :  { %430 = vmatpush.msra.mxu3 %v84_v23  ;;  %411 = vmatpush.msra.mxu2 %v67_v25  ;;  %v80_v39 = vld [vmem:[%s1814_s1 + $0x1b0] sm:$0xff]  ;;  %v47_v42 = vld [vmem:[%s1814_s1 + $0xa8] sm:$0xff]  ;;  %v62_v45 = vld [vmem:[%s1814_s1 + $0x120] sm:$0xff] }
  0x10   :  { %391 = vmatpush.msra.mxu1 %v51_v26  ;;  %372 = vmatpush.msra.mxu0 %v34_v28  ;;  %v79_v43 = vld [vmem:[%s1814_s1 + $0x1a8] sm:$0xff]  ;;  %v46_v46 = vld [vmem:[%s1814_s1 + $0xa0] sm:$0xff]  ;;  %v29_v48 = vld [vmem:[%s1814_s1 + $0x18] sm:$0xff] }
  0x11   :  { %431 = vmatpush.msra.mxu3 %v83_v27  ;;  %412 = vmatpush.msra.mxu2 %v66_v29  ;;  %v78_v47 = vld [vmem:[%s1814_s1 + $0x1a0] sm:$0xff]  ;;  %v61_v49 = vld [vmem:[%s1814_s1 + $0x118] sm:$0xff]  ;;  %v28_v52 = vld [vmem:[%s1814_s1 + $0x10] sm:$0xff] }
  0x12   :  { %392 = vmatpush.msra.mxu1 %v50_v30  ;;  %373 = vmatpush.msra.mxu0 %v33_v32  ;;  %v45_v50 = vld [vmem:[%s1814_s1 + $0x98] sm:$0xff]  ;;  %v60_v53 = vld [vmem:[%s1814_s1 + $0x110] sm:$0xff]  ;;  %v27_v56 = vld [vmem:[%s1814_s1 + $0x8] sm:$0xff] }
  0x13   :  { %432 = vmatpush.msra.mxu3 %v82_v31  ;;  %413 = vmatpush.msra.mxu2 %v65_v33  ;;  %v77_v51 = vld [vmem:[%s1814_s1 + $0x198] sm:$0xff]  ;;  %v44_v54 = vld [vmem:[%s1814_s1 + $0x90] sm:$0xff]  ;;  %v59_v57 = vld [vmem:[%s1814_s1 + $0x108] sm:$0xff] }
  0x14   :  { %393 = vmatpush.msra.mxu1 %v49_v34  ;;  %374 = vmatpush.msra.mxu0 %v32_v36  ;;  %v76_v55 = vld [vmem:[%s1814_s1 + $0x190] sm:$0xff]  ;;  %v43_v58 = vld [vmem:[%s1814_s1 + $0x88] sm:$0xff]  ;;  %v26_v60 = vld [vmem:[%s1814_s1] sm:$0xff] }
  0x15   :  { %433 = vmatpush.msra.mxu3 %v81_v35  ;;  %414 = vmatpush.msra.mxu2 %v64_v37  ;;  %v75_v59 = vld [vmem:[%s1814_s1 + $0x188] sm:$0xff]  ;;  %v58_v61 = vld [vmem:[%s1814_s1 + $0x100] sm:$0xff]  ;;  %v105_v62 = vld [vmem:[%s1814_s1 + $0x278] sm:$0xff] }
  0x16   :  { %394 = vmatpush.msra.mxu1 %v48_v38  ;;  %375 = vmatpush.msra.mxu0 %v31_v40  ;;  %v137_v63 = vld [vmem:[%s1814_s1 + $0x378] sm:$0xff]  ;;  %v42_v0 = vld [vmem:[%s1814_s1 + $0x80] sm:$0xff]  ;;  %v104_v2 = vld [vmem:[%s1814_s1 + $0x270] sm:$0xff] }
  0x17   :  { %434 = vmatpush.msra.mxu3 %v80_v39  ;;  %415 = vmatpush.msra.mxu2 %v63_v41  ;;  %v74_v1 = vld [vmem:[%s1814_s1 + $0x180] sm:$0xff]  ;;  %v121_v3 = vld [vmem:[%s1814_s1 + $0x2f8] sm:$0xff]  ;;  %v136_v4 = vld [vmem:[%s1814_s1 + $0x370] sm:$0xff] }
  0x18   :  { %395 = vmatpush.msra.mxu1 %v47_v42  ;;  %376 = vmatpush.msra.mxu0 %v30_v44  ;;  %v153_v5 = vld [vmem:[%s1814_s1 + $0x3f8] sm:$0xff]  ;;  %v103_v6 = vld [vmem:[%s1814_s1 + $0x268] sm:$0xff]  ;;  %v120_v7 = vld [vmem:[%s1814_s1 + $0x2f0] sm:$0xff] }
  0x19   :  { %435 = vmatpush.msra.mxu3 %v79_v43  ;;  %416 = vmatpush.msra.mxu2 %v62_v45  ;;  %v135_v8 = vld [vmem:[%s1814_s1 + $0x368] sm:$0xff]  ;;  %v152_v9 = vld [vmem:[%s1814_s1 + $0x3f0] sm:$0xff]  ;;  %v102_v10 = vld [vmem:[%s1814_s1 + $0x260] sm:$0xff] }
  0x1a   :  { %396 = vmatpush.msra.mxu1 %v46_v46  ;;  %377 = vmatpush.msra.mxu0 %v29_v48  ;;  %v119_v11 = vld [vmem:[%s1814_s1 + $0x2e8] sm:$0xff]  ;;  %v134_v12 = vld [vmem:[%s1814_s1 + $0x360] sm:$0xff]  ;;  %v101_v14 = vld [vmem:[%s1814_s1 + $0x258] sm:$0xff] }
  0x1b   :  { %436 = vmatpush.msra.mxu3 %v78_v47  ;;  %417 = vmatpush.msra.mxu2 %v61_v49  ;;  %v151_v13 = vld [vmem:[%s1814_s1 + $0x3e8] sm:$0xff]  ;;  %v118_v15 = vld [vmem:[%s1814_s1 + $0x2e0] sm:$0xff]  ;;  %v133_v16 = vld [vmem:[%s1814_s1 + $0x358] sm:$0xff] }
  0x1c   :  { %397 = vmatpush.msra.mxu1 %v45_v50  ;;  %378 = vmatpush.msra.mxu0 %v28_v52  ;;  %v150_v17 = vld [vmem:[%s1814_s1 + $0x3e0] sm:$0xff]  ;;  %v100_v18 = vld [vmem:[%s1814_s1 + $0x250] sm:$0xff]  ;;  %v117_v19 = vld [vmem:[%s1814_s1 + $0x2d8] sm:$0xff] }
  0x1d   :  { %437 = vmatpush.msra.mxu3 %v77_v51  ;;  %418 = vmatpush.msra.mxu2 %v60_v53  ;;  %v132_v20 = vld [vmem:[%s1814_s1 + $0x350] sm:$0xff]  ;;  %v149_v21 = vld [vmem:[%s1814_s1 + $0x3d8] sm:$0xff]  ;;  %v21_v22 = vld [vmem:[%s1813_s0] sm:$0xff] }
  0x1e   :  { %398 = vmatpush.msra.mxu1 %v44_v54  ;;  %379 = vmatpush.msra.mxu0 %v27_v56  ;;  %v99_v23 = vld [vmem:[%s1814_s1 + $0x248] sm:$0xff]  ;;  %v116_v24 = vld [vmem:[%s1814_s1 + $0x2d0] sm:$0xff]  ;;  %323 = vst [vmem:[#allocation1] ss:$4 sm:$0xff] %v21_v22  ;;  %v98_v27 = vld [vmem:[%s1814_s1 + $0x240] sm:$0xff] }
  0x1f   :  { %438 = vmatpush.msra.mxu3 %v76_v55  ;;  %419 = vmatpush.msra.mxu2 %v59_v57  ;;  %v131_v25 = vld [vmem:[%s1814_s1 + $0x348] sm:$0xff]  ;;  %v148_v26 = vld [vmem:[%s1814_s1 + $0x3d0] sm:$0xff]  ;;  %v130_v29 = vld [vmem:[%s1814_s1 + $0x340] sm:$0xff] }
  0x20   :  { %399 = vmatpush.msra.mxu1 %v43_v58  ;;  %380 = vmatpush.msra.mxu0 %v26_v60  ;;  %v115_v28 = vld [vmem:[%s1814_s1 + $0x2c8] sm:$0xff]  ;;  %v97_v31 = vld [vmem:[%s1814_s1 + $0x238] sm:$0xff]  ;;  %v114_v32 = vld [vmem:[%s1814_s1 + $0x2c0] sm:$0xff] }
  0x21   :  { %439 = vmatpush.msra.mxu3 %v75_v59  ;;  %420 = vmatpush.msra.mxu2 %v58_v61  ;;  %v147_v30 = vld [vmem:[%s1814_s1 + $0x3c8] sm:$0xff]  ;;  %v129_v33 = vld [vmem:[%s1814_s1 + $0x338] sm:$0xff]  ;;  %v146_v34 = vld [vmem:[%s1814_s1 + $0x3c0] sm:$0xff] }
  0x22   :  { %445 = vmatpush.msrb.mxu0 %v105_v62  ;;  %400 = vmatpush.msra.mxu1 %v42_v0  ;;  %v96_v35 = vld [vmem:[%s1814_s1 + $0x230] sm:$0xff]  ;;  %v113_v36 = vld [vmem:[%s1814_s1 + $0x2b8] sm:$0xff]  ;;  %v22_v39 = vld [vmem:[%s1813_s0 + $0x8] sm:$0xff] }
  0x23   :  { %485 = vmatpush.msrb.mxu2 %v137_v63  ;;  %440 = vmatpush.msra.mxu3 %v74_v1  ;;  %v128_v37 = vld [vmem:[%s1814_s1 + $0x330] sm:$0xff]  ;;  %v145_v38 = vld [vmem:[%s1814_s1 + $0x3b8] sm:$0xff]  ;;  %v95_v40 = vld [vmem:[%s1814_s1 + $0x228] sm:$0xff]  ;;  %325 = vst [vmem:[#allocation1 + $0x20] ss:$4 sm:$0xff] %v22_v39 }
  0x24   :  { %446 = vmatpush.msrb.mxu0 %v104_v2  ;;  %465 = vmatpush.msrb.mxu1 %v121_v3  ;;  %v112_v41 = vld [vmem:[%s1814_s1 + $0x2b0] sm:$0xff]  ;;  %v127_v43 = vld [vmem:[%s1814_s1 + $0x328] sm:$0xff]  ;;  %v94_v49 = vld [vmem:[%s1814_s1 + $0x220] sm:$0xff] }
  0x25   :  { %486 = vmatpush.msrb.mxu2 %v136_v4  ;;  %505 = vmatpush.msrb.mxu3 %v153_v5  ;;  %v23_v42 = vld [vmem:[%s1813_s0 + $0x10] sm:$0xff]  ;;  %v1168_v45 = vld.sshfl [vmem:[#allocation1] sm:$0xff pattern:$0x73625140]  ;;  %v111_v50 = vld [vmem:[%s1814_s1 + $0x2a8] sm:$0xff] }
  0x26   :  { %447 = vmatpush.msrb.mxu0 %v103_v6  ;;  %466 = vmatpush.msrb.mxu1 %v120_v7  ;;  %v328_v44 = vld.sshfl [vmem:[#allocation1 + $0x10] sm:$0xff pattern:$0x73625140]  ;;  %v1170_v46 = vld.sshfl [vmem:[#allocation1 + $0x18] sm:$0xff pattern:$0x73625140] }
  0x27   :  { %487 = vmatpush.msrb.mxu2 %v135_v8  ;;  %506 = vmatpush.msrb.mxu3 %v152_v9  ;;  %v1172_v47 = vld.sshfl [vmem:[#allocation1 + $0x8] sm:$0xff pattern:$0x73625140]  ;;  %v144_v48 = vld [vmem:[%s1814_s1 + $0x3b0] sm:$0xff]  ;;  %v126_v51 = vld [vmem:[%s1814_s1 + $0x320] sm:$0xff] }
  0x28   :  { %448 = vmatpush.msrb.mxu0 %v102_v10  ;;  %467 = vmatpush.msrb.mxu1 %v119_v11  ;;  %334 = vst [vmem:[#allocation1] ss:$4 sm:$0xff] %v23_v42  ;;  %v143_v52 = vld [vmem:[%s1814_s1 + $0x3a8] sm:$0xff]  ;;  %v93_v53 = vld [vmem:[%s1814_s1 + $0x218] sm:$0xff]  ;;  %v110_v54 = vld [vmem:[%s1814_s1 + $0x2a0] sm:$0xff] }
  0x29   :  { %488 = vmatpush.msrb.mxu2 %v134_v12  ;;  %507 = vmatpush.msrb.mxu3 %v151_v13  ;;  %v125_v55 = vld [vmem:[%s1814_s1 + $0x318] sm:$0xff]  ;;  %v142_v56 = vld [vmem:[%s1814_s1 + $0x3a0] sm:$0xff]  ;;  %v92_v57 = vld [vmem:[%s1814_s1 + $0x210] sm:$0xff] }
  0x2a   :  { %449 = vmatpush.msrb.mxu0 %v101_v14  ;;  %468 = vmatpush.msrb.mxu1 %v118_v15  ;;  %v109_v58 = vld [vmem:[%s1814_s1 + $0x298] sm:$0xff]  ;;  %v1210_v60 = vld.sshfl [vmem:[#allocation1 + $0x30] sm:$0xff pattern:$0x73625140]  ;;  %v91_v2 = vld [vmem:[%s1814_s1 + $0x208] sm:$0xff] }
  0x2b   :  { %489 = vmatpush.msrb.mxu2 %v133_v16  ;;  %508 = vmatpush.msrb.mxu3 %v150_v17  ;;  %v24_v59 = vld [vmem:[%s1813_s0 + $0x18] sm:$0xff]  ;;  %v1212_v61 = vld.sshfl [vmem:[#allocation1 + $0x20] sm:$0xff pattern:$0x73625140]  ;;  %v124_v0 = vld [vmem:[%s1814_s1 + $0x310] sm:$0xff] }
  0x2c   :  { %450 = vmatpush.msrb.mxu0 %v100_v18  ;;  %469 = vmatpush.msrb.mxu1 %v117_v19  ;;  %v1214_v62 = vld.sshfl [vmem:[#allocation1 + $0x38] sm:$0xff pattern:$0x73625140]  ;;  %v1216_v63 = vld.sshfl [vmem:[#allocation1 + $0x28] sm:$0xff pattern:$0x73625140] }
  0x2d   :  { %490 = vmatpush.msrb.mxu2 %v132_v20  ;;  %509 = vmatpush.msrb.mxu3 %v149_v21  ;;  %v141_v1 = vld [vmem:[%s1814_s1 + $0x398] sm:$0xff]  ;;  %335 = vst [vmem:[#allocation1 + $0x20] ss:$4 sm:$0xff] %v24_v59  ;;  %v108_v3 = vld [vmem:[%s1814_s1 + $0x290] sm:$0xff]  ;;  %v123_v4 = vld [vmem:[%s1814_s1 + $0x308] sm:$0xff] }
  0x2e   :  { %451 = vmatpush.msrb.mxu0 %v99_v23  ;;  %470 = vmatpush.msrb.mxu1 %v116_v24  ;;  %v140_v5 = vld [vmem:[%s1814_s1 + $0x390] sm:$0xff]  ;;  %v90_v6 = vld [vmem:[%s1814_s1 + $0x200] sm:$0xff]  ;;  %v107_v7 = vld [vmem:[%s1814_s1 + $0x288] sm:$0xff] }
  0x2f   :  { %491 = vmatpush.msrb.mxu2 %v131_v25  ;;  %510 = vmatpush.msrb.mxu3 %v148_v26  ;;  %v122_v8 = vld [vmem:[%s1814_s1 + $0x300] sm:$0xff]  ;;  %v139_v9 = vld [vmem:[%s1814_s1 + $0x388] sm:$0xff]  ;;  %v169_v10 = vld [vmem:[%s1814_s1 + $0x478] sm:$0xff] }
  0x30   :  { %452 = vmatpush.msrb.mxu0 %v98_v27  ;;  %471 = vmatpush.msrb.mxu1 %v115_v28  ;;  %v201_v11 = vld [vmem:[%s1814_s1 + $0x578] sm:$0xff]  ;;  %v106_v12 = vld [vmem:[%s1814_s1 + $0x280] sm:$0xff]  ;;  %v168_v14 = vld [vmem:[%s1814_s1 + $0x470] sm:$0xff] }
  0x31   :  { %492 = vmatpush.msrb.mxu2 %v130_v29  ;;  %511 = vmatpush.msrb.mxu3 %v147_v30  ;;  %v138_v13 = vld [vmem:[%s1814_s1 + $0x380] sm:$0xff]  ;;  %v185_v15 = vld [vmem:[%s1814_s1 + $0x4f8] sm:$0xff]  ;;  %v200_v16 = vld [vmem:[%s1814_s1 + $0x570] sm:$0xff] }
  0x32   :  { %453 = vmatpush.msrb.mxu0 %v97_v31  ;;  %472 = vmatpush.msrb.mxu1 %v114_v32  ;;  %v217_v17 = vld [vmem:[%s1814_s1 + $0x5f8] sm:$0xff]  ;;  %v167_v18 = vld [vmem:[%s1814_s1 + $0x468] sm:$0xff]  ;;  %v184_v19 = vld [vmem:[%s1814_s1 + $0x4f0] sm:$0xff] }
  0x33   :  { %493 = vmatpush.msrb.mxu2 %v129_v33  ;;  %512 = vmatpush.msrb.mxu3 %v146_v34  ;;  %v199_v20 = vld [vmem:[%s1814_s1 + $0x568] sm:$0xff]  ;;  %v216_v21 = vld [vmem:[%s1814_s1 + $0x5f0] sm:$0xff]  ;;  %v166_v22 = vld [vmem:[%s1814_s1 + $0x460] sm:$0xff] }
  0x34   :  { %454 = vmatpush.msrb.mxu0 %v96_v35  ;;  %473 = vmatpush.msrb.mxu1 %v113_v36  ;;  %v183_v23 = vld [vmem:[%s1814_s1 + $0x4e8] sm:$0xff]  ;;  %v198_v24 = vld [vmem:[%s1814_s1 + $0x560] sm:$0xff]  ;;  %v1298_v26 = vld.sshfl [vmem:[#allocation1 + $0x10] sm:$0xff pattern:$0x73625140] }
  0x35   :  { %494 = vmatpush.msrb.mxu2 %v128_v37  ;;  %513 = vmatpush.msrb.mxu3 %v145_v38  ;;  %v1296_v25 = vld.sshfl [vmem:[#allocation1] sm:$0xff pattern:$0x73625140]  ;;  %v1300_v27 = vld.sshfl [vmem:[#allocation1 + $0x8] sm:$0xff pattern:$0x73625140] }
  0x36   :  { %455 = vmatpush.msrb.mxu0 %v95_v40  ;;  %474 = vmatpush.msrb.mxu1 %v112_v41  ;;  %v215_v28 = vld [vmem:[%s1814_s1 + $0x5e8] sm:$0xff]  ;;  %v25_v29 = vld [vmem:[%s1813_s0 + $0x20] sm:$0xf]  ;;  %v1308_v30 = vld.sshfl [vmem:[#allocation1 + $0x18] sm:$0xff pattern:$0x73625140] }
  0x37   :  { %495 = vmatpush.msrb.mxu2 %v127_v43  ;;  %514 = vmatpush.msrb.mxu3 %v144_v48  ;;  %v165_v31 = vld [vmem:[%s1814_s1 + $0x458] sm:$0xff]  ;;  %v182_v32 = vld [vmem:[%s1814_s1 + $0x4e0] sm:$0xff]  ;;  %344 = vst [vmem:[#allocation1] ss:$4 sm:$0xff] %v25_v29  ;;  %v164_v35 = vld [vmem:[%s1814_s1 + $0x450] sm:$0xff] }
  0x38   :  { %456 = vmatpush.msrb.mxu0 %v94_v49  ;;  %475 = vmatpush.msrb.mxu1 %v111_v50  ;;  %v197_v33 = vld [vmem:[%s1814_s1 + $0x558] sm:$0xff]  ;;  %v214_v34 = vld [vmem:[%s1814_s1 + $0x5e0] sm:$0xff] }
  0x39   :  { %496 = vmatpush.msrb.mxu2 %v126_v51  ;;  %515 = vmatpush.msrb.mxu3 %v143_v52  ;;  %v181_v36 = vld [vmem:[%s1814_s1 + $0x4d8] sm:$0xff] }
  0x3a   :  { %457 = vmatpush.msrb.mxu0 %v93_v53  ;;  %476 = vmatpush.msrb.mxu1 %v110_v54 }
  0x3b   :  { %497 = vmatpush.msrb.mxu2 %v125_v55  ;;  %516 = vmatpush.msrb.mxu3 %v142_v56 }
  0x3c   :  { %458 = vmatpush.msrb.mxu0 %v92_v57  ;;  %477 = vmatpush.msrb.mxu1 %v109_v58 }
  0x3d   :  { %498 = vmatpush.msrb.mxu2 %v124_v0  ;;  %517 = vmatpush.msrb.mxu3 %v141_v1 }
  0x3e   :  { %459 = vmatpush.msrb.mxu0 %v91_v2  ;;  %478 = vmatpush.msrb.mxu1 %v108_v3 }
  0x3f   :  { %499 = vmatpush.msrb.mxu2 %v123_v4  ;;  %518 = vmatpush.msrb.mxu3 %v140_v5 }
  0x40   :  { %421 = vmatmul.f32.vlgmr.msra.gmra.mxu2 %v328_v44  ;;  %460 = vmatpush.msrb.mxu0 %v90_v6 }
  0x41   :  { %479 = vmatpush.msrb.mxu1 %v107_v7  ;;  %500 = vmatpush.msrb.mxu2 %v122_v8 }
  0x42   :  { %519 = vmatpush.msrb.mxu3 %v139_v9  ;;  %381 = vmatmul.f32.vlgmr.msra.gmra.mxu0 %v1168_v45 }
  0x43   :  { %441 = vmatmul.f32.vlgmr.msra.gmra.mxu3 %v1170_v46  ;;  %525 = vmatpush.msra.mxu0 %v169_v10 }
  0x44   :  { %565 = vmatpush.msra.mxu2 %v201_v11  ;;  %480 = vmatpush.msrb.mxu1 %v106_v12 }
  0x45   :  { %520 = vmatpush.msrb.mxu3 %v138_v13  ;;  %401 = vmatmul.f32.vlgmr.msra.gmra.mxu1 %v1172_v47 }
  0x46   :  { %526 = vmatpush.msra.mxu0 %v168_v14  ;;  %545 = vmatpush.msra.mxu1 %v185_v15 }
  0x47   :  { %566 = vmatpush.msra.mxu2 %v200_v16  ;;  %585 = vmatpush.msra.mxu3 %v217_v17 }
  0x48   :  { %527 = vmatpush.msra.mxu0 %v167_v18  ;;  %546 = vmatpush.msra.mxu1 %v184_v19 }
  0x49   :  { %567 = vmatpush.msra.mxu2 %v199_v20  ;;  %586 = vmatpush.msra.mxu3 %v216_v21 }
  0x4a   :  { %501 = vmatmul.f32.vlgmr.msrb.gmra.mxu2 %v1210_v60  ;;  %528 = vmatpush.msra.mxu0 %v166_v22 }
  0x4b   :  { %547 = vmatpush.msra.mxu1 %v183_v23  ;;  %568 = vmatpush.msra.mxu2 %v198_v24 }
  0x4c   :  { %587 = vmatpush.msra.mxu3 %v215_v28  ;;  %461 = vmatmul.f32.vlgmr.msrb.gmra.mxu0 %v1212_v61 }
  0x4d   :  { %521 = vmatmul.f32.vlgmr.msrb.gmra.mxu3 %v1214_v62  ;;  %529 = vmatpush.msra.mxu0 %v165_v31 }
  0x4e   :  { %10 = vsyncpa [#allocation3], 0  ;;  %548 = vmatpush.msra.mxu1 %v182_v32  ;;  %569 = vmatpush.msra.mxu2 %v197_v33  ;;  %v196_v37 = vld [vmem:[%s1814_s1 + $0x550] sm:$0xff]  ;;  %v213_v38 = vld [vmem:[%s1814_s1 + $0x5d8] sm:$0xff]  ;;  %s813_s23 = smov [#allocation2]   ;;  %s775_s26 = sshll.u32 %s1818_s5, 4  ;;  %s776_s26 = int_to_ptr.hbm [resolvable:$true] %s775_s26 }
  0x4f   :  { %588 = vmatpush.msra.mxu3 %v214_v34  ;;  %481 = vmatmul.f32.vlgmr.msrb.gmra.mxu1 %v1216_v63  ;;  %v163_v39 = vld [vmem:[%s1814_s1 + $0x448] sm:$0xff]  ;;  %v180_v40 = vld [vmem:[%s1814_s1 + $0x4d0] sm:$0xff]  ;;  %v162_v43 = vld [vmem:[%s1814_s1 + $0x440] sm:$0xff]  ;;  %s773_s24 = sshll.u32 %s813_s23, 4  ;;  %vm766_vm0 = vcmask 74752   ;;  %s774_s24 = int_to_ptr.vmem [resolvable:$true] %s773_s24 }
  0x50   :  { %530 = vmatpush.msra.mxu0 %v164_v35  ;;  %549 = vmatpush.msra.mxu1 %v181_v36  ;;  %v195_v41 = vld [vmem:[%s1814_s1 + $0x548] sm:$0xff]  ;;  %v212_v42 = vld [vmem:[%s1814_s1 + $0x5d0] sm:$0xff]  ;;  %v194_v45 = vld [vmem:[%s1814_s1 + $0x540] sm:$0xff] }
  0x51   :  { %570 = vmatpush.msra.mxu2 %v196_v37  ;;  %589 = vmatpush.msra.mxu3 %v213_v38  ;;  %v179_v44 = vld [vmem:[%s1814_s1 + $0x4c8] sm:$0xff]  ;;  %v161_v47 = vld [vmem:[%s1814_s1 + $0x438] sm:$0xff]  ;;  %v178_v48 = vld [vmem:[%s1814_s1 + $0x4c0] sm:$0xff] }
  0x52   :  { %531 = vmatpush.msra.mxu0 %v163_v39  ;;  %550 = vmatpush.msra.mxu1 %v180_v40  ;;  %v211_v46 = vld [vmem:[%s1814_s1 + $0x5c8] sm:$0xff]  ;;  %v193_v49 = vld [vmem:[%s1814_s1 + $0x538] sm:$0xff]  ;;  %v210_v50 = vld [vmem:[%s1814_s1 + $0x5c0] sm:$0xff] }
  0x53   :  { %571 = vmatpush.msra.mxu2 %v195_v41  ;;  %590 = vmatpush.msra.mxu3 %v212_v42  ;;  %v160_v51 = vld [vmem:[%s1814_s1 + $0x430] sm:$0xff]  ;;  %v177_v52 = vld [vmem:[%s1814_s1 + $0x4b8] sm:$0xff]  ;;  %v159_v55 = vld [vmem:[%s1814_s1 + $0x428] sm:$0xff] }
  0x54   :  { %532 = vmatpush.msra.mxu0 %v162_v43  ;;  %551 = vmatpush.msra.mxu1 %v179_v44  ;;  %v192_v53 = vld [vmem:[%s1814_s1 + $0x530] sm:$0xff]  ;;  %v209_v54 = vld [vmem:[%s1814_s1 + $0x5b8] sm:$0xff]  ;;  %v191_v57 = vld [vmem:[%s1814_s1 + $0x528] sm:$0xff] }
  0x55   :  { %572 = vmatpush.msra.mxu2 %v194_v45  ;;  %591 = vmatpush.msra.mxu3 %v211_v46  ;;  %v176_v56 = vld [vmem:[%s1814_s1 + $0x4b0] sm:$0xff]  ;;  %v158_v59 = vld [vmem:[%s1814_s1 + $0x420] sm:$0xff]  ;;  %v175_v60 = vld [vmem:[%s1814_s1 + $0x4a8] sm:$0xff] }
  0x56   :  { %533 = vmatpush.msra.mxu0 %v161_v47  ;;  %552 = vmatpush.msra.mxu1 %v178_v48  ;;  %v208_v58 = vld [vmem:[%s1814_s1 + $0x5b0] sm:$0xff]  ;;  %v190_v61 = vld [vmem:[%s1814_s1 + $0x520] sm:$0xff]  ;;  %v207_v62 = vld [vmem:[%s1814_s1 + $0x5a8] sm:$0xff] }
  0x57   :  { %573 = vmatpush.msra.mxu2 %v193_v49  ;;  %592 = vmatpush.msra.mxu3 %v210_v50  ;;  %v157_v63 = vld [vmem:[%s1814_s1 + $0x418] sm:$0xff]  ;;  %v174_v0 = vld [vmem:[%s1814_s1 + $0x4a0] sm:$0xff]  ;;  %v156_v3 = vld [vmem:[%s1814_s1 + $0x410] sm:$0xff] }
  0x58   :  { %534 = vmatpush.msra.mxu0 %v160_v51  ;;  %553 = vmatpush.msra.mxu1 %v177_v52  ;;  %v189_v1 = vld [vmem:[%s1814_s1 + $0x518] sm:$0xff]  ;;  %v206_v2 = vld [vmem:[%s1814_s1 + $0x5a0] sm:$0xff]  ;;  %v188_v5 = vld [vmem:[%s1814_s1 + $0x510] sm:$0xff] }
  0x59   :  { %574 = vmatpush.msra.mxu2 %v192_v53  ;;  %593 = vmatpush.msra.mxu3 %v209_v54  ;;  %v173_v4 = vld [vmem:[%s1814_s1 + $0x498] sm:$0xff]  ;;  %v155_v7 = vld [vmem:[%s1814_s1 + $0x408] sm:$0xff]  ;;  %v172_v8 = vld [vmem:[%s1814_s1 + $0x490] sm:$0xff] }
  0x5a   :  { %535 = vmatpush.msra.mxu0 %v159_v55  ;;  %554 = vmatpush.msra.mxu1 %v176_v56  ;;  %v205_v6 = vld [vmem:[%s1814_s1 + $0x598] sm:$0xff]  ;;  %v187_v9 = vld [vmem:[%s1814_s1 + $0x508] sm:$0xff]  ;;  %v204_v10 = vld [vmem:[%s1814_s1 + $0x590] sm:$0xff] }
  0x5b   :  { %575 = vmatpush.msra.mxu2 %v191_v57  ;;  %594 = vmatpush.msra.mxu3 %v208_v58  ;;  %v154_v11 = vld [vmem:[%s1814_s1 + $0x400] sm:$0xff]  ;;  %v171_v12 = vld [vmem:[%s1814_s1 + $0x488] sm:$0xff]  ;;  %v233_v15 = vld [vmem:[%s1814_s1 + $0x678] sm:$0xff] }
  0x5c   :  { %536 = vmatpush.msra.mxu0 %v158_v59  ;;  %555 = vmatpush.msra.mxu1 %v175_v60  ;;  %v186_v13 = vld [vmem:[%s1814_s1 + $0x500] sm:$0xff]  ;;  %v203_v14 = vld [vmem:[%s1814_s1 + $0x588] sm:$0xff]  ;;  %v265_v16 = vld [vmem:[%s1814_s1 + $0x778] sm:$0xff] }
  0x5d   :  { %576 = vmatpush.msra.mxu2 %v190_v61  ;;  %595 = vmatpush.msra.mxu3 %v207_v62  ;;  %v170_v17 = vld [vmem:[%s1814_s1 + $0x480] sm:$0xff]  ;;  %v232_v19 = vld [vmem:[%s1814_s1 + $0x670] sm:$0xff]  ;;  %v249_v20 = vld [vmem:[%s1814_s1 + $0x6f8] sm:$0xff] }
  0x5e   :  { %537 = vmatpush.msra.mxu0 %v157_v63  ;;  %556 = vmatpush.msra.mxu1 %v174_v0  ;;  %v202_v18 = vld [vmem:[%s1814_s1 + $0x580] sm:$0xff]  ;;  %v264_v21 = vld [vmem:[%s1814_s1 + $0x770] sm:$0xff]  ;;  %v281_v22 = vld [vmem:[%s1814_s1 + $0x7f8] sm:$0xff] }
  0x5f   :  { %577 = vmatpush.msra.mxu2 %v189_v1  ;;  %596 = vmatpush.msra.mxu3 %v206_v2  ;;  %v231_v23 = vld [vmem:[%s1814_s1 + $0x668] sm:$0xff]  ;;  %v248_v24 = vld [vmem:[%s1814_s1 + $0x6f0] sm:$0xff]  ;;  %v262_v29 = vld [vmem:[%s1814_s1 + $0x760] sm:$0xff] }
  0x60   :  { %538 = vmatpush.msra.mxu0 %v156_v3  ;;  %557 = vmatpush.msra.mxu1 %v173_v4  ;;  %v247_v28 = vld [vmem:[%s1814_s1 + $0x6e8] sm:$0xff]  ;;  %v229_v31 = vld [vmem:[%s1814_s1 + $0x658] sm:$0xff]  ;;  %v246_v32 = vld [vmem:[%s1814_s1 + $0x6e0] sm:$0xff] }
  0x61   :  { %578 = vmatpush.msra.mxu2 %v188_v5  ;;  %597 = vmatpush.msra.mxu3 %v205_v6  ;;  %v261_v33 = vld [vmem:[%s1814_s1 + $0x758] sm:$0xff]  ;;  %v278_v34 = vld [vmem:[%s1814_s1 + $0x7e0] sm:$0xff]  ;;  %v228_v35 = vld [vmem:[%s1814_s1 + $0x650] sm:$0xff] }
  0x62   :  { %539 = vmatpush.msra.mxu0 %v155_v7  ;;  %558 = vmatpush.msra.mxu1 %v172_v8  ;;  %v245_v36 = vld [vmem:[%s1814_s1 + $0x6d8] sm:$0xff]  ;;  %v260_v37 = vld [vmem:[%s1814_s1 + $0x750] sm:$0xff]  ;;  %v227_v39 = vld [vmem:[%s1814_s1 + $0x648] sm:$0xff] }
  0x63   :  { %579 = vmatpush.msra.mxu2 %v187_v9  ;;  %598 = vmatpush.msra.mxu3 %v204_v10  ;;  %v277_v38 = vld [vmem:[%s1814_s1 + $0x7d8] sm:$0xff]  ;;  %v244_v40 = vld [vmem:[%s1814_s1 + $0x6d0] sm:$0xff]  ;;  %v259_v41 = vld [vmem:[%s1814_s1 + $0x748] sm:$0xff] }
  0x64   :  { %540 = vmatpush.msra.mxu0 %v154_v11  ;;  %559 = vmatpush.msra.mxu1 %v171_v12  ;;  %v276_v42 = vld [vmem:[%s1814_s1 + $0x7d0] sm:$0xff]  ;;  %v226_v43 = vld [vmem:[%s1814_s1 + $0x640] sm:$0xff]  ;;  %v243_v44 = vld [vmem:[%s1814_s1 + $0x6c8] sm:$0xff] }
  0x65   :  { %580 = vmatpush.msra.mxu2 %v186_v13  ;;  %599 = vmatpush.msra.mxu3 %v203_v14  ;;  %v258_v45 = vld [vmem:[%s1814_s1 + $0x740] sm:$0xff]  ;;  %v275_v46 = vld [vmem:[%s1814_s1 + $0x7c8] sm:$0xff]  ;;  %v225_v47 = vld [vmem:[%s1814_s1 + $0x638] sm:$0xff] }
  0x66   :  { %541 = vmatmul.f32.vlgmr.msra.gmra.mxu0 %v1296_v25  ;;  %581 = vmatmul.f32.vlgmr.msra.gmra.mxu2 %v1298_v26  ;;  %v263_v25 = vld [vmem:[%s1814_s1 + $0x768] sm:$0xff]  ;;  %v280_v26 = vld [vmem:[%s1814_s1 + $0x7f0] sm:$0xff]  ;;  %v242_v48 = vld [vmem:[%s1814_s1 + $0x6c0] sm:$0xff] }
  0x67   :  { %605 = vmatpush.msrb.mxu0 %v233_v15  ;;  %645 = vmatpush.msrb.mxu2 %v265_v16  ;;  %v257_v49 = vld [vmem:[%s1814_s1 + $0x738] sm:$0xff]  ;;  %v274_v50 = vld [vmem:[%s1814_s1 + $0x7c0] sm:$0xff]  ;;  %v224_v51 = vld [vmem:[%s1814_s1 + $0x630] sm:$0xff] }
  0x68   :  { %560 = vmatpush.msra.mxu1 %v170_v17  ;;  %600 = vmatpush.msra.mxu3 %v202_v18  ;;  %v241_v52 = vld [vmem:[%s1814_s1 + $0x6b8] sm:$0xff]  ;;  %v256_v53 = vld [vmem:[%s1814_s1 + $0x730] sm:$0xff]  ;;  %v223_v55 = vld [vmem:[%s1814_s1 + $0x628] sm:$0xff] }
  0x69   :  { %561 = vmatmul.f32.vlgmr.msra.gmra.mxu1 %v1300_v27  ;;  %601 = vmatmul.f32.vlgmr.msra.gmra.mxu3 %v1308_v30  ;;  %v230_v27 = vld [vmem:[%s1814_s1 + $0x660] sm:$0xff]  ;;  %v279_v30 = vld [vmem:[%s1814_s1 + $0x7e8] sm:$0xff]  ;;  %v273_v54 = vld [vmem:[%s1814_s1 + $0x7b8] sm:$0xff] }
  0x6a   :  { %606 = vmatpush.msrb.mxu0 %v232_v19  ;;  %625 = vmatpush.msrb.mxu1 %v249_v20  ;;  %v240_v56 = vld [vmem:[%s1814_s1 + $0x6b0] sm:$0xff]  ;;  %v255_v57 = vld [vmem:[%s1814_s1 + $0x728] sm:$0xff]  ;;  %v222_v59 = vld [vmem:[%s1814_s1 + $0x620] sm:$0xff] }
  0x6b   :  { %646 = vmatpush.msrb.mxu2 %v264_v21  ;;  %665 = vmatpush.msrb.mxu3 %v281_v22  ;;  %v272_v58 = vld [vmem:[%s1814_s1 + $0x7b0] sm:$0xff]  ;;  %v239_v60 = vld [vmem:[%s1814_s1 + $0x6a8] sm:$0xff]  ;;  %v254_v61 = vld [vmem:[%s1814_s1 + $0x720] sm:$0xff] }
  0x6c   :  { %607 = vmatpush.msrb.mxu0 %v231_v23  ;;  %626 = vmatpush.msrb.mxu1 %v248_v24  ;;  %v271_v62 = vld [vmem:[%s1814_s1 + $0x7a8] sm:$0xff]  ;;  %v221_v63 = vld [vmem:[%s1814_s1 + $0x618] sm:$0xff]  ;;  %v238_v0 = vld [vmem:[%s1814_s1 + $0x6a0] sm:$0xff] }
  0x6d   :  { %647 = vmatpush.msrb.mxu2 %v263_v25  ;;  %666 = vmatpush.msrb.mxu3 %v280_v26  ;;  %v253_v1 = vld [vmem:[%s1814_s1 + $0x718] sm:$0xff]  ;;  %v270_v2 = vld [vmem:[%s1814_s1 + $0x7a0] sm:$0xff]  ;;  %v220_v3 = vld [vmem:[%s1814_s1 + $0x610] sm:$0xff] }
  0x6e   :  { %608 = vmatpush.msrb.mxu0 %v230_v27  ;;  %627 = vmatpush.msrb.mxu1 %v247_v28  ;;  %v237_v4 = vld [vmem:[%s1814_s1 + $0x698] sm:$0xff]  ;;  %v252_v5 = vld [vmem:[%s1814_s1 + $0x710] sm:$0xff]  ;;  %v219_v7 = vld [vmem:[%s1814_s1 + $0x608] sm:$0xff] }
  0x6f   :  { %648 = vmatpush.msrb.mxu2 %v262_v29  ;;  %667 = vmatpush.msrb.mxu3 %v279_v30  ;;  %v269_v6 = vld [vmem:[%s1814_s1 + $0x798] sm:$0xff]  ;;  %v236_v8 = vld [vmem:[%s1814_s1 + $0x690] sm:$0xff]  ;;  %v251_v9 = vld [vmem:[%s1814_s1 + $0x708] sm:$0xff] }
  0x70   :  { %609 = vmatpush.msrb.mxu0 %v229_v31  ;;  %628 = vmatpush.msrb.mxu1 %v246_v32  ;;  %v268_v10 = vld [vmem:[%s1814_s1 + $0x790] sm:$0xff]  ;;  %v218_v11 = vld [vmem:[%s1814_s1 + $0x600] sm:$0xff]  ;;  %v235_v12 = vld [vmem:[%s1814_s1 + $0x688] sm:$0xff] }
  0x71   :  { %649 = vmatpush.msrb.mxu2 %v261_v33  ;;  %668 = vmatpush.msrb.mxu3 %v278_v34  ;;  %v250_v13 = vld [vmem:[%s1814_s1 + $0x700] sm:$0xff]  ;;  %v267_v14 = vld [vmem:[%s1814_s1 + $0x788] sm:$0xff]  ;;  %v342_v16 = vld.sshfl [vmem:[#allocation1 + $0x30] sm:$0xff pattern:$0x73625140] }
  0x72   :  { %610 = vmatpush.msrb.mxu0 %v228_v35  ;;  %629 = vmatpush.msrb.mxu1 %v245_v36  ;;  %v340_v15 = vld.sshfl [vmem:[#allocation1 + $0x20] sm:$0xff pattern:$0x73625140]  ;;  %v297_v17 = vld [vmem:[%s1814_s1 + $0x878] sm:$0xff]  ;;  %v296_v22 = vld [vmem:[%s1814_s1 + $0x870] sm:$0xff] }
  0x73   :  { %650 = vmatpush.msrb.mxu2 %v260_v37  ;;  %669 = vmatpush.msrb.mxu3 %v277_v38  ;;  %v234_v18 = vld [vmem:[%s1814_s1 + $0x680] sm:$0xff]  ;;  %v341_v20 = vld.sshfl [vmem:[#allocation1 + $0x28] sm:$0xff pattern:$0x73625140]  ;;  %v313_v23 = vld [vmem:[%s1814_s1 + $0x8f8] sm:$0xff] }
  0x74   :  { %611 = vmatpush.msrb.mxu0 %v227_v39  ;;  %630 = vmatpush.msrb.mxu1 %v244_v40  ;;  %v266_v19 = vld [vmem:[%s1814_s1 + $0x780] sm:$0xff]  ;;  %v343_v21 = vld.sshfl [vmem:[#allocation1 + $0x38] sm:$0xff pattern:$0x73625140]  ;;  %v295_v24 = vld [vmem:[%s1814_s1 + $0x868] sm:$0xff] }
  0x75   :  { %651 = vmatpush.msrb.mxu2 %v259_v41  ;;  %670 = vmatpush.msrb.mxu3 %v276_v42  ;;  %v312_v25 = vld [vmem:[%s1814_s1 + $0x8f0] sm:$0xff]  ;;  %v294_v26 = vld [vmem:[%s1814_s1 + $0x860] sm:$0xff]  ;;  %v311_v27 = vld [vmem:[%s1814_s1 + $0x8e8] sm:$0xff] }
  0x76   :  { %612 = vmatpush.msrb.mxu0 %v226_v43  ;;  %631 = vmatpush.msrb.mxu1 %v243_v44  ;;  %v293_v28 = vld [vmem:[%s1814_s1 + $0x858] sm:$0xff]  ;;  %v310_v29 = vld [vmem:[%s1814_s1 + $0x8e0] sm:$0xff]  ;;  %v292_v30 = vld [vmem:[%s1814_s1 + $0x850] sm:$0xff] }
  0x77   :  { %652 = vmatpush.msrb.mxu2 %v258_v45  ;;  %671 = vmatpush.msrb.mxu3 %v275_v46  ;;  %v309_v31 = vld [vmem:[%s1814_s1 + $0x8d8] sm:$0xff]  ;;  %v291_v32 = vld [vmem:[%s1814_s1 + $0x848] sm:$0xff]  ;;  %v308_v33 = vld [vmem:[%s1814_s1 + $0x8d0] sm:$0xff] }
  0x78   :  { %613 = vmatpush.msrb.mxu0 %v225_v47  ;;  %632 = vmatpush.msrb.mxu1 %v242_v48  ;;  %v290_v34 = vld [vmem:[%s1814_s1 + $0x840] sm:$0xff]  ;;  %v307_v35 = vld [vmem:[%s1814_s1 + $0x8c8] sm:$0xff]  ;;  %v289_v36 = vld [vmem:[%s1814_s1 + $0x838] sm:$0xff] }
  0x79   :  { %653 = vmatpush.msrb.mxu2 %v257_v49  ;;  %672 = vmatpush.msrb.mxu3 %v274_v50  ;;  %v306_v37 = vld [vmem:[%s1814_s1 + $0x8c0] sm:$0xff]  ;;  %v288_v38 = vld [vmem:[%s1814_s1 + $0x830] sm:$0xff]  ;;  %v305_v39 = vld [vmem:[%s1814_s1 + $0x8b8] sm:$0xff] }
  0x7a   :  { %614 = vmatpush.msrb.mxu0 %v224_v51  ;;  %633 = vmatpush.msrb.mxu1 %v241_v52  ;;  %v287_v40 = vld [vmem:[%s1814_s1 + $0x828] sm:$0xff]  ;;  %v304_v41 = vld [vmem:[%s1814_s1 + $0x8b0] sm:$0xff]  ;;  %v286_v42 = vld [vmem:[%s1814_s1 + $0x820] sm:$0xff] }
  0x7b   :  { %654 = vmatpush.msrb.mxu2 %v256_v53  ;;  %673 = vmatpush.msrb.mxu3 %v273_v54  ;;  %v303_v43 = vld [vmem:[%s1814_s1 + $0x8a8] sm:$0xff]  ;;  %v285_v44 = vld [vmem:[%s1814_s1 + $0x818] sm:$0xff]  ;;  %v302_v45 = vld [vmem:[%s1814_s1 + $0x8a0] sm:$0xff] }
  0x7c   :  { %615 = vmatpush.msrb.mxu0 %v223_v55  ;;  %634 = vmatpush.msrb.mxu1 %v240_v56  ;;  %v284_v46 = vld [vmem:[%s1814_s1 + $0x810] sm:$0xff]  ;;  %v301_v47 = vld [vmem:[%s1814_s1 + $0x898] sm:$0xff]  ;;  %v283_v48 = vld [vmem:[%s1814_s1 + $0x808] sm:$0xff] }
  0x7d   :  { %655 = vmatpush.msrb.mxu2 %v255_v57  ;;  %674 = vmatpush.msrb.mxu3 %v272_v58  ;;  %v300_v49 = vld [vmem:[%s1814_s1 + $0x890] sm:$0xff]  ;;  %v282_v50 = vld [vmem:[%s1814_s1 + $0x800] sm:$0xff]  ;;  %v299_v51 = vld [vmem:[%s1814_s1 + $0x888] sm:$0xff] }
  0x7e   :  { %616 = vmatpush.msrb.mxu0 %v222_v59  ;;  %635 = vmatpush.msrb.mxu1 %v239_v60  ;;  %v345_v52 = vld.sshfl [vmem:[#allocation1] sm:$0xff pattern:$0x73625140]  ;;  %v346_v54 = vld.sshfl [vmem:[#allocation1 + $0x8] sm:$0xff pattern:$0x73625140] }
  0x7f   :  { %656 = vmatpush.msrb.mxu2 %v254_v61  ;;  %675 = vmatpush.msrb.mxu3 %v271_v62  ;;  %v298_v53 = vld [vmem:[%s1814_s1 + $0x880] sm:$0xff]  ;;  %v741_v56 = vld [vmem:[%s1816_s3 + $0x78] sm:$0xff]  ;;  %v740_v58 = vld [vmem:[%s1816_s3 + $0x70] sm:$0xff] }
  0x80   :  { %617 = vmatpush.msrb.mxu0 %v221_v63  ;;  %636 = vmatpush.msrb.mxu1 %v238_v0  ;;  %v785_v55 = vld [vmem:[%s1815_s2] ss:$0 sm:$0xff]  ;;  %v739_v59 = vld [vmem:[%s1816_s3 + $0x68] sm:$0xff]  ;;  %v737_v63 = vld [vmem:[%s1816_s3 + $0x58] sm:$0xff] }
  0x81   :  { %657 = vmatpush.msrb.mxu2 %v253_v1  ;;  %676 = vmatpush.msrb.mxu3 %v270_v2  ;;  %v738_v62 = vld [vmem:[%s1816_s3 + $0x60] sm:$0xff]  ;;  %v736_v2 = vld [vmem:[%s1816_s3 + $0x50] sm:$0xff] }
  0x82   :  { %618 = vmatpush.msrb.mxu0 %v220_v3  ;;  %637 = vmatpush.msrb.mxu1 %v237_v4  ;;  %v735_v3 = vld [vmem:[%s1816_s3 + $0x48] sm:$0xff] }
  0x83   :  { %658 = vmatpush.msrb.mxu2 %v252_v5  ;;  %677 = vmatpush.msrb.mxu3 %v269_v6  ;;  %v734_v6 = vld [vmem:[%s1816_s3 + $0x40] sm:$0xff] }
  0x84   :  { %619 = vmatpush.msrb.mxu0 %v219_v7  ;;  %638 = vmatpush.msrb.mxu1 %v236_v8  ;;  %v733_v7 = vld [vmem:[%s1816_s3 + $0x38] sm:$0xff] }
  0x85   :  { %659 = vmatpush.msrb.mxu2 %v251_v9  ;;  %678 = vmatpush.msrb.mxu3 %v268_v10  ;;  %v732_v10 = vld [vmem:[%s1816_s3 + $0x30] sm:$0xff] }
  0x86   :  { %620 = vmatpush.msrb.mxu0 %v218_v11  ;;  %639 = vmatpush.msrb.mxu1 %v235_v12  ;;  %v731_v11 = vld [vmem:[%s1816_s3 + $0x28] sm:$0xff] }
  0x87   :  { %660 = vmatpush.msrb.mxu2 %v250_v13  ;;  %679 = vmatpush.msrb.mxu3 %v267_v14  ;;  %v730_v14 = vld [vmem:[%s1816_s3 + $0x20] sm:$0xff] }
  0x88   :  { %621 = vmatmul.f32.vlgmr.msrb.gmra.mxu0 %v340_v15  ;;  %661 = vmatmul.f32.vlgmr.msrb.gmra.mxu2 %v342_v16 }
  0x89   :  { %685 = vmatpush.msra.mxu0 %v297_v17  ;;  %640 = vmatpush.msrb.mxu1 %v234_v18  ;;  %v729_v17 = vld [vmem:[%s1816_s3 + $0x18] sm:$0xff]  ;;  %v728_v18 = vld [vmem:[%s1816_s3 + $0x10] sm:$0xff] }
  0x8a   :  { %680 = vmatpush.msrb.mxu3 %v266_v19  ;;  %641 = vmatmul.f32.vlgmr.msrb.gmra.mxu1 %v341_v20 }
  0x8b   :  { %681 = vmatmul.f32.vlgmr.msrb.gmra.mxu3 %v343_v21  ;;  %686 = vmatpush.msra.mxu0 %v296_v22  ;;  %v727_v21 = vld [vmem:[%s1816_s3 + $0x8] sm:$0xff] }
  0x8c   :  { %705 = vmatpush.msra.mxu1 %v313_v23  ;;  %746 = vmatpush.msra.mxu2 %v741_v56  ;;  %v726_v23 = vld [vmem:[%s1816_s3] sm:$0xff] }
  0x8d   :  { %687 = vmatpush.msra.mxu0 %v295_v24 }
  0x8e   :  { %706 = vmatpush.msra.mxu1 %v312_v25  ;;  %747 = vmatpush.msra.mxu2 %v740_v58 }
  0x8f   :  { %688 = vmatpush.msra.mxu0 %v294_v26 }
  0x90   :  { %707 = vmatpush.msra.mxu1 %v311_v27  ;;  %748 = vmatpush.msra.mxu2 %v739_v59 }
  0x91   :  { %689 = vmatpush.msra.mxu0 %v293_v28 }
  0x92   :  { %708 = vmatpush.msra.mxu1 %v310_v29  ;;  %749 = vmatpush.msra.mxu2 %v738_v62 }
  0x93   :  { %690 = vmatpush.msra.mxu0 %v292_v30 }
  0x94   :  { %709 = vmatpush.msra.mxu1 %v309_v31  ;;  %750 = vmatpush.msra.mxu2 %v737_v63 }
  0x95   :  { %691 = vmatpush.msra.mxu0 %v291_v32 }
  0x96   :  { %710 = vmatpush.msra.mxu1 %v308_v33  ;;  %751 = vmatpush.msra.mxu2 %v736_v2 }
  0x97   :  { %692 = vmatpush.msra.mxu0 %v290_v34 }
  0x98   :  { %711 = vmatpush.msra.mxu1 %v307_v35  ;;  %752 = vmatpush.msra.mxu2 %v735_v3 }
  0x99   :  { %693 = vmatpush.msra.mxu0 %v289_v36 }
  0x9a   :  { %712 = vmatpush.msra.mxu1 %v306_v37  ;;  %753 = vmatpush.msra.mxu2 %v734_v6 }
  0x9b   :  { %694 = vmatpush.msra.mxu0 %v288_v38 }
  0x9c   :  { %713 = vmatpush.msra.mxu1 %v305_v39  ;;  %754 = vmatpush.msra.mxu2 %v733_v7 }
  0x9d   :  { %695 = vmatpush.msra.mxu0 %v287_v40 }
  0x9e   :  { %714 = vmatpush.msra.mxu1 %v304_v41  ;;  %755 = vmatpush.msra.mxu2 %v732_v10 }
  0x9f   :  { %696 = vmatpush.msra.mxu0 %v286_v42 }
  0xa0   :  { %715 = vmatpush.msra.mxu1 %v303_v43  ;;  %756 = vmatpush.msra.mxu2 %v731_v11 }
  0xa1   :  { %697 = vmatpush.msra.mxu0 %v285_v44 }
  0xa2   :  { %716 = vmatpush.msra.mxu1 %v302_v45  ;;  %757 = vmatpush.msra.mxu2 %v730_v14  ;;  %v786_v45 = vld [vmem:[%s1817_s4] ss:$0 sm:$0xff] }
  0xa3   :  { %698 = vmatpush.msra.mxu0 %v284_v46 }
  0xa4   :  { %717 = vmatpush.msra.mxu1 %v301_v47  ;;  %758 = vmatpush.msra.mxu2 %v729_v17 }
  0xa5   :  { %699 = vmatpush.msra.mxu0 %v283_v48 }
  0xa6   :  { %718 = vmatpush.msra.mxu1 %v300_v49  ;;  %759 = vmatpush.msra.mxu2 %v728_v18 }
  0xa7   :  { %700 = vmatpush.msra.mxu0 %v282_v50 }
  0xa8   :  { %719 = vmatpush.msra.mxu1 %v299_v51  ;;  %701 = vmatmul.f32.vlgmr.msra.gmra.mxu0 %v345_v52 }
  0xa9   :  { %760 = vmatpush.msra.mxu2 %v727_v21 }
  0xaa   :  { %720 = vmatpush.msra.mxu1 %v298_v53 }
  0xab   :  { %721 = vmatmul.f32.vlgmr.msra.gmra.mxu1 %v346_v54  ;;  %761 = vmatpush.msra.mxu2 %v726_v23 }
  0xbf   :  { %v382_v57 = vpop.f32.mrf.mxu0 }
  0xc0   :  { %v383_v60 = vadd.f32 %v785_v55, %v382_v57 }
  0xc2   :  { %v402_v61 = vpop.f32.mrf.mxu1 }
  0xc3   :  { %v403_v0 = vadd.f32 %v402_v61, %v383_v60  ;;  %v422_v1 = vpop.f32.mrf.mxu2 }
  0xc5   :  { %v423_v4 = vadd.f32 %v422_v1, %v403_v0 }
  0xc6   :  { %v442_v5 = vpop.f32.mrf.mxu3 }
  0xc7   :  { %v443_v8 = vadd.f32 %v442_v5, %v423_v4 }
  0xc9   :  { %v462_v9 = vpop.f32.mrf.mxu0 }
  0xca   :  { %v463_v12 = vadd.f32 %v462_v9, %v443_v8 }
  0xcc   :  { %v482_v13 = vpop.f32.mrf.mxu1 }
  0xcd   :  { %v483_v15 = vadd.f32 %v482_v13, %v463_v12  ;;  %v502_v16 = vpop.f32.mrf.mxu2 }
  0xcf   :  { %v503_v19 = vadd.f32 %v502_v16, %v483_v15 }
  0xd0   :  { %v522_v20 = vpop.f32.mrf.mxu3 }
  0xd1   :  { %v523_v24 = vadd.f32 %v522_v20, %v503_v19 }
  0xe3   :  { %v542_v22 = vpop.f32.mrf.mxu0 }
  0xe4   :  { %v543_v25 = vadd.f32 %v542_v22, %v523_v24 }
  0xe6   :  { %v562_v26 = vpop.f32.mrf.mxu1 }
  0xe7   :  { %v563_v28 = vadd.f32 %v562_v26, %v543_v25 }
  0xe9   :  { %v582_v27 = vpop.f32.mrf.mxu2 }
  0xea   :  { %v583_v29 = vadd.f32 %v582_v27, %v563_v28 }
  0xec   :  { %v602_v30 = vpop.f32.mrf.mxu3 }
  0xed   :  { %v603_v32 = vadd.f32 %v602_v30, %v583_v29 }
 0x105   :  { %v622_v31 = vpop.f32.mrf.mxu0 }
 0x106   :  { %v623_v33 = vadd.f32 %v622_v31, %v603_v32 }
 0x107   :  { %v642_v34 = vpop.f32.mrf.mxu1 }
 0x108   :  { %v643_v36 = vadd.f32 %v642_v34, %v623_v33 }
 0x10b   :  { %v662_v35 = vpop.f32.mrf.mxu2 }
 0x10c   :  { %v663_v37 = vadd.f32 %v662_v35, %v643_v36 }
 0x10e   :  { %v682_v38 = vpop.f32.mrf.mxu3 }
 0x10f   :  { %v683_v39 = vadd.f32 %v682_v38, %v663_v37 }
 0x125   :  { %v702_v40 = vpop.f32.mrf.mxu0 }
 0x126   :  { %v703_v41 = vadd.f32 %v702_v40, %v683_v39 }
 0x128   :  { %v722_v42 = vpop.f32.mrf.mxu1 }
 0x129   :  { %v723_v43 = vadd.f32 %v722_v42, %v703_v41 }
 0x12b   :  { %v725_v44 = vmax.f32 %v723_v43, 0.0 }
 0x12d   :  { %762 = vmatmul.f32.vlgmr.msra.gmra.mxu2 %v725_v44 }
 0x1b0   :  { %v763_v46 = vpop.f32.mrf.mxu2 }
 0x1b1   :  { %v764_v47 = vadd.f32 %v786_v45, %v763_v46 }
 0x1b3   :  { %767 = vst.msk [vmem:[#allocation2] sm:$0x3] %vm766_vm0, %v764_v47 }
 0x1b4   :  { %778 = dma.vmem_to_hbm [thread:$0]  %s774_s24, 32, %s776_s26, [#allocation3]  }
 0x1b5   :  { %811 = dma.done.wait [#allocation3], 32  }
 0x1b6   :  { %812 = vsyncadd [#allocation3], 4294967264 }
 0x1b7   :  { %783 = vsyncpa [#allocation3], 1 }

</bundles_post_ra>
